<compile_context>
chip_gen: v6e
topology: v6e:2x2x1
jax: 0.10.0
libtpu: 0.0.40
codegen_flags: <defaults>
</compile_context>

<pallas_src>
import jax
import jax.numpy as jnp
from jax.experimental import pallas as pl
from jax.experimental.pallas import tpu as pltpu

_CORE_SPLIT = 2   # leading "parallel" grid axis so a 2-TC chip (v7x) is not half idle
_GROUP = 32       # indices gathered + reduced per grid step (multiple of u8 sublane pack)


def embedding_bag_prepack(wq):
    """Pack a (V, D) uint8 table into (V, ceil(D/4)) int32 words (byte m of word k
    is column 4k+m).  Analogous to torch.ops.quantized.embedding_bag_prepack:
    done once per weight, reused by every forward call."""
    V, D = wq.shape
    D_pad = ((D + 3) // 4) * 4
    if D_pad != D:
        wq = jnp.pad(wq, ((0, 0), (0, D_pad - D)))
    w = wq.astype(jnp.uint32).reshape(V, D_pad // 4, 4)
    packed = w[..., 0] | (w[..., 1] << 8) | (w[..., 2] << 16) | (w[..., 3] << 24)
    return jax.lax.bitcast_convert_type(packed, jnp.int32)   # (V, D_pad // 4)


def _make_kernel(G):
    def kernel(idx_ref, s_ref, tbl_ref, out_ref, buf_ref, sem_ref):
        # idx_ref : (N_pad,)        int32 SMEM  (scalar prefetch) row id per index slot
        # s_ref   : (B_pad, G)      f32   VMEM  scatter/weight matrix for this group
        # tbl_ref : (V, D4)         int32 HBM   packed table (4 uint8 per int32)
        # out_ref : (B_pad, D_pad)  f32   VMEM  resident accumulator for this core slice
        # buf_ref : (2, G, D4)      int32 VMEM  double-buffered gathered rows
        # sem_ref : (2,)            DMA semaphores (one per slot, waited G times)
        c = pl.program_id(0)
        g = pl.program_id(1)
        ng = pl.num_programs(1)
        slot = g % 2

        def start_group(grp, dst_slot):
            base = (c * ng + grp) * G
            for j in range(G):
                row = idx_ref[base + j]
                pltpu.make_async_copy(tbl_ref.at[row], buf_ref.at[dst_slot, j],
                                      sem_ref.at[dst_slot]).start()

        def wait_group(dst_slot):
            for j in range(G):
                pltpu.make_async_copy(tbl_ref.at[0], buf_ref.at[dst_slot, j],
                                      sem_ref.at[dst_slot]).wait()

        @pl.when(g == 0)
        def _():
            out_ref[...] = jnp.zeros_like(out_ref)
            start_group(0, 0)          # prime slot 0 for this core slice

        @pl.when(g + 1 < ng)
        def _():
            start_group(g + 1, 1 - slot)   # prefetch next group into the other slot

        wait_group(slot)

        # Unpack 4 uint8 per int32 word into byte slabs (values 0..255, exact in f32).
        # TODO(synk): on v5e/v6e an int8 MXU path (and bf16 on v7x) would halve vreg
        # traffic; f32 is used here for exactness/portability.
        w = buf_ref[slot]                               # (G, D4) int32
        b0 = (w & 0xFF).astype(jnp.float32)
        b1 = ((w >> 8) & 0xFF).astype(jnp.float32)
        b2 = ((w >> 16) & 0xFF).astype(jnp.float32)
        b3 = ((w >> 24) & 0xFF).astype(jnp.float32)
        # Column-block-permuted rows: slab m holds true columns 4k+m (fixed in wrapper).
        rows = jnp.concatenate([b0, b1, b2, b3], axis=-1)   # (G, D_pad)
        out_ref[...] += jnp.dot(s_ref[...], rows, preferred_element_type=jnp.float32)

    return kernel


def quantized_embedding_bag_byte(wq, scale, zero_point, indices, offsets,
                                 per_sample_weights=None,
                                 include_last_offset=False, mode="sum"):
    """Emulates torch.ops.quantized.embedding_bag_byte (mode='sum')."""
    if mode != "sum":
        raise NotImplementedError("quantized EmbeddingBag only supports mode='sum'")
    # TODO(synk): quint4x2 (embedding_bag_4bit), pruned_weights and
    # compressed_indices_mapping paths of the PyTorch op are not implemented.
    V, D = wq.shape
    N = int(indices.shape[0])
    G = _GROUP

    # TODO(synk): a real module would prepack once at set_weight() time; done per call here.
    packed = embedding_bag_prepack(wq)               # (V, D4) int32
    D4 = int(packed.shape[1])
    D_pad = 4 * D4

    offsets = offsets.astype(jnp.int32)
    if include_last_offset:
        num_bags = int(offsets.shape[0]) - 1
        starts = offsets[:-1]
    else:
        num_bags = int(offsets.shape[0])
        starts = offsets
    B_pad = max(8, ((num_bags + 7) // 8) * 8)        # sublane-aligned accumulator

    # Bag id of every index position (handles empty bags).
    pos = jnp.arange(N, dtype=jnp.int32)
    bag_id = (jnp.searchsorted(starts, pos, side="right") - 1).astype(jnp.int32)
    bag_id = jnp.clip(bag_id, 0, num_bags - 1)

    if per_sample_weights is None:
        psw = jnp.ones((N,), jnp.float32)
    else:
        psw = per_sample_weights.astype(jnp.float32)

    # TODO(synk): PyTorch raises on out-of-range indices; we clamp to keep DMAs in-bounds.
    idx = jnp.clip(indices.astype(jnp.int32), 0, max(V - 1, 0))

    scale_i = scale.astype(jnp.float32)[idx]
    zp_i = zero_point.astype(jnp.float32)[idx]
    w_i = psw * scale_i                               # multiplies the quantized row
    # Zero-point correction hoisted out of the kernel (per-bag constant).
    c_bag = jnp.zeros((num_bags,), jnp.float32).at[bag_id].add(w_i * zp_i)

    # Pad index axis: CORE_SPLIT core-slices x ng_half groups x G indices.
    num_groups = max(1, -(-N // G))
    ng_half = max(1, -(-num_groups // _CORE_SPLIT))
    N_pad = _CORE_SPLIT * ng_half * G
    # TODO(synk): for very large N (>~64K) the SMEM index array should be chunked
    # across an outer grid dimension instead of a single scalar-prefetch array.

    idx_pad = jnp.pad(idx, (0, N_pad - N))            # padding rows -> row 0 (weight 0)
    # Scatter matrix S[b, p] = w_i if bag_id[p] == b else 0 (padded columns all-zero).
    s_flat = jnp.zeros((B_pad, N_pad), jnp.float32).at[bag_id, pos].set(w_i)
    s_all = s_flat.reshape(B_pad, _CORE_SPLIT, ng_half, G).transpose(1, 2, 0, 3)

    # VMEM budget (double buffers): gather scratch, S blocks, accumulator, unpack temps.
    vmem_est = (2 * G * D4 * 4 + 2 * B_pad * G * 4
                + 2 * B_pad * D_pad * 4 + 2 * G * D_pad * 4)
    vmem_limit = int(min(max(2 * vmem_est, 4 << 20), 32 << 20))
    # TODO(synk): if B_pad*D_pad*4 alone exceeds the budget (huge D * many bags),
    # a D-tiling grid axis would be needed; not implemented.

    grid_spec = pltpu.PrefetchScalarGridSpec(
        num_scalar_prefetch=1,                        # idx -> SMEM, drives the DMA gather
        grid=(_CORE_SPLIT, ng_half),                  # reduction (group) axis last
        in_specs=[
            pl.BlockSpec((None, None, B_pad, G), lambda c, g, idx_ref: (c, g, 0, 0)),  # S
            pl.BlockSpec(memory_space=pl.ANY),                                          # packed table (HBM)
        ],
        out_specs=pl.BlockSpec((None, B_pad, D_pad), lambda c, g, idx_ref: (c, 0, 0)),
        scratch_shapes=[
            pltpu.VMEM((2, G, D4), jnp.int32),        # double-buffered gathered rows
            pltpu.SemaphoreType.DMA((2,)),            # one DMA sem per slot
        ],
    )

    out = pl.pallas_call(
        _make_kernel(G),
        out_shape=jax.ShapeDtypeStruct((_CORE_SPLIT, B_pad, D_pad), jnp.float32),
        grid_spec=grid_spec,
        compiler_params=pltpu.CompilerParams(
            dimension_semantics=("parallel", "arbitrary"),
            vmem_limit_bytes=vmem_limit),
        cost_estimate=pl.CostEstimate(
            flops=2 * N_pad * B_pad * D_pad,
            transcendentals=0,
            bytes_accessed=N_pad * D_pad + B_pad * N_pad * 4
                           + _CORE_SPLIT * B_pad * D_pad * 4),
    )(idx_pad, s_all, packed)

    # Finalize (tiny XLA ops on the (num_bags, D) output):
    acc = out.sum(axis=0)                                             # combine core slices
    acc = acc.reshape(B_pad, 4, D4).transpose(0, 2, 1).reshape(B_pad, D_pad)  # un-permute byte slabs
    return acc[:num_bags, :D] - c_bag[:, None]                        # hoisted zp correction


def _reference(wq, scale, zero_point, indices, offsets, per_sample_weights,
               include_last_offset):
    """Pure-JAX reference of embedding_bag_byte (sum)."""
    V, D = wq.shape
    N = indices.shape[0]
    w_deq = (wq.astype(jnp.float32) - zero_point[:, None]) * scale[:, None]
    if include_last_offset:
        num_bags = offsets.shape[0] - 1
        starts = offsets[:-1]
    else:
        num_bags = offsets.shape[0]
        starts = offsets
    pos = jnp.arange(N, dtype=jnp.int32)
    bag_id = (jnp.searchsorted(starts.astype(jnp.int32), pos, side="right") - 1)
    bag_id = jnp.clip(bag_id.astype(jnp.int32), 0, num_bags - 1)
    gathered = w_deq[indices] * per_sample_weights[:, None]
    return jnp.zeros((num_bags, D), jnp.float32).at[bag_id].add(gathered)


def _make_qweights(key, V, D):
    w_float = jax.random.normal(key, (V, D), jnp.float32)
    w_min, w_max = w_float.min(axis=1), w_float.max(axis=1)
    scale = (w_max - w_min) / 255.0
    scale = jnp.where(scale == 0, 1.0, scale)
    zero_point = -w_min / scale
    wq = jnp.clip(jnp.round(w_float / scale[:, None] + zero_point[:, None]),
                  0, 255).astype(jnp.uint8)
    return wq, scale, zero_point


if __name__ == "__main__":
    key = jax.random.PRNGKey(0)
    k_w1, k_idx1, k_psw1, k_w2, k_idx2 = jax.random.split(key, 5)

    # --- Test 1: D multiple of 128, empty bag, per_sample_weights, include_last_offset ---
    V1, D1, N1 = 16, 128, 32
    wq1, scale1, zp1 = _make_qweights(k_w1, V1, D1)
    indices1 = jax.random.randint(k_idx1, (N1,), 0, V1, jnp.int32)
    offsets1 = jnp.array([0, 3, 8, 8, 20, 32], dtype=jnp.int32)   # 5 bags, one empty
    psw1 = jax.random.uniform(k_psw1, (N1,), jnp.float32, minval=0.5, maxval=1.5)

    out1 = quantized_embedding_bag_byte(wq1, scale1, zp1, indices1, offsets1,
                                        per_sample_weights=psw1,
                                        include_last_offset=True, mode="sum")
    out1 = jax.block_until_ready(out1)
    ref1 = _reference(wq1, scale1, zp1, indices1, offsets1, psw1, True)
    assert out1.shape == (5, D1) and out1.dtype == jnp.float32, out1.shape
    assert jnp.allclose(out1, ref1, atol=2e-3, rtol=1e-4), \
        f"test1 max err {jnp.abs(out1 - ref1).max()}"

    # --- Test 2: D not a multiple of 4/128, no psw, include_last_offset=False, ragged N ---
    V2, D2, N2 = 11, 18, 7
    wq2, scale2, zp2 = _make_qweights(k_w2, V2, D2)
    indices2 = jax.random.randint(k_idx2, (N2,), 0, V2, jnp.int32)
    offsets2 = jnp.array([0, 2, 5], dtype=jnp.int32)              # 3 bags, last runs to N
    out2 = quantized_embedding_bag_byte(wq2, scale2, zp2, indices2, offsets2,
                                        per_sample_weights=None,
                                        include_last_offset=False, mode="sum")
    out2 = jax.block_until_ready(out2)
    ref2 = _reference(wq2, scale2, zp2, indices2, offsets2,
                      jnp.ones((N2,), jnp.float32), False)
    assert out2.shape == (3, D2) and out2.dtype == jnp.float32, out2.shape
    assert jnp.allclose(out2, ref2, atol=2e-3, rtol=1e-4), \
        f"test2 max err {jnp.abs(out2 - ref2).max()}"

    print("KERNEL_OK")
</pallas_src>

<mosaic_0001>
module attributes {stable_mosaic.version = 11 : i64} {
  func.func @kernel(%arg0: i32, %arg1: i32, %arg2: memref<64xi32, #tpu.memory_space<smem>>, %arg3: memref<1x1x8x32xf32, #tpu.memory_space<vmem>>, %arg4: memref<16x32xi32, #tpu.memory_space<any>>, %arg5: memref<1x8x128xf32, #tpu.memory_space<vmem>>, %arg6: memref<2x32x32xi32, #tpu.memory_space<vmem>>, %arg7: memref<2x!tpu.dma_semaphore, #tpu.memory_space<semaphore_mem>>) attributes {dimension_semantics = [#tpu.dimension_semantics<parallel>, #tpu.dimension_semantics<arbitrary>], iteration_bounds = array<i64: 2, 1>, scalar_prefetch = 1 : i64, scratch_operands = 2 : i64, tpu.core_type = #tpu.core_type<tc>, window_params = [{transform_indices = @transform_0, window_bounds = array<i64: 1, 1, 8, 32>}, {}, {transform_indices = @transform_2, window_bounds = array<i64: 1, 8, 128>}]} {
    %c2_i32 = arith.constant 2 : i32
    %c0_i32 = arith.constant 0 : i32
    %0 = arith.cmpi eq, %c2_i32, %c0_i32 : i32
    %c1_i32 = arith.constant 1 : i32
    %1 = arith.select %0, %c1_i32, %c2_i32 : i32
    %2 = arith.remsi %arg1, %1 : i32
    %c0_i32_0 = arith.constant 0 : i32
    %3 = arith.cmpi ne, %2, %c0_i32_0 : i32
    %c0_i32_1 = arith.constant 0 : i32
    %4 = arith.cmpi slt, %2, %c0_i32_1 : i32
    %c0_i32_2 = arith.constant 0 : i32
    %5 = arith.cmpi slt, %1, %c0_i32_2 : i32
    %6 = arith.xori %4, %5 : i1
    %7 = arith.andi %6, %3 : i1
    %8 = arith.addi %2, %1 : i32
    %9 = arith.select %7, %8, %2 : i32
    %c0_i32_3 = arith.constant 0 : i32
    %10 = arith.cmpi eq, %arg1, %c0_i32_3 : i32
    %11 = arith.extui %10 : i1 to i32
    %c0_i32_4 = arith.constant 0 : i32
    %12 = arith.cmpi ne, %11, %c0_i32_4 : i32
    scf.if %12 {
      %cst_124 = arith.constant 0.000000e+00 : f32
      %240 = vector.broadcast %cst_124 : f32 to vector<8x128xf32>
      %c0_125 = arith.constant 0 : index
      %c0_126 = arith.constant 0 : index
      %c0_127 = arith.constant 0 : index
      %241 = vector.load %arg5[%c0_125, %c0_126, %c0_127] : memref<1x8x128xf32, #tpu.memory_space<vmem>>, vector<1x8x128xf32>
      %242 = vector.shape_cast %241 : vector<1x8x128xf32> to vector<8x128xf32>
      %243 = vector.shape_cast %240 : vector<8x128xf32> to vector<1x8x128xf32>
      tpu.vector_store %arg5[%c0_125, %c0_126, %c0_127], %243 {strides = array<i32>} : memref<1x8x128xf32, #tpu.memory_space<vmem>>, vector<1x8x128xf32>,
      %c1_i32_128 = arith.constant 1 : i32
      %244 = arith.muli %arg0, %c1_i32_128 : i32
      %c0_i32_129 = arith.constant 0 : i32
      %245 = arith.addi %244, %c0_i32_129 : i32
      %c32_i32 = arith.constant 32 : i32
      %246 = arith.muli %245, %c32_i32 : i32
      %c0_i32_130 = arith.constant 0 : i32
      %247 = arith.addi %246, %c0_i32_130 : i32
      %248 = arith.index_cast %247 : i32 to index
      %249 = memref.load %arg2[%248] : memref<64xi32, #tpu.memory_space<smem>>
      %c0_i32_131 = arith.constant 0 : i32
      %c0_i32_132 = arith.constant 0 : i32
      %c0_i32_133 = arith.constant 0 : i32
      %c0_i32_134 = arith.constant 0 : i32
      %250 = tpu.memref_slice %arg4[%249, %c0_i32_134] : memref<16x32xi32, #tpu.memory_space<any>> -> memref<1x32xi32, #tpu.memory_space<any>>
      %251 = tpu.memref_squeeze %250 : memref<1x32xi32, #tpu.memory_space<any>> -> memref<32xi32, #tpu.memory_space<any>>
      %c0_i32_135 = arith.constant 0 : i32
      %252 = tpu.memref_slice %arg6[%c0_i32_131, %c0_i32_132, %c0_i32_135] : memref<2x32x32xi32, #tpu.memory_space<vmem>> -> memref<1x1x32xi32, #tpu.memory_space<vmem>>
      %253 = tpu.memref_squeeze %252 : memref<1x1x32xi32, #tpu.memory_space<vmem>> -> memref<32xi32, #tpu.memory_space<vmem>>
      %254 = tpu.memref_slice %arg7[%c0_i32_133] : memref<2x!tpu.dma_semaphore, #tpu.memory_space<semaphore_mem>> -> memref<1x!tpu.dma_semaphore, #tpu.memory_space<semaphore_mem>>
      %255 = tpu.memref_squeeze %254 : memref<1x!tpu.dma_semaphore, #tpu.memory_space<semaphore_mem>> -> memref<!tpu.dma_semaphore, #tpu.memory_space<semaphore_mem>>
      tpu.enqueue_dma source(%251 : memref<32xi32, #tpu.memory_space<any>>) target(%253 : memref<32xi32, #tpu.memory_space<vmem>>) target_semaphore(%255 : memref<!tpu.dma_semaphore, #tpu.memory_space<semaphore_mem>>)
      %c1_i32_136 = arith.constant 1 : i32
      %256 = arith.addi %246, %c1_i32_136 : i32
      %257 = arith.index_cast %256 : i32 to index
      %258 = memref.load %arg2[%257] : memref<64xi32, #tpu.memory_space<smem>>
      %c0_i32_137 = arith.constant 0 : i32
      %c1_i32_138 = arith.constant 1 : i32
      %c0_i32_139 = arith.constant 0 : i32
      %c0_i32_140 = arith.constant 0 : i32
      %259 = tpu.memref_slice %arg4[%258, %c0_i32_140] : memref<16x32xi32, #tpu.memory_space<any>> -> memref<1x32xi32, #tpu.memory_space<any>>
      %260 = tpu.memref_squeeze %259 : memref<1x32xi32, #tpu.memory_space<any>> -> memref<32xi32, #tpu.memory_space<any>>
      %c0_i32_141 = arith.constant 0 : i32
      %261 = tpu.memref_slice %arg6[%c0_i32_137, %c1_i32_138, %c0_i32_141] : memref<2x32x32xi32, #tpu.memory_space<vmem>> -> memref<1x1x32xi32, #tpu.memory_space<vmem>>
      %262 = tpu.memref_squeeze %261 : memref<1x1x32xi32, #tpu.memory_space<vmem>> -> memref<32xi32, #tpu.memory_space<vmem>>
      %263 = tpu.memref_slice %arg7[%c0_i32_139] : memref<2x!tpu.dma_semaphore, #tpu.memory_space<semaphore_mem>> -> memref<1x!tpu.dma_semaphore, #tpu.memory_space<semaphore_mem>>
      %264 = tpu.memref_squeeze %263 : memref<1x!tpu.dma_semaphore, #tpu.memory_space<semaphore_mem>> -> memref<!tpu.dma_semaphore, #tpu.memory_space<semaphore_mem>>
      tpu.enqueue_dma source(%260 : memref<32xi32, #tpu.memory_space<any>>) target(%262 : memref<32xi32, #tpu.memory_space<vmem>>) target_semaphore(%264 : memref<!tpu.dma_semaphore, #tpu.memory_space<semaphore_mem>>)
      %c2_i32_142 = arith.constant 2 : i32
      %265 = arith.addi %246, %c2_i32_142 : i32
      %266 = arith.index_cast %265 : i32 to index
      %267 = memref.load %arg2[%266] : memref<64xi32, #tpu.memory_space<smem>>
      %c0_i32_143 = arith.constant 0 : i32
      %c2_i32_144 = arith.constant 2 : i32
      %c0_i32_145 = arith.constant 0 : i32
      %c0_i32_146 = arith.constant 0 : i32
      %268 = tpu.memref_slice %arg4[%267, %c0_i32_146] : memref<16x32xi32, #tpu.memory_space<any>> -> memref<1x32xi32, #tpu.memory_space<any>>
      %269 = tpu.memref_squeeze %268 : memref<1x32xi32, #tpu.memory_space<any>> -> memref<32xi32, #tpu.memory_space<any>>
      %c0_i32_147 = arith.constant 0 : i32
      %270 = tpu.memref_slice %arg6[%c0_i32_143, %c2_i32_144, %c0_i32_147] : memref<2x32x32xi32, #tpu.memory_space<vmem>> -> memref<1x1x32xi32, #tpu.memory_space<vmem>>
      %271 = tpu.memref_squeeze %270 : memref<1x1x32xi32, #tpu.memory_space<vmem>> -> memref<32xi32, #tpu.memory_space<vmem>>
      %272 = tpu.memref_slice %arg7[%c0_i32_145] : memref<2x!tpu.dma_semaphore, #tpu.memory_space<semaphore_mem>> -> memref<1x!tpu.dma_semaphore, #tpu.memory_space<semaphore_mem>>
      %273 = tpu.memref_squeeze %272 : memref<1x!tpu.dma_semaphore, #tpu.memory_space<semaphore_mem>> -> memref<!tpu.dma_semaphore, #tpu.memory_space<semaphore_mem>>
      tpu.enqueue_dma source(%269 : memref<32xi32, #tpu.memory_space<any>>) target(%271 : memref<32xi32, #tpu.memory_space<vmem>>) target_semaphore(%273 : memref<!tpu.dma_semaphore, #tpu.memory_space<semaphore_mem>>)
      %c3_i32_148 = arith.constant 3 : i32
      %274 = arith.addi %246, %c3_i32_148 : i32
      %275 = arith.index_cast %274 : i32 to index
      %276 = memref.load %arg2[%275] : memref<64xi32, #tpu.memory_space<smem>>
      %c0_i32_149 = arith.constant 0 : i32
      %c3_i32_150 = arith.constant 3 : i32
      %c0_i32_151 = arith.constant 0 : i32
      %c0_i32_152 = arith.constant 0 : i32
      %277 = tpu.memref_slice %arg4[%276, %c0_i32_152] : memref<16x32xi32, #tpu.memory_space<any>> -> memref<1x32xi32, #tpu.memory_space<any>>
      %278 = tpu.memref_squeeze %277 : memref<1x32xi32, #tpu.memory_space<any>> -> memref<32xi32, #tpu.memory_space<any>>
      %c0_i32_153 = arith.constant 0 : i32
      %279 = tpu.memref_slice %arg6[%c0_i32_149, %c3_i32_150, %c0_i32_153] : memref<2x32x32xi32, #tpu.memory_space<vmem>> -> memref<1x1x32xi32, #tpu.memory_space<vmem>>
      %280 = tpu.memref_squeeze %279 : memref<1x1x32xi32, #tpu.memory_space<vmem>> -> memref<32xi32, #tpu.memory_space<vmem>>
      %281 = tpu.memref_slice %arg7[%c0_i32_151] : memref<2x!tpu.dma_semaphore, #tpu.memory_space<semaphore_mem>> -> memref<1x!tpu.dma_semaphore, #tpu.memory_space<semaphore_mem>>
      %282 = tpu.memref_squeeze %281 : memref<1x!tpu.dma_semaphore, #tpu.memory_space<semaphore_mem>> -> memref<!tpu.dma_semaphore, #tpu.memory_space<semaphore_mem>>
      tpu.enqueue_dma source(%278 : memref<32xi32, #tpu.memory_space<any>>) target(%280 : memref<32xi32, #tpu.memory_space<vmem>>) target_semaphore(%282 : memref<!tpu.dma_semaphore, #tpu.memory_space<semaphore_mem>>)
      %c4_i32_154 = arith.constant 4 : i32
      %283 = arith.addi %246, %c4_i32_154 : i32
      %284 = arith.index_cast %283 : i32 to index
      %285 = memref.load %arg2[%284] : memref<64xi32, #tpu.memory_space<smem>>
      %c0_i32_155 = arith.constant 0 : i32
      %c4_i32_156 = arith.constant 4 : i32
      %c0_i32_157 = arith.constant 0 : i32
      %c0_i32_158 = arith.constant 0 : i32
      %286 = tpu.memref_slice %arg4[%285, %c0_i32_158] : memref<16x32xi32, #tpu.memory_space<any>> -> memref<1x32xi32, #tpu.memory_space<any>>
      %287 = tpu.memref_squeeze %286 : memref<1x32xi32, #tpu.memory_space<any>> -> memref<32xi32, #tpu.memory_space<any>>
      %c0_i32_159 = arith.constant 0 : i32
      %288 = tpu.memref_slice %arg6[%c0_i32_155, %c4_i32_156, %c0_i32_159] : memref<2x32x32xi32, #tpu.memory_space<vmem>> -> memref<1x1x32xi32, #tpu.memory_space<vmem>>
      %289 = tpu.memref_squeeze %288 : memref<1x1x32xi32, #tpu.memory_space<vmem>> -> memref<32xi32, #tpu.memory_space<vmem>>
      %290 = tpu.memref_slice %arg7[%c0_i32_157] : memref<2x!tpu.dma_semaphore, #tpu.memory_space<semaphore_mem>> -> memref<1x!tpu.dma_semaphore, #tpu.memory_space<semaphore_mem>>
      %291 = tpu.memref_squeeze %290 : memref<1x!tpu.dma_semaphore, #tpu.memory_space<semaphore_mem>> -> memref<!tpu.dma_semaphore, #tpu.memory_space<semaphore_mem>>
      tpu.enqueue_dma source(%287 : memref<32xi32, #tpu.memory_space<any>>) target(%289 : memref<32xi32, #tpu.memory_space<vmem>>) target_semaphore(%291 : memref<!tpu.dma_semaphore, #tpu.memory_space<semaphore_mem>>)
      %c5_i32_160 = arith.constant 5 : i32
      %292 = arith.addi %246, %c5_i32_160 : i32
      %293 = arith.index_cast %292 : i32 to index
      %294 = memref.load %arg2[%293] : memref<64xi32, #tpu.memory_space<smem>>
      %c0_i32_161 = arith.constant 0 : i32
      %c5_i32_162 = arith.constant 5 : i32
      %c0_i32_163 = arith.constant 0 : i32
      %c0_i32_164 = arith.constant 0 : i32
      %295 = tpu.memref_slice %arg4[%294, %c0_i32_164] : memref<16x32xi32, #tpu.memory_space<any>> -> memref<1x32xi32, #tpu.memory_space<any>>
      %296 = tpu.memref_squeeze %295 : memref<1x32xi32, #tpu.memory_space<any>> -> memref<32xi32, #tpu.memory_space<any>>
      %c0_i32_165 = arith.constant 0 : i32
      %297 = tpu.memref_slice %arg6[%c0_i32_161, %c5_i32_162, %c0_i32_165] : memref<2x32x32xi32, #tpu.memory_space<vmem>> -> memref<1x1x32xi32, #tpu.memory_space<vmem>>
      %298 = tpu.memref_squeeze %297 : memref<1x1x32xi32, #tpu.memory_space<vmem>> -> memref<32xi32, #tpu.memory_space<vmem>>
      %299 = tpu.memref_slice %arg7[%c0_i32_163] : memref<2x!tpu.dma_semaphore, #tpu.memory_space<semaphore_mem>> -> memref<1x!tpu.dma_semaphore, #tpu.memory_space<semaphore_mem>>
      %300 = tpu.memref_squeeze %299 : memref<1x!tpu.dma_semaphore, #tpu.memory_space<semaphore_mem>> -> memref<!tpu.dma_semaphore, #tpu.memory_space<semaphore_mem>>
      tpu.enqueue_dma source(%296 : memref<32xi32, #tpu.memory_space<any>>) target(%298 : memref<32xi32, #tpu.memory_space<vmem>>) target_semaphore(%300 : memref<!tpu.dma_semaphore, #tpu.memory_space<semaphore_mem>>)
      %c6_i32_166 = arith.constant 6 : i32
      %301 = arith.addi %246, %c6_i32_166 : i32
      %302 = arith.index_cast %301 : i32 to index
      %303 = memref.load %arg2[%302] : memref<64xi32, #tpu.memory_space<smem>>
      %c0_i32_167 = arith.constant 0 : i32
      %c6_i32_168 = arith.constant 6 : i32
      %c0_i32_169 = arith.constant 0 : i32
      %c0_i32_170 = arith.constant 0 : i32
      %304 = tpu.memref_slice %arg4[%303, %c0_i32_170] : memref<16x32xi32, #tpu.memory_space<any>> -> memref<1x32xi32, #tpu.memory_space<any>>
      %305 = tpu.memref_squeeze %304 : memref<1x32xi32, #tpu.memory_space<any>> -> memref<32xi32, #tpu.memory_space<any>>
      %c0_i32_171 = arith.constant 0 : i32
      %306 = tpu.memref_slice %arg6[%c0_i32_167, %c6_i32_168, %c0_i32_171] : memref<2x32x32xi32, #tpu.memory_space<vmem>> -> memref<1x1x32xi32, #tpu.memory_space<vmem>>
      %307 = tpu.memref_squeeze %306 : memref<1x1x32xi32, #tpu.memory_space<vmem>> -> memref<32xi32, #tpu.memory_space<vmem>>
      %308 = tpu.memref_slice %arg7[%c0_i32_169] : memref<2x!tpu.dma_semaphore, #tpu.memory_space<semaphore_mem>> -> memref<1x!tpu.dma_semaphore, #tpu.memory_space<semaphore_mem>>
      %309 = tpu.memref_squeeze %308 : memref<1x!tpu.dma_semaphore, #tpu.memory_space<semaphore_mem>> -> memref<!tpu.dma_semaphore, #tpu.memory_space<semaphore_mem>>
      tpu.enqueue_dma source(%305 : memref<32xi32, #tpu.memory_space<any>>) target(%307 : memref<32xi32, #tpu.memory_space<vmem>>) target_semaphore(%309 : memref<!tpu.dma_semaphore, #tpu.memory_space<semaphore_mem>>)
      %c7_i32_172 = arith.constant 7 : i32
      %310 = arith.addi %246, %c7_i32_172 : i32
      %311 = arith.index_cast %310 : i32 to index
      %312 = memref.load %arg2[%311] : memref<64xi32, #tpu.memory_space<smem>>
      %c0_i32_173 = arith.constant 0 : i32
      %c7_i32_174 = arith.constant 7 : i32
      %c0_i32_175 = arith.constant 0 : i32
      %c0_i32_176 = arith.constant 0 : i32
      %313 = tpu.memref_slice %arg4[%312, %c0_i32_176] : memref<16x32xi32, #tpu.memory_space<any>> -> memref<1x32xi32, #tpu.memory_space<any>>
      %314 = tpu.memref_squeeze %313 : memref<1x32xi32, #tpu.memory_space<any>> -> memref<32xi32, #tpu.memory_space<any>>
      %c0_i32_177 = arith.constant 0 : i32
      %315 = tpu.memref_slice %arg6[%c0_i32_173, %c7_i32_174, %c0_i32_177] : memref<2x32x32xi32, #tpu.memory_space<vmem>> -> memref<1x1x32xi32, #tpu.memory_space<vmem>>
      %316 = tpu.memref_squeeze %315 : memref<1x1x32xi32, #tpu.memory_space<vmem>> -> memref<32xi32, #tpu.memory_space<vmem>>
      %317 = tpu.memref_slice %arg7[%c0_i32_175] : memref<2x!tpu.dma_semaphore, #tpu.memory_space<semaphore_mem>> -> memref<1x!tpu.dma_semaphore, #tpu.memory_space<semaphore_mem>>
      %318 = tpu.memref_squeeze %317 : memref<1x!tpu.dma_semaphore, #tpu.memory_space<semaphore_mem>> -> memref<!tpu.dma_semaphore, #tpu.memory_space<semaphore_mem>>
      tpu.enqueue_dma source(%314 : memref<32xi32, #tpu.memory_space<any>>) target(%316 : memref<32xi32, #tpu.memory_space<vmem>>) target_semaphore(%318 : memref<!tpu.dma_semaphore, #tpu.memory_space<semaphore_mem>>)
      %c8_i32_178 = arith.constant 8 : i32
      %319 = arith.addi %246, %c8_i32_178 : i32
      %320 = arith.index_cast %319 : i32 to index
      %321 = memref.load %arg2[%320] : memref<64xi32, #tpu.memory_space<smem>>
      %c0_i32_179 = arith.constant 0 : i32
      %c8_i32_180 = arith.constant 8 : i32
      %c0_i32_181 = arith.constant 0 : i32
      %c0_i32_182 = arith.constant 0 : i32
      %322 = tpu.memref_slice %arg4[%321, %c0_i32_182] : memref<16x32xi32, #tpu.memory_space<any>> -> memref<1x32xi32, #tpu.memory_space<any>>
      %323 = tpu.memref_squeeze %322 : memref<1x32xi32, #tpu.memory_space<any>> -> memref<32xi32, #tpu.memory_space<any>>
      %c0_i32_183 = arith.constant 0 : i32
      %324 = tpu.memref_slice %arg6[%c0_i32_179, %c8_i32_180, %c0_i32_183] : memref<2x32x32xi32, #tpu.memory_space<vmem>> -> memref<1x1x32xi32, #tpu.memory_space<vmem>>
      %325 = tpu.memref_squeeze %324 : memref<1x1x32xi32, #tpu.memory_space<vmem>> -> memref<32xi32, #tpu.memory_space<vmem>>
      %326 = tpu.memref_slice %arg7[%c0_i32_181] : memref<2x!tpu.dma_semaphore, #tpu.memory_space<semaphore_mem>> -> memref<1x!tpu.dma_semaphore, #tpu.memory_space<semaphore_mem>>
      %327 = tpu.memref_squeeze %326 : memref<1x!tpu.dma_semaphore, #tpu.memory_space<semaphore_mem>> -> memref<!tpu.dma_semaphore, #tpu.memory_space<semaphore_mem>>
      tpu.enqueue_dma source(%323 : memref<32xi32, #tpu.memory_space<any>>) target(%325 : memref<32xi32, #tpu.memory_space<vmem>>) target_semaphore(%327 : memref<!tpu.dma_semaphore, #tpu.memory_space<semaphore_mem>>)
      %c9_i32_184 = arith.constant 9 : i32
      %328 = arith.addi %246, %c9_i32_184 : i32
      %329 = arith.index_cast %328 : i32 to index
      %330 = memref.load %arg2[%329] : memref<64xi32, #tpu.memory_space<smem>>
      %c0_i32_185 = arith.constant 0 : i32
      %c9_i32_186 = arith.constant 9 : i32
      %c0_i32_187 = arith.constant 0 : i32
      %c0_i32_188 = arith.constant 0 : i32
      %331 = tpu.memref_slice %arg4[%330, %c0_i32_188] : memref<16x32xi32, #tpu.memory_space<any>> -> memref<1x32xi32, #tpu.memory_space<any>>
      %332 = tpu.memref_squeeze %331 : memref<1x32xi32, #tpu.memory_space<any>> -> memref<32xi32, #tpu.memory_space<any>>
      %c0_i32_189 = arith.constant 0 : i32
      %333 = tpu.memref_slice %arg6[%c0_i32_185, %c9_i32_186, %c0_i32_189] : memref<2x32x32xi32, #tpu.memory_space<vmem>> -> memref<1x1x32xi32, #tpu.memory_space<vmem>>
      %334 = tpu.memref_squeeze %333 : memref<1x1x32xi32, #tpu.memory_space<vmem>> -> memref<32xi32, #tpu.memory_space<vmem>>
      %335 = tpu.memref_slice %arg7[%c0_i32_187] : memref<2x!tpu.dma_semaphore, #tpu.memory_space<semaphore_mem>> -> memref<1x!tpu.dma_semaphore, #tpu.memory_space<semaphore_mem>>
      %336 = tpu.memref_squeeze %335 : memref<1x!tpu.dma_semaphore, #tpu.memory_space<semaphore_mem>> -> memref<!tpu.dma_semaphore, #tpu.memory_space<semaphore_mem>>
      tpu.enqueue_dma source(%332 : memref<32xi32, #tpu.memory_space<any>>) target(%334 : memref<32xi32, #tpu.memory_space<vmem>>) target_semaphore(%336 : memref<!tpu.dma_semaphore, #tpu.memory_space<semaphore_mem>>)
      %c10_i32_190 = arith.constant 10 : i32
      %337 = arith.addi %246, %c10_i32_190 : i32
      %338 = arith.index_cast %337 : i32 to index
      %339 = memref.load %arg2[%338] : memref<64xi32, #tpu.memory_space<smem>>
      %c0_i32_191 = arith.constant 0 : i32
      %c10_i32_192 = arith.constant 10 : i32
      %c0_i32_193 = arith.constant 0 : i32
      %c0_i32_194 = arith.constant 0 : i32
      %340 = tpu.memref_slice %arg4[%339, %c0_i32_194] : memref<16x32xi32, #tpu.memory_space<any>> -> memref<1x32xi32, #tpu.memory_space<any>>
      %341 = tpu.memref_squeeze %340 : memref<1x32xi32, #tpu.memory_space<any>> -> memref<32xi32, #tpu.memory_space<any>>
      %c0_i32_195 = arith.constant 0 : i32
      %342 = tpu.memref_slice %arg6[%c0_i32_191, %c10_i32_192, %c0_i32_195] : memref<2x32x32xi32, #tpu.memory_space<vmem>> -> memref<1x1x32xi32, #tpu.memory_space<vmem>>
      %343 = tpu.memref_squeeze %342 : memref<1x1x32xi32, #tpu.memory_space<vmem>> -> memref<32xi32, #tpu.memory_space<vmem>>
      %344 = tpu.memref_slice %arg7[%c0_i32_193] : memref<2x!tpu.dma_semaphore, #tpu.memory_space<semaphore_mem>> -> memref<1x!tpu.dma_semaphore, #tpu.memory_space<semaphore_mem>>
      %345 = tpu.memref_squeeze %344 : memref<1x!tpu.dma_semaphore, #tpu.memory_space<semaphore_mem>> -> memref<!tpu.dma_semaphore, #tpu.memory_space<semaphore_mem>>
      tpu.enqueue_dma source(%341 : memref<32xi32, #tpu.memory_space<any>>) target(%343 : memref<32xi32, #tpu.memory_space<vmem>>) target_semaphore(%345 : memref<!tpu.dma_semaphore, #tpu.memory_space<semaphore_mem>>)
      %c11_i32_196 = arith.constant 11 : i32
      %346 = arith.addi %246, %c11_i32_196 : i32
      %347 = arith.index_cast %346 : i32 to index
      %348 = memref.load %arg2[%347] : memref<64xi32, #tpu.memory_space<smem>>
      %c0_i32_197 = arith.constant 0 : i32
      %c11_i32_198 = arith.constant 11 : i32
      %c0_i32_199 = arith.constant 0 : i32
      %c0_i32_200 = arith.constant 0 : i32
      %349 = tpu.memref_slice %arg4[%348, %c0_i32_200] : memref<16x32xi32, #tpu.memory_space<any>> -> memref<1x32xi32, #tpu.memory_space<any>>
      %350 = tpu.memref_squeeze %349 : memref<1x32xi32, #tpu.memory_space<any>> -> memref<32xi32, #tpu.memory_space<any>>
      %c0_i32_201 = arith.constant 0 : i32
      %351 = tpu.memref_slice %arg6[%c0_i32_197, %c11_i32_198, %c0_i32_201] : memref<2x32x32xi32, #tpu.memory_space<vmem>> -> memref<1x1x32xi32, #tpu.memory_space<vmem>>
      %352 = tpu.memref_squeeze %351 : memref<1x1x32xi32, #tpu.memory_space<vmem>> -> memref<32xi32, #tpu.memory_space<vmem>>
      %353 = tpu.memref_slice %arg7[%c0_i32_199] : memref<2x!tpu.dma_semaphore, #tpu.memory_space<semaphore_mem>> -> memref<1x!tpu.dma_semaphore, #tpu.memory_space<semaphore_mem>>
      %354 = tpu.memref_squeeze %353 : memref<1x!tpu.dma_semaphore, #tpu.memory_space<semaphore_mem>> -> memref<!tpu.dma_semaphore, #tpu.memory_space<semaphore_mem>>
      tpu.enqueue_dma source(%350 : memref<32xi32, #tpu.memory_space<any>>) target(%352 : memref<32xi32, #tpu.memory_space<vmem>>) target_semaphore(%354 : memref<!tpu.dma_semaphore, #tpu.memory_space<semaphore_mem>>)
      %c12_i32_202 = arith.constant 12 : i32
      %355 = arith.addi %246, %c12_i32_202 : i32
      %356 = arith.index_cast %355 : i32 to index
      %357 = memref.load %arg2[%356] : memref<64xi32, #tpu.memory_space<smem>>
      %c0_i32_203 = arith.constant 0 : i32
      %c12_i32_204 = arith.constant 12 : i32
      %c0_i32_205 = arith.constant 0 : i32
      %c0_i32_206 = arith.constant 0 : i32
      %358 = tpu.memref_slice %arg4[%357, %c0_i32_206] : memref<16x32xi32, #tpu.memory_space<any>> -> memref<1x32xi32, #tpu.memory_space<any>>
      %359 = tpu.memref_squeeze %358 : memref<1x32xi32, #tpu.memory_space<any>> -> memref<32xi32, #tpu.memory_space<any>>
      %c0_i32_207 = arith.constant 0 : i32
      %360 = tpu.memref_slice %arg6[%c0_i32_203, %c12_i32_204, %c0_i32_207] : memref<2x32x32xi32, #tpu.memory_space<vmem>> -> memref<1x1x32xi32, #tpu.memory_space<vmem>>
      %361 = tpu.memref_squeeze %360 : memref<1x1x32xi32, #tpu.memory_space<vmem>> -> memref<32xi32, #tpu.memory_space<vmem>>
      %362 = tpu.memref_slice %arg7[%c0_i32_205] : memref<2x!tpu.dma_semaphore, #tpu.memory_space<semaphore_mem>> -> memref<1x!tpu.dma_semaphore, #tpu.memory_space<semaphore_mem>>
      %363 = tpu.memref_squeeze %362 : memref<1x!tpu.dma_semaphore, #tpu.memory_space<semaphore_mem>> -> memref<!tpu.dma_semaphore, #tpu.memory_space<semaphore_mem>>
      tpu.enqueue_dma source(%359 : memref<32xi32, #tpu.memory_space<any>>) target(%361 : memref<32xi32, #tpu.memory_space<vmem>>) target_semaphore(%363 : memref<!tpu.dma_semaphore, #tpu.memory_space<semaphore_mem>>)
      %c13_i32_208 = arith.constant 13 : i32
      %364 = arith.addi %246, %c13_i32_208 : i32
      %365 = arith.index_cast %364 : i32 to index
      %366 = memref.load %arg2[%365] : memref<64xi32, #tpu.memory_space<smem>>
      %c0_i32_209 = arith.constant 0 : i32
      %c13_i32_210 = arith.constant 13 : i32
      %c0_i32_211 = arith.constant 0 : i32
      %c0_i32_212 = arith.constant 0 : i32
      %367 = tpu.memref_slice %arg4[%366, %c0_i32_212] : memref<16x32xi32, #tpu.memory_space<any>> -> memref<1x32xi32, #tpu.memory_space<any>>
      %368 = tpu.memref_squeeze %367 : memref<1x32xi32, #tpu.memory_space<any>> -> memref<32xi32, #tpu.memory_space<any>>
      %c0_i32_213 = arith.constant 0 : i32
      %369 = tpu.memref_slice %arg6[%c0_i32_209, %c13_i32_210, %c0_i32_213] : memref<2x32x32xi32, #tpu.memory_space<vmem>> -> memref<1x1x32xi32, #tpu.memory_space<vmem>>
      %370 = tpu.memref_squeeze %369 : memref<1x1x32xi32, #tpu.memory_space<vmem>> -> memref<32xi32, #tpu.memory_space<vmem>>
      %371 = tpu.memref_slice %arg7[%c0_i32_211] : memref<2x!tpu.dma_semaphore, #tpu.memory_space<semaphore_mem>> -> memref<1x!tpu.dma_semaphore, #tpu.memory_space<semaphore_mem>>
      %372 = tpu.memref_squeeze %371 : memref<1x!tpu.dma_semaphore, #tpu.memory_space<semaphore_mem>> -> memref<!tpu.dma_semaphore, #tpu.memory_space<semaphore_mem>>
      tpu.enqueue_dma source(%368 : memref<32xi32, #tpu.memory_space<any>>) target(%370 : memref<32xi32, #tpu.memory_space<vmem>>) target_semaphore(%372 : memref<!tpu.dma_semaphore, #tpu.memory_space<semaphore_mem>>)
      %c14_i32_214 = arith.constant 14 : i32
      %373 = arith.addi %246, %c14_i32_214 : i32
      %374 = arith.index_cast %373 : i32 to index
      %375 = memref.load %arg2[%374] : memref<64xi32, #tpu.memory_space<smem>>
      %c0_i32_215 = arith.constant 0 : i32
      %c14_i32_216 = arith.constant 14 : i32
      %c0_i32_217 = arith.constant 0 : i32
      %c0_i32_218 = arith.constant 0 : i32
      %376 = tpu.memref_slice %arg4[%375, %c0_i32_218] : memref<16x32xi32, #tpu.memory_space<any>> -> memref<1x32xi32, #tpu.memory_space<any>>
      %377 = tpu.memref_squeeze %376 : memref<1x32xi32, #tpu.memory_space<any>> -> memref<32xi32, #tpu.memory_space<any>>
      %c0_i32_219 = arith.constant 0 : i32
      %378 = tpu.memref_slice %arg6[%c0_i32_215, %c14_i32_216, %c0_i32_219] : memref<2x32x32xi32, #tpu.memory_space<vmem>> -> memref<1x1x32xi32, #tpu.memory_space<vmem>>
      %379 = tpu.memref_squeeze %378 : memref<1x1x32xi32, #tpu.memory_space<vmem>> -> memref<32xi32, #tpu.memory_space<vmem>>
      %380 = tpu.memref_slice %arg7[%c0_i32_217] : memref<2x!tpu.dma_semaphore, #tpu.memory_space<semaphore_mem>> -> memref<1x!tpu.dma_semaphore, #tpu.memory_space<semaphore_mem>>
      %381 = tpu.memref_squeeze %380 : memref<1x!tpu.dma_semaphore, #tpu.memory_space<semaphore_mem>> -> memref<!tpu.dma_semaphore, #tpu.memory_space<semaphore_mem>>
      tpu.enqueue_dma source(%377 : memref<32xi32, #tpu.memory_space<any>>) target(%379 : memref<32xi32, #tpu.memory_space<vmem>>) target_semaphore(%381 : memref<!tpu.dma_semaphore, #tpu.memory_space<semaphore_mem>>)
      %c15_i32_220 = arith.constant 15 : i32
      %382 = arith.addi %246, %c15_i32_220 : i32
      %383 = arith.index_cast %382 : i32 to index
      %384 = memref.load %arg2[%383] : memref<64xi32, #tpu.memory_space<smem>>
      %c0_i32_221 = arith.constant 0 : i32
      %c15_i32_222 = arith.constant 15 : i32
      %c0_i32_223 = arith.constant 0 : i32
      %c0_i32_224 = arith.constant 0 : i32
      %385 = tpu.memref_slice %arg4[%384, %c0_i32_224] : memref<16x32xi32, #tpu.memory_space<any>> -> memref<1x32xi32, #tpu.memory_space<any>>
      %386 = tpu.memref_squeeze %385 : memref<1x32xi32, #tpu.memory_space<any>> -> memref<32xi32, #tpu.memory_space<any>>
      %c0_i32_225 = arith.constant 0 : i32
      %387 = tpu.memref_slice %arg6[%c0_i32_221, %c15_i32_222, %c0_i32_225] : memref<2x32x32xi32, #tpu.memory_space<vmem>> -> memref<1x1x32xi32, #tpu.memory_space<vmem>>
      %388 = tpu.memref_squeeze %387 : memref<1x1x32xi32, #tpu.memory_space<vmem>> -> memref<32xi32, #tpu.memory_space<vmem>>
      %389 = tpu.memref_slice %arg7[%c0_i32_223] : memref<2x!tpu.dma_semaphore, #tpu.memory_space<semaphore_mem>> -> memref<1x!tpu.dma_semaphore, #tpu.memory_space<semaphore_mem>>
      %390 = tpu.memref_squeeze %389 : memref<1x!tpu.dma_semaphore, #tpu.memory_space<semaphore_mem>> -> memref<!tpu.dma_semaphore, #tpu.memory_space<semaphore_mem>>
      tpu.enqueue_dma source(%386 : memref<32xi32, #tpu.memory_space<any>>) target(%388 : memref<32xi32, #tpu.memory_space<vmem>>) target_semaphore(%390 : memref<!tpu.dma_semaphore, #tpu.memory_space<semaphore_mem>>)
      %c16_i32_226 = arith.constant 16 : i32
      %391 = arith.addi %246, %c16_i32_226 : i32
      %392 = arith.index_cast %391 : i32 to index
      %393 = memref.load %arg2[%392] : memref<64xi32, #tpu.memory_space<smem>>
      %c0_i32_227 = arith.constant 0 : i32
      %c16_i32_228 = arith.constant 16 : i32
      %c0_i32_229 = arith.constant 0 : i32
      %c0_i32_230 = arith.constant 0 : i32
      %394 = tpu.memref_slice %arg4[%393, %c0_i32_230] : memref<16x32xi32, #tpu.memory_space<any>> -> memref<1x32xi32, #tpu.memory_space<any>>
      %395 = tpu.memref_squeeze %394 : memref<1x32xi32, #tpu.memory_space<any>> -> memref<32xi32, #tpu.memory_space<any>>
      %c0_i32_231 = arith.constant 0 : i32
      %396 = tpu.memref_slice %arg6[%c0_i32_227, %c16_i32_228, %c0_i32_231] : memref<2x32x32xi32, #tpu.memory_space<vmem>> -> memref<1x1x32xi32, #tpu.memory_space<vmem>>
      %397 = tpu.memref_squeeze %396 : memref<1x1x32xi32, #tpu.memory_space<vmem>> -> memref<32xi32, #tpu.memory_space<vmem>>
      %398 = tpu.memref_slice %arg7[%c0_i32_229] : memref<2x!tpu.dma_semaphore, #tpu.memory_space<semaphore_mem>> -> memref<1x!tpu.dma_semaphore, #tpu.memory_space<semaphore_mem>>
      %399 = tpu.memref_squeeze %398 : memref<1x!tpu.dma_semaphore, #tpu.memory_space<semaphore_mem>> -> memref<!tpu.dma_semaphore, #tpu.memory_space<semaphore_mem>>
      tpu.enqueue_dma source(%395 : memref<32xi32, #tpu.memory_space<any>>) target(%397 : memref<32xi32, #tpu.memory_space<vmem>>) target_semaphore(%399 : memref<!tpu.dma_semaphore, #tpu.memory_space<semaphore_mem>>)
      %c17_i32_232 = arith.constant 17 : i32
      %400 = arith.addi %246, %c17_i32_232 : i32
      %401 = arith.index_cast %400 : i32 to index
      %402 = memref.load %arg2[%401] : memref<64xi32, #tpu.memory_space<smem>>
      %c0_i32_233 = arith.constant 0 : i32
      %c17_i32_234 = arith.constant 17 : i32
      %c0_i32_235 = arith.constant 0 : i32
      %c0_i32_236 = arith.constant 0 : i32
      %403 = tpu.memref_slice %arg4[%402, %c0_i32_236] : memref<16x32xi32, #tpu.memory_space<any>> -> memref<1x32xi32, #tpu.memory_space<any>>
      %404 = tpu.memref_squeeze %403 : memref<1x32xi32, #tpu.memory_space<any>> -> memref<32xi32, #tpu.memory_space<any>>
      %c0_i32_237 = arith.constant 0 : i32
      %405 = tpu.memref_slice %arg6[%c0_i32_233, %c17_i32_234, %c0_i32_237] : memref<2x32x32xi32, #tpu.memory_space<vmem>> -> memref<1x1x32xi32, #tpu.memory_space<vmem>>
      %406 = tpu.memref_squeeze %405 : memref<1x1x32xi32, #tpu.memory_space<vmem>> -> memref<32xi32, #tpu.memory_space<vmem>>
      %407 = tpu.memref_slice %arg7[%c0_i32_235] : memref<2x!tpu.dma_semaphore, #tpu.memory_space<semaphore_mem>> -> memref<1x!tpu.dma_semaphore, #tpu.memory_space<semaphore_mem>>
      %408 = tpu.memref_squeeze %407 : memref<1x!tpu.dma_semaphore, #tpu.memory_space<semaphore_mem>> -> memref<!tpu.dma_semaphore, #tpu.memory_space<semaphore_mem>>
      tpu.enqueue_dma source(%404 : memref<32xi32, #tpu.memory_space<any>>) target(%406 : memref<32xi32, #tpu.memory_space<vmem>>) target_semaphore(%408 : memref<!tpu.dma_semaphore, #tpu.memory_space<semaphore_mem>>)
      %c18_i32_238 = arith.constant 18 : i32
      %409 = arith.addi %246, %c18_i32_238 : i32
      %410 = arith.index_cast %409 : i32 to index
      %411 = memref.load %arg2[%410] : memref<64xi32, #tpu.memory_space<smem>>
      %c0_i32_239 = arith.constant 0 : i32
      %c18_i32_240 = arith.constant 18 : i32
      %c0_i32_241 = arith.constant 0 : i32
      %c0_i32_242 = arith.constant 0 : i32
      %412 = tpu.memref_slice %arg4[%411, %c0_i32_242] : memref<16x32xi32, #tpu.memory_space<any>> -> memref<1x32xi32, #tpu.memory_space<any>>
      %413 = tpu.memref_squeeze %412 : memref<1x32xi32, #tpu.memory_space<any>> -> memref<32xi32, #tpu.memory_space<any>>
      %c0_i32_243 = arith.constant 0 : i32
      %414 = tpu.memref_slice %arg6[%c0_i32_239, %c18_i32_240, %c0_i32_243] : memref<2x32x32xi32, #tpu.memory_space<vmem>> -> memref<1x1x32xi32, #tpu.memory_space<vmem>>
      %415 = tpu.memref_squeeze %414 : memref<1x1x32xi32, #tpu.memory_space<vmem>> -> memref<32xi32, #tpu.memory_space<vmem>>
      %416 = tpu.memref_slice %arg7[%c0_i32_241] : memref<2x!tpu.dma_semaphore, #tpu.memory_space<semaphore_mem>> -> memref<1x!tpu.dma_semaphore, #tpu.memory_space<semaphore_mem>>
      %417 = tpu.memref_squeeze %416 : memref<1x!tpu.dma_semaphore, #tpu.memory_space<semaphore_mem>> -> memref<!tpu.dma_semaphore, #tpu.memory_space<semaphore_mem>>
      tpu.enqueue_dma source(%413 : memref<32xi32, #tpu.memory_space<any>>) target(%415 : memref<32xi32, #tpu.memory_space<vmem>>) target_semaphore(%417 : memref<!tpu.dma_semaphore, #tpu.memory_space<semaphore_mem>>)
      %c19_i32_244 = arith.constant 19 : i32
      %418 = arith.addi %246, %c19_i32_244 : i32
      %419 = arith.index_cast %418 : i32 to index
      %420 = memref.load %arg2[%419] : memref<64xi32, #tpu.memory_space<smem>>
      %c0_i32_245 = arith.constant 0 : i32
      %c19_i32_246 = arith.constant 19 : i32
      %c0_i32_247 = arith.constant 0 : i32
      %c0_i32_248 = arith.constant 0 : i32
      %421 = tpu.memref_slice %arg4[%420, %c0_i32_248] : memref<16x32xi32, #tpu.memory_space<any>> -> memref<1x32xi32, #tpu.memory_space<any>>
      %422 = tpu.memref_squeeze %421 : memref<1x32xi32, #tpu.memory_space<any>> -> memref<32xi32, #tpu.memory_space<any>>
      %c0_i32_249 = arith.constant 0 : i32
      %423 = tpu.memref_slice %arg6[%c0_i32_245, %c19_i32_246, %c0_i32_249] : memref<2x32x32xi32, #tpu.memory_space<vmem>> -> memref<1x1x32xi32, #tpu.memory_space<vmem>>
      %424 = tpu.memref_squeeze %423 : memref<1x1x32xi32, #tpu.memory_space<vmem>> -> memref<32xi32, #tpu.memory_space<vmem>>
      %425 = tpu.memref_slice %arg7[%c0_i32_247] : memref<2x!tpu.dma_semaphore, #tpu.memory_space<semaphore_mem>> -> memref<1x!tpu.dma_semaphore, #tpu.memory_space<semaphore_mem>>
      %426 = tpu.memref_squeeze %425 : memref<1x!tpu.dma_semaphore, #tpu.memory_space<semaphore_mem>> -> memref<!tpu.dma_semaphore, #tpu.memory_space<semaphore_mem>>
      tpu.enqueue_dma source(%422 : memref<32xi32, #tpu.memory_space<any>>) target(%424 : memref<32xi32, #tpu.memory_space<vmem>>) target_semaphore(%426 : memref<!tpu.dma_semaphore, #tpu.memory_space<semaphore_mem>>)
      %c20_i32_250 = arith.constant 20 : i32
      %427 = arith.addi %246, %c20_i32_250 : i32
      %428 = arith.index_cast %427 : i32 to index
      %429 = memref.load %arg2[%428] : memref<64xi32, #tpu.memory_space<smem>>
      %c0_i32_251 = arith.constant 0 : i32
      %c20_i32_252 = arith.constant 20 : i32
      %c0_i32_253 = arith.constant 0 : i32
      %c0_i32_254 = arith.constant 0 : i32
      %430 = tpu.memref_slice %arg4[%429, %c0_i32_254] : memref<16x32xi32, #tpu.memory_space<any>> -> memref<1x32xi32, #tpu.memory_space<any>>
      %431 = tpu.memref_squeeze %430 : memref<1x32xi32, #tpu.memory_space<any>> -> memref<32xi32, #tpu.memory_space<any>>
      %c0_i32_255 = arith.constant 0 : i32
      %432 = tpu.memref_slice %arg6[%c0_i32_251, %c20_i32_252, %c0_i32_255] : memref<2x32x32xi32, #tpu.memory_space<vmem>> -> memref<1x1x32xi32, #tpu.memory_space<vmem>>
      %433 = tpu.memref_squeeze %432 : memref<1x1x32xi32, #tpu.memory_space<vmem>> -> memref<32xi32, #tpu.memory_space<vmem>>
      %434 = tpu.memref_slice %arg7[%c0_i32_253] : memref<2x!tpu.dma_semaphore, #tpu.memory_space<semaphore_mem>> -> memref<1x!tpu.dma_semaphore, #tpu.memory_space<semaphore_mem>>
      %435 = tpu.memref_squeeze %434 : memref<1x!tpu.dma_semaphore, #tpu.memory_space<semaphore_mem>> -> memref<!tpu.dma_semaphore, #tpu.memory_space<semaphore_mem>>
      tpu.enqueue_dma source(%431 : memref<32xi32, #tpu.memory_space<any>>) target(%433 : memref<32xi32, #tpu.memory_space<vmem>>) target_semaphore(%435 : memref<!tpu.dma_semaphore, #tpu.memory_space<semaphore_mem>>)
      %c21_i32_256 = arith.constant 21 : i32
      %436 = arith.addi %246, %c21_i32_256 : i32
      %437 = arith.index_cast %436 : i32 to index
      %438 = memref.load %arg2[%437] : memref<64xi32, #tpu.memory_space<smem>>
      %c0_i32_257 = arith.constant 0 : i32
      %c21_i32_258 = arith.constant 21 : i32
      %c0_i32_259 = arith.constant 0 : i32
      %c0_i32_260 = arith.constant 0 : i32
      %439 = tpu.memref_slice %arg4[%438, %c0_i32_260] : memref<16x32xi32, #tpu.memory_space<any>> -> memref<1x32xi32, #tpu.memory_space<any>>
      %440 = tpu.memref_squeeze %439 : memref<1x32xi32, #tpu.memory_space<any>> -> memref<32xi32, #tpu.memory_space<any>>
      %c0_i32_261 = arith.constant 0 : i32
      %441 = tpu.memref_slice %arg6[%c0_i32_257, %c21_i32_258, %c0_i32_261] : memref<2x32x32xi32, #tpu.memory_space<vmem>> -> memref<1x1x32xi32, #tpu.memory_space<vmem>>
      %442 = tpu.memref_squeeze %441 : memref<1x1x32xi32, #tpu.memory_space<vmem>> -> memref<32xi32, #tpu.memory_space<vmem>>
      %443 = tpu.memref_slice %arg7[%c0_i32_259] : memref<2x!tpu.dma_semaphore, #tpu.memory_space<semaphore_mem>> -> memref<1x!tpu.dma_semaphore, #tpu.memory_space<semaphore_mem>>
      %444 = tpu.memref_squeeze %443 : memref<1x!tpu.dma_semaphore, #tpu.memory_space<semaphore_mem>> -> memref<!tpu.dma_semaphore, #tpu.memory_space<semaphore_mem>>
      tpu.enqueue_dma source(%440 : memref<32xi32, #tpu.memory_space<any>>) target(%442 : memref<32xi32, #tpu.memory_space<vmem>>) target_semaphore(%444 : memref<!tpu.dma_semaphore, #tpu.memory_space<semaphore_mem>>)
      %c22_i32_262 = arith.constant 22 : i32
      %445 = arith.addi %246, %c22_i32_262 : i32
      %446 = arith.index_cast %445 : i32 to index
      %447 = memref.load %arg2[%446] : memref<64xi32, #tpu.memory_space<smem>>
      %c0_i32_263 = arith.constant 0 : i32
      %c22_i32_264 = arith.constant 22 : i32
      %c0_i32_265 = arith.constant 0 : i32
      %c0_i32_266 = arith.constant 0 : i32
      %448 = tpu.memref_slice %arg4[%447, %c0_i32_266] : memref<16x32xi32, #tpu.memory_space<any>> -> memref<1x32xi32, #tpu.memory_space<any>>
      %449 = tpu.memref_squeeze %448 : memref<1x32xi32, #tpu.memory_space<any>> -> memref<32xi32, #tpu.memory_space<any>>
      %c0_i32_267 = arith.constant 0 : i32
      %450 = tpu.memref_slice %arg6[%c0_i32_263, %c22_i32_264, %c0_i32_267] : memref<2x32x32xi32, #tpu.memory_space<vmem>> -> memref<1x1x32xi32, #tpu.memory_space<vmem>>
      %451 = tpu.memref_squeeze %450 : memref<1x1x32xi32, #tpu.memory_space<vmem>> -> memref<32xi32, #tpu.memory_space<vmem>>
      %452 = tpu.memref_slice %arg7[%c0_i32_265] : memref<2x!tpu.dma_semaphore, #tpu.memory_space<semaphore_mem>> -> memref<1x!tpu.dma_semaphore, #tpu.memory_space<semaphore_mem>>
      %453 = tpu.memref_squeeze %452 : memref<1x!tpu.dma_semaphore, #tpu.memory_space<semaphore_mem>> -> memref<!tpu.dma_semaphore, #tpu.memory_space<semaphore_mem>>
      tpu.enqueue_dma source(%449 : memref<32xi32, #tpu.memory_space<any>>) target(%451 : memref<32xi32, #tpu.memory_space<vmem>>) target_semaphore(%453 : memref<!tpu.dma_semaphore, #tpu.memory_space<semaphore_mem>>)
      %c23_i32_268 = arith.constant 23 : i32
      %454 = arith.addi %246, %c23_i32_268 : i32
      %455 = arith.index_cast %454 : i32 to index
      %456 = memref.load %arg2[%455] : memref<64xi32, #tpu.memory_space<smem>>
      %c0_i32_269 = arith.constant 0 : i32
      %c23_i32_270 = arith.constant 23 : i32
      %c0_i32_271 = arith.constant 0 : i32
      %c0_i32_272 = arith.constant 0 : i32
      %457 = tpu.memref_slice %arg4[%456, %c0_i32_272] : memref<16x32xi32, #tpu.memory_space<any>> -> memref<1x32xi32, #tpu.memory_space<any>>
      %458 = tpu.memref_squeeze %457 : memref<1x32xi32, #tpu.memory_space<any>> -> memref<32xi32, #tpu.memory_space<any>>
      %c0_i32_273 = arith.constant 0 : i32
      %459 = tpu.memref_slice %arg6[%c0_i32_269, %c23_i32_270, %c0_i32_273] : memref<2x32x32xi32, #tpu.memory_space<vmem>> -> memref<1x1x32xi32, #tpu.memory_space<vmem>>
      %460 = tpu.memref_squeeze %459 : memref<1x1x32xi32, #tpu.memory_space<vmem>> -> memref<32xi32, #tpu.memory_space<vmem>>
      %461 = tpu.memref_slice %arg7[%c0_i32_271] : memref<2x!tpu.dma_semaphore, #tpu.memory_space<semaphore_mem>> -> memref<1x!tpu.dma_semaphore, #tpu.memory_space<semaphore_mem>>
      %462 = tpu.memref_squeeze %461 : memref<1x!tpu.dma_semaphore, #tpu.memory_space<semaphore_mem>> -> memref<!tpu.dma_semaphore, #tpu.memory_space<semaphore_mem>>
      tpu.enqueue_dma source(%458 : memref<32xi32, #tpu.memory_space<any>>) target(%460 : memref<32xi32, #tpu.memory_space<vmem>>) target_semaphore(%462 : memref<!tpu.dma_semaphore, #tpu.memory_space<semaphore_mem>>)
      %c24_i32_274 = arith.constant 24 : i32
      %463 = arith.addi %246, %c24_i32_274 : i32
      %464 = arith.index_cast %463 : i32 to index
      %465 = memref.load %arg2[%464] : memref<64xi32, #tpu.memory_space<smem>>
      %c0_i32_275 = arith.constant 0 : i32
      %c24_i32_276 = arith.constant 24 : i32
      %c0_i32_277 = arith.constant 0 : i32
      %c0_i32_278 = arith.constant 0 : i32
      %466 = tpu.memref_slice %arg4[%465, %c0_i32_278] : memref<16x32xi32, #tpu.memory_space<any>> -> memref<1x32xi32, #tpu.memory_space<any>>
      %467 = tpu.memref_squeeze %466 : memref<1x32xi32, #tpu.memory_space<any>> -> memref<32xi32, #tpu.memory_space<any>>
      %c0_i32_279 = arith.constant 0 : i32
      %468 = tpu.memref_slice %arg6[%c0_i32_275, %c24_i32_276, %c0_i32_279] : memref<2x32x32xi32, #tpu.memory_space<vmem>> -> memref<1x1x32xi32, #tpu.memory_space<vmem>>
      %469 = tpu.memref_squeeze %468 : memref<1x1x32xi32, #tpu.memory_space<vmem>> -> memref<32xi32, #tpu.memory_space<vmem>>
      %470 = tpu.memref_slice %arg7[%c0_i32_277] : memref<2x!tpu.dma_semaphore, #tpu.memory_space<semaphore_mem>> -> memref<1x!tpu.dma_semaphore, #tpu.memory_space<semaphore_mem>>
      %471 = tpu.memref_squeeze %470 : memref<1x!tpu.dma_semaphore, #tpu.memory_space<semaphore_mem>> -> memref<!tpu.dma_semaphore, #tpu.memory_space<semaphore_mem>>
      tpu.enqueue_dma source(%467 : memref<32xi32, #tpu.memory_space<any>>) target(%469 : memref<32xi32, #tpu.memory_space<vmem>>) target_semaphore(%471 : memref<!tpu.dma_semaphore, #tpu.memory_space<semaphore_mem>>)
      %c25_i32_280 = arith.constant 25 : i32
      %472 = arith.addi %246, %c25_i32_280 : i32
      %473 = arith.index_cast %472 : i32 to index
      %474 = memref.load %arg2[%473] : memref<64xi32, #tpu.memory_space<smem>>
      %c0_i32_281 = arith.constant 0 : i32
      %c25_i32_282 = arith.constant 25 : i32
      %c0_i32_283 = arith.constant 0 : i32
      %c0_i32_284 = arith.constant 0 : i32
      %475 = tpu.memref_slice %arg4[%474, %c0_i32_284] : memref<16x32xi32, #tpu.memory_space<any>> -> memref<1x32xi32, #tpu.memory_space<any>>
      %476 = tpu.memref_squeeze %475 : memref<1x32xi32, #tpu.memory_space<any>> -> memref<32xi32, #tpu.memory_space<any>>
      %c0_i32_285 = arith.constant 0 : i32
      %477 = tpu.memref_slice %arg6[%c0_i32_281, %c25_i32_282, %c0_i32_285] : memref<2x32x32xi32, #tpu.memory_space<vmem>> -> memref<1x1x32xi32, #tpu.memory_space<vmem>>
      %478 = tpu.memref_squeeze %477 : memref<1x1x32xi32, #tpu.memory_space<vmem>> -> memref<32xi32, #tpu.memory_space<vmem>>
      %479 = tpu.memref_slice %arg7[%c0_i32_283] : memref<2x!tpu.dma_semaphore, #tpu.memory_space<semaphore_mem>> -> memref<1x!tpu.dma_semaphore, #tpu.memory_space<semaphore_mem>>
      %480 = tpu.memref_squeeze %479 : memref<1x!tpu.dma_semaphore, #tpu.memory_space<semaphore_mem>> -> memref<!tpu.dma_semaphore, #tpu.memory_space<semaphore_mem>>
      tpu.enqueue_dma source(%476 : memref<32xi32, #tpu.memory_space<any>>) target(%478 : memref<32xi32, #tpu.memory_space<vmem>>) target_semaphore(%480 : memref<!tpu.dma_semaphore, #tpu.memory_space<semaphore_mem>>)
      %c26_i32_286 = arith.constant 26 : i32
      %481 = arith.addi %246, %c26_i32_286 : i32
      %482 = arith.index_cast %481 : i32 to index
      %483 = memref.load %arg2[%482] : memref<64xi32, #tpu.memory_space<smem>>
      %c0_i32_287 = arith.constant 0 : i32
      %c26_i32_288 = arith.constant 26 : i32
      %c0_i32_289 = arith.constant 0 : i32
      %c0_i32_290 = arith.constant 0 : i32
      %484 = tpu.memref_slice %arg4[%483, %c0_i32_290] : memref<16x32xi32, #tpu.memory_space<any>> -> memref<1x32xi32, #tpu.memory_space<any>>
      %485 = tpu.memref_squeeze %484 : memref<1x32xi32, #tpu.memory_space<any>> -> memref<32xi32, #tpu.memory_space<any>>
      %c0_i32_291 = arith.constant 0 : i32
      %486 = tpu.memref_slice %arg6[%c0_i32_287, %c26_i32_288, %c0_i32_291] : memref<2x32x32xi32, #tpu.memory_space<vmem>> -> memref<1x1x32xi32, #tpu.memory_space<vmem>>
      %487 = tpu.memref_squeeze %486 : memref<1x1x32xi32, #tpu.memory_space<vmem>> -> memref<32xi32, #tpu.memory_space<vmem>>
      %488 = tpu.memref_slice %arg7[%c0_i32_289] : memref<2x!tpu.dma_semaphore, #tpu.memory_space<semaphore_mem>> -> memref<1x!tpu.dma_semaphore, #tpu.memory_space<semaphore_mem>>
      %489 = tpu.memref_squeeze %488 : memref<1x!tpu.dma_semaphore, #tpu.memory_space<semaphore_mem>> -> memref<!tpu.dma_semaphore, #tpu.memory_space<semaphore_mem>>
      tpu.enqueue_dma source(%485 : memref<32xi32, #tpu.memory_space<any>>) target(%487 : memref<32xi32, #tpu.memory_space<vmem>>) target_semaphore(%489 : memref<!tpu.dma_semaphore, #tpu.memory_space<semaphore_mem>>)
      %c27_i32_292 = arith.constant 27 : i32
      %490 = arith.addi %246, %c27_i32_292 : i32
      %491 = arith.index_cast %490 : i32 to index
      %492 = memref.load %arg2[%491] : memref<64xi32, #tpu.memory_space<smem>>
      %c0_i32_293 = arith.constant 0 : i32
      %c27_i32_294 = arith.constant 27 : i32
      %c0_i32_295 = arith.constant 0 : i32
      %c0_i32_296 = arith.constant 0 : i32
      %493 = tpu.memref_slice %arg4[%492, %c0_i32_296] : memref<16x32xi32, #tpu.memory_space<any>> -> memref<1x32xi32, #tpu.memory_space<any>>
      %494 = tpu.memref_squeeze %493 : memref<1x32xi32, #tpu.memory_space<any>> -> memref<32xi32, #tpu.memory_space<any>>
      %c0_i32_297 = arith.constant 0 : i32
      %495 = tpu.memref_slice %arg6[%c0_i32_293, %c27_i32_294, %c0_i32_297] : memref<2x32x32xi32, #tpu.memory_space<vmem>> -> memref<1x1x32xi32, #tpu.memory_space<vmem>>
      %496 = tpu.memref_squeeze %495 : memref<1x1x32xi32, #tpu.memory_space<vmem>> -> memref<32xi32, #tpu.memory_space<vmem>>
      %497 = tpu.memref_slice %arg7[%c0_i32_295] : memref<2x!tpu.dma_semaphore, #tpu.memory_space<semaphore_mem>> -> memref<1x!tpu.dma_semaphore, #tpu.memory_space<semaphore_mem>>
      %498 = tpu.memref_squeeze %497 : memref<1x!tpu.dma_semaphore, #tpu.memory_space<semaphore_mem>> -> memref<!tpu.dma_semaphore, #tpu.memory_space<semaphore_mem>>
      tpu.enqueue_dma source(%494 : memref<32xi32, #tpu.memory_space<any>>) target(%496 : memref<32xi32, #tpu.memory_space<vmem>>) target_semaphore(%498 : memref<!tpu.dma_semaphore, #tpu.memory_space<semaphore_mem>>)
      %c28_i32_298 = arith.constant 28 : i32
      %499 = arith.addi %246, %c28_i32_298 : i32
      %500 = arith.index_cast %499 : i32 to index
      %501 = memref.load %arg2[%500] : memref<64xi32, #tpu.memory_space<smem>>
      %c0_i32_299 = arith.constant 0 : i32
      %c28_i32_300 = arith.constant 28 : i32
      %c0_i32_301 = arith.constant 0 : i32
      %c0_i32_302 = arith.constant 0 : i32
      %502 = tpu.memref_slice %arg4[%501, %c0_i32_302] : memref<16x32xi32, #tpu.memory_space<any>> -> memref<1x32xi32, #tpu.memory_space<any>>
      %503 = tpu.memref_squeeze %502 : memref<1x32xi32, #tpu.memory_space<any>> -> memref<32xi32, #tpu.memory_space<any>>
      %c0_i32_303 = arith.constant 0 : i32
      %504 = tpu.memref_slice %arg6[%c0_i32_299, %c28_i32_300, %c0_i32_303] : memref<2x32x32xi32, #tpu.memory_space<vmem>> -> memref<1x1x32xi32, #tpu.memory_space<vmem>>
      %505 = tpu.memref_squeeze %504 : memref<1x1x32xi32, #tpu.memory_space<vmem>> -> memref<32xi32, #tpu.memory_space<vmem>>
      %506 = tpu.memref_slice %arg7[%c0_i32_301] : memref<2x!tpu.dma_semaphore, #tpu.memory_space<semaphore_mem>> -> memref<1x!tpu.dma_semaphore, #tpu.memory_space<semaphore_mem>>
      %507 = tpu.memref_squeeze %506 : memref<1x!tpu.dma_semaphore, #tpu.memory_space<semaphore_mem>> -> memref<!tpu.dma_semaphore, #tpu.memory_space<semaphore_mem>>
      tpu.enqueue_dma source(%503 : memref<32xi32, #tpu.memory_space<any>>) target(%505 : memref<32xi32, #tpu.memory_space<vmem>>) target_semaphore(%507 : memref<!tpu.dma_semaphore, #tpu.memory_space<semaphore_mem>>)
      %c29_i32_304 = arith.constant 29 : i32
      %508 = arith.addi %246, %c29_i32_304 : i32
      %509 = arith.index_cast %508 : i32 to index
      %510 = memref.load %arg2[%509] : memref<64xi32, #tpu.memory_space<smem>>
      %c0_i32_305 = arith.constant 0 : i32
      %c29_i32_306 = arith.constant 29 : i32
      %c0_i32_307 = arith.constant 0 : i32
      %c0_i32_308 = arith.constant 0 : i32
      %511 = tpu.memref_slice %arg4[%510, %c0_i32_308] : memref<16x32xi32, #tpu.memory_space<any>> -> memref<1x32xi32, #tpu.memory_space<any>>
      %512 = tpu.memref_squeeze %511 : memref<1x32xi32, #tpu.memory_space<any>> -> memref<32xi32, #tpu.memory_space<any>>
      %c0_i32_309 = arith.constant 0 : i32
      %513 = tpu.memref_slice %arg6[%c0_i32_305, %c29_i32_306, %c0_i32_309] : memref<2x32x32xi32, #tpu.memory_space<vmem>> -> memref<1x1x32xi32, #tpu.memory_space<vmem>>
      %514 = tpu.memref_squeeze %513 : memref<1x1x32xi32, #tpu.memory_space<vmem>> -> memref<32xi32, #tpu.memory_space<vmem>>
      %515 = tpu.memref_slice %arg7[%c0_i32_307] : memref<2x!tpu.dma_semaphore, #tpu.memory_space<semaphore_mem>> -> memref<1x!tpu.dma_semaphore, #tpu.memory_space<semaphore_mem>>
      %516 = tpu.memref_squeeze %515 : memref<1x!tpu.dma_semaphore, #tpu.memory_space<semaphore_mem>> -> memref<!tpu.dma_semaphore, #tpu.memory_space<semaphore_mem>>
      tpu.enqueue_dma source(%512 : memref<32xi32, #tpu.memory_space<any>>) target(%514 : memref<32xi32, #tpu.memory_space<vmem>>) target_semaphore(%516 : memref<!tpu.dma_semaphore, #tpu.memory_space<semaphore_mem>>)
      %c30_i32_310 = arith.constant 30 : i32
      %517 = arith.addi %246, %c30_i32_310 : i32
      %518 = arith.index_cast %517 : i32 to index
      %519 = memref.load %arg2[%518] : memref<64xi32, #tpu.memory_space<smem>>
      %c0_i32_311 = arith.constant 0 : i32
      %c30_i32_312 = arith.constant 30 : i32
      %c0_i32_313 = arith.constant 0 : i32
      %c0_i32_314 = arith.constant 0 : i32
      %520 = tpu.memref_slice %arg4[%519, %c0_i32_314] : memref<16x32xi32, #tpu.memory_space<any>> -> memref<1x32xi32, #tpu.memory_space<any>>
      %521 = tpu.memref_squeeze %520 : memref<1x32xi32, #tpu.memory_space<any>> -> memref<32xi32, #tpu.memory_space<any>>
      %c0_i32_315 = arith.constant 0 : i32
      %522 = tpu.memref_slice %arg6[%c0_i32_311, %c30_i32_312, %c0_i32_315] : memref<2x32x32xi32, #tpu.memory_space<vmem>> -> memref<1x1x32xi32, #tpu.memory_space<vmem>>
      %523 = tpu.memref_squeeze %522 : memref<1x1x32xi32, #tpu.memory_space<vmem>> -> memref<32xi32, #tpu.memory_space<vmem>>
      %524 = tpu.memref_slice %arg7[%c0_i32_313] : memref<2x!tpu.dma_semaphore, #tpu.memory_space<semaphore_mem>> -> memref<1x!tpu.dma_semaphore, #tpu.memory_space<semaphore_mem>>
      %525 = tpu.memref_squeeze %524 : memref<1x!tpu.dma_semaphore, #tpu.memory_space<semaphore_mem>> -> memref<!tpu.dma_semaphore, #tpu.memory_space<semaphore_mem>>
      tpu.enqueue_dma source(%521 : memref<32xi32, #tpu.memory_space<any>>) target(%523 : memref<32xi32, #tpu.memory_space<vmem>>) target_semaphore(%525 : memref<!tpu.dma_semaphore, #tpu.memory_space<semaphore_mem>>)
      %c31_i32_316 = arith.constant 31 : i32
      %526 = arith.addi %246, %c31_i32_316 : i32
      %527 = arith.index_cast %526 : i32 to index
      %528 = memref.load %arg2[%527] : memref<64xi32, #tpu.memory_space<smem>>
      %c0_i32_317 = arith.constant 0 : i32
      %c31_i32_318 = arith.constant 31 : i32
      %c0_i32_319 = arith.constant 0 : i32
      %c0_i32_320 = arith.constant 0 : i32
      %529 = tpu.memref_slice %arg4[%528, %c0_i32_320] : memref<16x32xi32, #tpu.memory_space<any>> -> memref<1x32xi32, #tpu.memory_space<any>>
      %530 = tpu.memref_squeeze %529 : memref<1x32xi32, #tpu.memory_space<any>> -> memref<32xi32, #tpu.memory_space<any>>
      %c0_i32_321 = arith.constant 0 : i32
      %531 = tpu.memref_slice %arg6[%c0_i32_317, %c31_i32_318, %c0_i32_321] : memref<2x32x32xi32, #tpu.memory_space<vmem>> -> memref<1x1x32xi32, #tpu.memory_space<vmem>>
      %532 = tpu.memref_squeeze %531 : memref<1x1x32xi32, #tpu.memory_space<vmem>> -> memref<32xi32, #tpu.memory_space<vmem>>
      %533 = tpu.memref_slice %arg7[%c0_i32_319] : memref<2x!tpu.dma_semaphore, #tpu.memory_space<semaphore_mem>> -> memref<1x!tpu.dma_semaphore, #tpu.memory_space<semaphore_mem>>
      %534 = tpu.memref_squeeze %533 : memref<1x!tpu.dma_semaphore, #tpu.memory_space<semaphore_mem>> -> memref<!tpu.dma_semaphore, #tpu.memory_space<semaphore_mem>>
      tpu.enqueue_dma source(%530 : memref<32xi32, #tpu.memory_space<any>>) target(%532 : memref<32xi32, #tpu.memory_space<vmem>>) target_semaphore(%534 : memref<!tpu.dma_semaphore, #tpu.memory_space<semaphore_mem>>)
    } else {
    }
    %c1_i32_5 = arith.constant 1 : i32
    %13 = arith.addi %arg1, %c1_i32_5 : i32
    %c1_i32_6 = arith.constant 1 : i32
    %14 = arith.cmpi slt, %13, %c1_i32_6 : i32
    %15 = arith.extui %14 : i1 to i32
    %c0_i32_7 = arith.constant 0 : i32
    %16 = arith.cmpi ne, %15, %c0_i32_7 : i32
    scf.if %16 {
      %c1_i32_124 = arith.constant 1 : i32
      %240 = arith.addi %arg1, %c1_i32_124 : i32
      %c1_i32_125 = arith.constant 1 : i32
      %241 = arith.subi %c1_i32_125, %9 : i32
      %c1_i32_126 = arith.constant 1 : i32
      %242 = arith.muli %arg0, %c1_i32_126 : i32
      %243 = arith.addi %242, %240 : i32
      %c32_i32 = arith.constant 32 : i32
      %244 = arith.muli %243, %c32_i32 : i32
      %c0_i32_127 = arith.constant 0 : i32
      %245 = arith.addi %244, %c0_i32_127 : i32
      %246 = arith.index_cast %245 : i32 to index
      %247 = memref.load %arg2[%246] : memref<64xi32, #tpu.memory_space<smem>>
      %c0_i32_128 = arith.constant 0 : i32
      %c0_i32_129 = arith.constant 0 : i32
      %248 = tpu.memref_slice %arg4[%247, %c0_i32_129] : memref<16x32xi32, #tpu.memory_space<any>> -> memref<1x32xi32, #tpu.memory_space<any>>
      %249 = tpu.memref_squeeze %248 : memref<1x32xi32, #tpu.memory_space<any>> -> memref<32xi32, #tpu.memory_space<any>>
      %c0_i32_130 = arith.constant 0 : i32
      %250 = tpu.memref_slice %arg6[%241, %c0_i32_128, %c0_i32_130] : memref<2x32x32xi32, #tpu.memory_space<vmem>> -> memref<1x1x32xi32, #tpu.memory_space<vmem>>
      %251 = tpu.memref_squeeze %250 : memref<1x1x32xi32, #tpu.memory_space<vmem>> -> memref<32xi32, #tpu.memory_space<vmem>>
      %252 = tpu.memref_slice %arg7[%241] : memref<2x!tpu.dma_semaphore, #tpu.memory_space<semaphore_mem>> -> memref<1x!tpu.dma_semaphore, #tpu.memory_space<semaphore_mem>>
      %253 = tpu.memref_squeeze %252 : memref<1x!tpu.dma_semaphore, #tpu.memory_space<semaphore_mem>> -> memref<!tpu.dma_semaphore, #tpu.memory_space<semaphore_mem>>
      tpu.enqueue_dma source(%249 : memref<32xi32, #tpu.memory_space<any>>) target(%251 : memref<32xi32, #tpu.memory_space<vmem>>) target_semaphore(%253 : memref<!tpu.dma_semaphore, #tpu.memory_space<semaphore_mem>>)
      %c1_i32_131 = arith.constant 1 : i32
      %254 = arith.addi %244, %c1_i32_131 : i32
      %255 = arith.index_cast %254 : i32 to index
      %256 = memref.load %arg2[%255] : memref<64xi32, #tpu.memory_space<smem>>
      %c1_i32_132 = arith.constant 1 : i32
      %c0_i32_133 = arith.constant 0 : i32
      %257 = tpu.memref_slice %arg4[%256, %c0_i32_133] : memref<16x32xi32, #tpu.memory_space<any>> -> memref<1x32xi32, #tpu.memory_space<any>>
      %258 = tpu.memref_squeeze %257 : memref<1x32xi32, #tpu.memory_space<any>> -> memref<32xi32, #tpu.memory_space<any>>
      %c0_i32_134 = arith.constant 0 : i32
      %259 = tpu.memref_slice %arg6[%241, %c1_i32_132, %c0_i32_134] : memref<2x32x32xi32, #tpu.memory_space<vmem>> -> memref<1x1x32xi32, #tpu.memory_space<vmem>>
      %260 = tpu.memref_squeeze %259 : memref<1x1x32xi32, #tpu.memory_space<vmem>> -> memref<32xi32, #tpu.memory_space<vmem>>
      %261 = tpu.memref_slice %arg7[%241] : memref<2x!tpu.dma_semaphore, #tpu.memory_space<semaphore_mem>> -> memref<1x!tpu.dma_semaphore, #tpu.memory_space<semaphore_mem>>
      %262 = tpu.memref_squeeze %261 : memref<1x!tpu.dma_semaphore, #tpu.memory_space<semaphore_mem>> -> memref<!tpu.dma_semaphore, #tpu.memory_space<semaphore_mem>>
      tpu.enqueue_dma source(%258 : memref<32xi32, #tpu.memory_space<any>>) target(%260 : memref<32xi32, #tpu.memory_space<vmem>>) target_semaphore(%262 : memref<!tpu.dma_semaphore, #tpu.memory_space<semaphore_mem>>)
      %c2_i32_135 = arith.constant 2 : i32
      %263 = arith.addi %244, %c2_i32_135 : i32
      %264 = arith.index_cast %263 : i32 to index
      %265 = memref.load %arg2[%264] : memref<64xi32, #tpu.memory_space<smem>>
      %c2_i32_136 = arith.constant 2 : i32
      %c0_i32_137 = arith.constant 0 : i32
      %266 = tpu.memref_slice %arg4[%265, %c0_i32_137] : memref<16x32xi32, #tpu.memory_space<any>> -> memref<1x32xi32, #tpu.memory_space<any>>
      %267 = tpu.memref_squeeze %266 : memref<1x32xi32, #tpu.memory_space<any>> -> memref<32xi32, #tpu.memory_space<any>>
      %c0_i32_138 = arith.constant 0 : i32
      %268 = tpu.memref_slice %arg6[%241, %c2_i32_136, %c0_i32_138] : memref<2x32x32xi32, #tpu.memory_space<vmem>> -> memref<1x1x32xi32, #tpu.memory_space<vmem>>
      %269 = tpu.memref_squeeze %268 : memref<1x1x32xi32, #tpu.memory_space<vmem>> -> memref<32xi32, #tpu.memory_space<vmem>>
      %270 = tpu.memref_slice %arg7[%241] : memref<2x!tpu.dma_semaphore, #tpu.memory_space<semaphore_mem>> -> memref<1x!tpu.dma_semaphore, #tpu.memory_space<semaphore_mem>>
      %271 = tpu.memref_squeeze %270 : memref<1x!tpu.dma_semaphore, #tpu.memory_space<semaphore_mem>> -> memref<!tpu.dma_semaphore, #tpu.memory_space<semaphore_mem>>
      tpu.enqueue_dma source(%267 : memref<32xi32, #tpu.memory_space<any>>) target(%269 : memref<32xi32, #tpu.memory_space<vmem>>) target_semaphore(%271 : memref<!tpu.dma_semaphore, #tpu.memory_space<semaphore_mem>>)
      %c3_i32_139 = arith.constant 3 : i32
      %272 = arith.addi %244, %c3_i32_139 : i32
      %273 = arith.index_cast %272 : i32 to index
      %274 = memref.load %arg2[%273] : memref<64xi32, #tpu.memory_space<smem>>
      %c3_i32_140 = arith.constant 3 : i32
      %c0_i32_141 = arith.constant 0 : i32
      %275 = tpu.memref_slice %arg4[%274, %c0_i32_141] : memref<16x32xi32, #tpu.memory_space<any>> -> memref<1x32xi32, #tpu.memory_space<any>>
      %276 = tpu.memref_squeeze %275 : memref<1x32xi32, #tpu.memory_space<any>> -> memref<32xi32, #tpu.memory_space<any>>
      %c0_i32_142 = arith.constant 0 : i32
      %277 = tpu.memref_slice %arg6[%241, %c3_i32_140, %c0_i32_142] : memref<2x32x32xi32, #tpu.memory_space<vmem>> -> memref<1x1x32xi32, #tpu.memory_space<vmem>>
      %278 = tpu.memref_squeeze %277 : memref<1x1x32xi32, #tpu.memory_space<vmem>> -> memref<32xi32, #tpu.memory_space<vmem>>
      %279 = tpu.memref_slice %arg7[%241] : memref<2x!tpu.dma_semaphore, #tpu.memory_space<semaphore_mem>> -> memref<1x!tpu.dma_semaphore, #tpu.memory_space<semaphore_mem>>
      %280 = tpu.memref_squeeze %279 : memref<1x!tpu.dma_semaphore, #tpu.memory_space<semaphore_mem>> -> memref<!tpu.dma_semaphore, #tpu.memory_space<semaphore_mem>>
      tpu.enqueue_dma source(%276 : memref<32xi32, #tpu.memory_space<any>>) target(%278 : memref<32xi32, #tpu.memory_space<vmem>>) target_semaphore(%280 : memref<!tpu.dma_semaphore, #tpu.memory_space<semaphore_mem>>)
      %c4_i32_143 = arith.constant 4 : i32
      %281 = arith.addi %244, %c4_i32_143 : i32
      %282 = arith.index_cast %281 : i32 to index
      %283 = memref.load %arg2[%282] : memref<64xi32, #tpu.memory_space<smem>>
      %c4_i32_144 = arith.constant 4 : i32
      %c0_i32_145 = arith.constant 0 : i32
      %284 = tpu.memref_slice %arg4[%283, %c0_i32_145] : memref<16x32xi32, #tpu.memory_space<any>> -> memref<1x32xi32, #tpu.memory_space<any>>
      %285 = tpu.memref_squeeze %284 : memref<1x32xi32, #tpu.memory_space<any>> -> memref<32xi32, #tpu.memory_space<any>>
      %c0_i32_146 = arith.constant 0 : i32
      %286 = tpu.memref_slice %arg6[%241, %c4_i32_144, %c0_i32_146] : memref<2x32x32xi32, #tpu.memory_space<vmem>> -> memref<1x1x32xi32, #tpu.memory_space<vmem>>
      %287 = tpu.memref_squeeze %286 : memref<1x1x32xi32, #tpu.memory_space<vmem>> -> memref<32xi32, #tpu.memory_space<vmem>>
      %288 = tpu.memref_slice %arg7[%241] : memref<2x!tpu.dma_semaphore, #tpu.memory_space<semaphore_mem>> -> memref<1x!tpu.dma_semaphore, #tpu.memory_space<semaphore_mem>>
      %289 = tpu.memref_squeeze %288 : memref<1x!tpu.dma_semaphore, #tpu.memory_space<semaphore_mem>> -> memref<!tpu.dma_semaphore, #tpu.memory_space<semaphore_mem>>
      tpu.enqueue_dma source(%285 : memref<32xi32, #tpu.memory_space<any>>) target(%287 : memref<32xi32, #tpu.memory_space<vmem>>) target_semaphore(%289 : memref<!tpu.dma_semaphore, #tpu.memory_space<semaphore_mem>>)
      %c5_i32_147 = arith.constant 5 : i32
      %290 = arith.addi %244, %c5_i32_147 : i32
      %291 = arith.index_cast %290 : i32 to index
      %292 = memref.load %arg2[%291] : memref<64xi32, #tpu.memory_space<smem>>
      %c5_i32_148 = arith.constant 5 : i32
      %c0_i32_149 = arith.constant 0 : i32
      %293 = tpu.memref_slice %arg4[%292, %c0_i32_149] : memref<16x32xi32, #tpu.memory_space<any>> -> memref<1x32xi32, #tpu.memory_space<any>>
      %294 = tpu.memref_squeeze %293 : memref<1x32xi32, #tpu.memory_space<any>> -> memref<32xi32, #tpu.memory_space<any>>
      %c0_i32_150 = arith.constant 0 : i32
      %295 = tpu.memref_slice %arg6[%241, %c5_i32_148, %c0_i32_150] : memref<2x32x32xi32, #tpu.memory_space<vmem>> -> memref<1x1x32xi32, #tpu.memory_space<vmem>>
      %296 = tpu.memref_squeeze %295 : memref<1x1x32xi32, #tpu.memory_space<vmem>> -> memref<32xi32, #tpu.memory_space<vmem>>
      %297 = tpu.memref_slice %arg7[%241] : memref<2x!tpu.dma_semaphore, #tpu.memory_space<semaphore_mem>> -> memref<1x!tpu.dma_semaphore, #tpu.memory_space<semaphore_mem>>
      %298 = tpu.memref_squeeze %297 : memref<1x!tpu.dma_semaphore, #tpu.memory_space<semaphore_mem>> -> memref<!tpu.dma_semaphore, #tpu.memory_space<semaphore_mem>>
      tpu.enqueue_dma source(%294 : memref<32xi32, #tpu.memory_space<any>>) target(%296 : memref<32xi32, #tpu.memory_space<vmem>>) target_semaphore(%298 : memref<!tpu.dma_semaphore, #tpu.memory_space<semaphore_mem>>)
      %c6_i32_151 = arith.constant 6 : i32
      %299 = arith.addi %244, %c6_i32_151 : i32
      %300 = arith.index_cast %299 : i32 to index
      %301 = memref.load %arg2[%300] : memref<64xi32, #tpu.memory_space<smem>>
      %c6_i32_152 = arith.constant 6 : i32
      %c0_i32_153 = arith.constant 0 : i32
      %302 = tpu.memref_slice %arg4[%301, %c0_i32_153] : memref<16x32xi32, #tpu.memory_space<any>> -> memref<1x32xi32, #tpu.memory_space<any>>
      %303 = tpu.memref_squeeze %302 : memref<1x32xi32, #tpu.memory_space<any>> -> memref<32xi32, #tpu.memory_space<any>>
      %c0_i32_154 = arith.constant 0 : i32
      %304 = tpu.memref_slice %arg6[%241, %c6_i32_152, %c0_i32_154] : memref<2x32x32xi32, #tpu.memory_space<vmem>> -> memref<1x1x32xi32, #tpu.memory_space<vmem>>
      %305 = tpu.memref_squeeze %304 : memref<1x1x32xi32, #tpu.memory_space<vmem>> -> memref<32xi32, #tpu.memory_space<vmem>>
      %306 = tpu.memref_slice %arg7[%241] : memref<2x!tpu.dma_semaphore, #tpu.memory_space<semaphore_mem>> -> memref<1x!tpu.dma_semaphore, #tpu.memory_space<semaphore_mem>>
      %307 = tpu.memref_squeeze %306 : memref<1x!tpu.dma_semaphore, #tpu.memory_space<semaphore_mem>> -> memref<!tpu.dma_semaphore, #tpu.memory_space<semaphore_mem>>
      tpu.enqueue_dma source(%303 : memref<32xi32, #tpu.memory_space<any>>) target(%305 : memref<32xi32, #tpu.memory_space<vmem>>) target_semaphore(%307 : memref<!tpu.dma_semaphore, #tpu.memory_space<semaphore_mem>>)
      %c7_i32_155 = arith.constant 7 : i32
      %308 = arith.addi %244, %c7_i32_155 : i32
      %309 = arith.index_cast %308 : i32 to index
      %310 = memref.load %arg2[%309] : memref<64xi32, #tpu.memory_space<smem>>
      %c7_i32_156 = arith.constant 7 : i32
      %c0_i32_157 = arith.constant 0 : i32
      %311 = tpu.memref_slice %arg4[%310, %c0_i32_157] : memref<16x32xi32, #tpu.memory_space<any>> -> memref<1x32xi32, #tpu.memory_space<any>>
      %312 = tpu.memref_squeeze %311 : memref<1x32xi32, #tpu.memory_space<any>> -> memref<32xi32, #tpu.memory_space<any>>
      %c0_i32_158 = arith.constant 0 : i32
      %313 = tpu.memref_slice %arg6[%241, %c7_i32_156, %c0_i32_158] : memref<2x32x32xi32, #tpu.memory_space<vmem>> -> memref<1x1x32xi32, #tpu.memory_space<vmem>>
      %314 = tpu.memref_squeeze %313 : memref<1x1x32xi32, #tpu.memory_space<vmem>> -> memref<32xi32, #tpu.memory_space<vmem>>
      %315 = tpu.memref_slice %arg7[%241] : memref<2x!tpu.dma_semaphore, #tpu.memory_space<semaphore_mem>> -> memref<1x!tpu.dma_semaphore, #tpu.memory_space<semaphore_mem>>
      %316 = tpu.memref_squeeze %315 : memref<1x!tpu.dma_semaphore, #tpu.memory_space<semaphore_mem>> -> memref<!tpu.dma_semaphore, #tpu.memory_space<semaphore_mem>>
      tpu.enqueue_dma source(%312 : memref<32xi32, #tpu.memory_space<any>>) target(%314 : memref<32xi32, #tpu.memory_space<vmem>>) target_semaphore(%316 : memref<!tpu.dma_semaphore, #tpu.memory_space<semaphore_mem>>)
      %c8_i32_159 = arith.constant 8 : i32
      %317 = arith.addi %244, %c8_i32_159 : i32
      %318 = arith.index_cast %317 : i32 to index
      %319 = memref.load %arg2[%318] : memref<64xi32, #tpu.memory_space<smem>>
      %c8_i32_160 = arith.constant 8 : i32
      %c0_i32_161 = arith.constant 0 : i32
      %320 = tpu.memref_slice %arg4[%319, %c0_i32_161] : memref<16x32xi32, #tpu.memory_space<any>> -> memref<1x32xi32, #tpu.memory_space<any>>
      %321 = tpu.memref_squeeze %320 : memref<1x32xi32, #tpu.memory_space<any>> -> memref<32xi32, #tpu.memory_space<any>>
      %c0_i32_162 = arith.constant 0 : i32
      %322 = tpu.memref_slice %arg6[%241, %c8_i32_160, %c0_i32_162] : memref<2x32x32xi32, #tpu.memory_space<vmem>> -> memref<1x1x32xi32, #tpu.memory_space<vmem>>
      %323 = tpu.memref_squeeze %322 : memref<1x1x32xi32, #tpu.memory_space<vmem>> -> memref<32xi32, #tpu.memory_space<vmem>>
      %324 = tpu.memref_slice %arg7[%241] : memref<2x!tpu.dma_semaphore, #tpu.memory_space<semaphore_mem>> -> memref<1x!tpu.dma_semaphore, #tpu.memory_space<semaphore_mem>>
      %325 = tpu.memref_squeeze %324 : memref<1x!tpu.dma_semaphore, #tpu.memory_space<semaphore_mem>> -> memref<!tpu.dma_semaphore, #tpu.memory_space<semaphore_mem>>
      tpu.enqueue_dma source(%321 : memref<32xi32, #tpu.memory_space<any>>) target(%323 : memref<32xi32, #tpu.memory_space<vmem>>) target_semaphore(%325 : memref<!tpu.dma_semaphore, #tpu.memory_space<semaphore_mem>>)
      %c9_i32_163 = arith.constant 9 : i32
      %326 = arith.addi %244, %c9_i32_163 : i32
      %327 = arith.index_cast %326 : i32 to index
      %328 = memref.load %arg2[%327] : memref<64xi32, #tpu.memory_space<smem>>
      %c9_i32_164 = arith.constant 9 : i32
      %c0_i32_165 = arith.constant 0 : i32
      %329 = tpu.memref_slice %arg4[%328, %c0_i32_165] : memref<16x32xi32, #tpu.memory_space<any>> -> memref<1x32xi32, #tpu.memory_space<any>>
      %330 = tpu.memref_squeeze %329 : memref<1x32xi32, #tpu.memory_space<any>> -> memref<32xi32, #tpu.memory_space<any>>
      %c0_i32_166 = arith.constant 0 : i32
      %331 = tpu.memref_slice %arg6[%241, %c9_i32_164, %c0_i32_166] : memref<2x32x32xi32, #tpu.memory_space<vmem>> -> memref<1x1x32xi32, #tpu.memory_space<vmem>>
      %332 = tpu.memref_squeeze %331 : memref<1x1x32xi32, #tpu.memory_space<vmem>> -> memref<32xi32, #tpu.memory_space<vmem>>
      %333 = tpu.memref_slice %arg7[%241] : memref<2x!tpu.dma_semaphore, #tpu.memory_space<semaphore_mem>> -> memref<1x!tpu.dma_semaphore, #tpu.memory_space<semaphore_mem>>
      %334 = tpu.memref_squeeze %333 : memref<1x!tpu.dma_semaphore, #tpu.memory_space<semaphore_mem>> -> memref<!tpu.dma_semaphore, #tpu.memory_space<semaphore_mem>>
      tpu.enqueue_dma source(%330 : memref<32xi32, #tpu.memory_space<any>>) target(%332 : memref<32xi32, #tpu.memory_space<vmem>>) target_semaphore(%334 : memref<!tpu.dma_semaphore, #tpu.memory_space<semaphore_mem>>)
      %c10_i32_167 = arith.constant 10 : i32
      %335 = arith.addi %244, %c10_i32_167 : i32
      %336 = arith.index_cast %335 : i32 to index
      %337 = memref.load %arg2[%336] : memref<64xi32, #tpu.memory_space<smem>>
      %c10_i32_168 = arith.constant 10 : i32
      %c0_i32_169 = arith.constant 0 : i32
      %338 = tpu.memref_slice %arg4[%337, %c0_i32_169] : memref<16x32xi32, #tpu.memory_space<any>> -> memref<1x32xi32, #tpu.memory_space<any>>
      %339 = tpu.memref_squeeze %338 : memref<1x32xi32, #tpu.memory_space<any>> -> memref<32xi32, #tpu.memory_space<any>>
      %c0_i32_170 = arith.constant 0 : i32
      %340 = tpu.memref_slice %arg6[%241, %c10_i32_168, %c0_i32_170] : memref<2x32x32xi32, #tpu.memory_space<vmem>> -> memref<1x1x32xi32, #tpu.memory_space<vmem>>
      %341 = tpu.memref_squeeze %340 : memref<1x1x32xi32, #tpu.memory_space<vmem>> -> memref<32xi32, #tpu.memory_space<vmem>>
      %342 = tpu.memref_slice %arg7[%241] : memref<2x!tpu.dma_semaphore, #tpu.memory_space<semaphore_mem>> -> memref<1x!tpu.dma_semaphore, #tpu.memory_space<semaphore_mem>>
      %343 = tpu.memref_squeeze %342 : memref<1x!tpu.dma_semaphore, #tpu.memory_space<semaphore_mem>> -> memref<!tpu.dma_semaphore, #tpu.memory_space<semaphore_mem>>
      tpu.enqueue_dma source(%339 : memref<32xi32, #tpu.memory_space<any>>) target(%341 : memref<32xi32, #tpu.memory_space<vmem>>) target_semaphore(%343 : memref<!tpu.dma_semaphore, #tpu.memory_space<semaphore_mem>>)
      %c11_i32_171 = arith.constant 11 : i32
      %344 = arith.addi %244, %c11_i32_171 : i32
      %345 = arith.index_cast %344 : i32 to index
      %346 = memref.load %arg2[%345] : memref<64xi32, #tpu.memory_space<smem>>
      %c11_i32_172 = arith.constant 11 : i32
      %c0_i32_173 = arith.constant 0 : i32
      %347 = tpu.memref_slice %arg4[%346, %c0_i32_173] : memref<16x32xi32, #tpu.memory_space<any>> -> memref<1x32xi32, #tpu.memory_space<any>>
      %348 = tpu.memref_squeeze %347 : memref<1x32xi32, #tpu.memory_space<any>> -> memref<32xi32, #tpu.memory_space<any>>
      %c0_i32_174 = arith.constant 0 : i32
      %349 = tpu.memref_slice %arg6[%241, %c11_i32_172, %c0_i32_174] : memref<2x32x32xi32, #tpu.memory_space<vmem>> -> memref<1x1x32xi32, #tpu.memory_space<vmem>>
      %350 = tpu.memref_squeeze %349 : memref<1x1x32xi32, #tpu.memory_space<vmem>> -> memref<32xi32, #tpu.memory_space<vmem>>
      %351 = tpu.memref_slice %arg7[%241] : memref<2x!tpu.dma_semaphore, #tpu.memory_space<semaphore_mem>> -> memref<1x!tpu.dma_semaphore, #tpu.memory_space<semaphore_mem>>
      %352 = tpu.memref_squeeze %351 : memref<1x!tpu.dma_semaphore, #tpu.memory_space<semaphore_mem>> -> memref<!tpu.dma_semaphore, #tpu.memory_space<semaphore_mem>>
      tpu.enqueue_dma source(%348 : memref<32xi32, #tpu.memory_space<any>>) target(%350 : memref<32xi32, #tpu.memory_space<vmem>>) target_semaphore(%352 : memref<!tpu.dma_semaphore, #tpu.memory_space<semaphore_mem>>)
      %c12_i32_175 = arith.constant 12 : i32
      %353 = arith.addi %244, %c12_i32_175 : i32
      %354 = arith.index_cast %353 : i32 to index
      %355 = memref.load %arg2[%354] : memref<64xi32, #tpu.memory_space<smem>>
      %c12_i32_176 = arith.constant 12 : i32
      %c0_i32_177 = arith.constant 0 : i32
      %356 = tpu.memref_slice %arg4[%355, %c0_i32_177] : memref<16x32xi32, #tpu.memory_space<any>> -> memref<1x32xi32, #tpu.memory_space<any>>
      %357 = tpu.memref_squeeze %356 : memref<1x32xi32, #tpu.memory_space<any>> -> memref<32xi32, #tpu.memory_space<any>>
      %c0_i32_178 = arith.constant 0 : i32
      %358 = tpu.memref_slice %arg6[%241, %c12_i32_176, %c0_i32_178] : memref<2x32x32xi32, #tpu.memory_space<vmem>> -> memref<1x1x32xi32, #tpu.memory_space<vmem>>
      %359 = tpu.memref_squeeze %358 : memref<1x1x32xi32, #tpu.memory_space<vmem>> -> memref<32xi32, #tpu.memory_space<vmem>>
      %360 = tpu.memref_slice %arg7[%241] : memref<2x!tpu.dma_semaphore, #tpu.memory_space<semaphore_mem>> -> memref<1x!tpu.dma_semaphore, #tpu.memory_space<semaphore_mem>>
      %361 = tpu.memref_squeeze %360 : memref<1x!tpu.dma_semaphore, #tpu.memory_space<semaphore_mem>> -> memref<!tpu.dma_semaphore, #tpu.memory_space<semaphore_mem>>
      tpu.enqueue_dma source(%357 : memref<32xi32, #tpu.memory_space<any>>) target(%359 : memref<32xi32, #tpu.memory_space<vmem>>) target_semaphore(%361 : memref<!tpu.dma_semaphore, #tpu.memory_space<semaphore_mem>>)
      %c13_i32_179 = arith.constant 13 : i32
      %362 = arith.addi %244, %c13_i32_179 : i32
      %363 = arith.index_cast %362 : i32 to index
      %364 = memref.load %arg2[%363] : memref<64xi32, #tpu.memory_space<smem>>
      %c13_i32_180 = arith.constant 13 : i32
      %c0_i32_181 = arith.constant 0 : i32
      %365 = tpu.memref_slice %arg4[%364, %c0_i32_181] : memref<16x32xi32, #tpu.memory_space<any>> -> memref<1x32xi32, #tpu.memory_space<any>>
      %366 = tpu.memref_squeeze %365 : memref<1x32xi32, #tpu.memory_space<any>> -> memref<32xi32, #tpu.memory_space<any>>
      %c0_i32_182 = arith.constant 0 : i32
      %367 = tpu.memref_slice %arg6[%241, %c13_i32_180, %c0_i32_182] : memref<2x32x32xi32, #tpu.memory_space<vmem>> -> memref<1x1x32xi32, #tpu.memory_space<vmem>>
      %368 = tpu.memref_squeeze %367 : memref<1x1x32xi32, #tpu.memory_space<vmem>> -> memref<32xi32, #tpu.memory_space<vmem>>
      %369 = tpu.memref_slice %arg7[%241] : memref<2x!tpu.dma_semaphore, #tpu.memory_space<semaphore_mem>> -> memref<1x!tpu.dma_semaphore, #tpu.memory_space<semaphore_mem>>
      %370 = tpu.memref_squeeze %369 : memref<1x!tpu.dma_semaphore, #tpu.memory_space<semaphore_mem>> -> memref<!tpu.dma_semaphore, #tpu.memory_space<semaphore_mem>>
      tpu.enqueue_dma source(%366 : memref<32xi32, #tpu.memory_space<any>>) target(%368 : memref<32xi32, #tpu.memory_space<vmem>>) target_semaphore(%370 : memref<!tpu.dma_semaphore, #tpu.memory_space<semaphore_mem>>)
      %c14_i32_183 = arith.constant 14 : i32
      %371 = arith.addi %244, %c14_i32_183 : i32
      %372 = arith.index_cast %371 : i32 to index
      %373 = memref.load %arg2[%372] : memref<64xi32, #tpu.memory_space<smem>>
      %c14_i32_184 = arith.constant 14 : i32
      %c0_i32_185 = arith.constant 0 : i32
      %374 = tpu.memref_slice %arg4[%373, %c0_i32_185] : memref<16x32xi32, #tpu.memory_space<any>> -> memref<1x32xi32, #tpu.memory_space<any>>
      %375 = tpu.memref_squeeze %374 : memref<1x32xi32, #tpu.memory_space<any>> -> memref<32xi32, #tpu.memory_space<any>>
      %c0_i32_186 = arith.constant 0 : i32
      %376 = tpu.memref_slice %arg6[%241, %c14_i32_184, %c0_i32_186] : memref<2x32x32xi32, #tpu.memory_space<vmem>> -> memref<1x1x32xi32, #tpu.memory_space<vmem>>
      %377 = tpu.memref_squeeze %376 : memref<1x1x32xi32, #tpu.memory_space<vmem>> -> memref<32xi32, #tpu.memory_space<vmem>>
      %378 = tpu.memref_slice %arg7[%241] : memref<2x!tpu.dma_semaphore, #tpu.memory_space<semaphore_mem>> -> memref<1x!tpu.dma_semaphore, #tpu.memory_space<semaphore_mem>>
      %379 = tpu.memref_squeeze %378 : memref<1x!tpu.dma_semaphore, #tpu.memory_space<semaphore_mem>> -> memref<!tpu.dma_semaphore, #tpu.memory_space<semaphore_mem>>
      tpu.enqueue_dma source(%375 : memref<32xi32, #tpu.memory_space<any>>) target(%377 : memref<32xi32, #tpu.memory_space<vmem>>) target_semaphore(%379 : memref<!tpu.dma_semaphore, #tpu.memory_space<semaphore_mem>>)
      %c15_i32_187 = arith.constant 15 : i32
      %380 = arith.addi %244, %c15_i32_187 : i32
      %381 = arith.index_cast %380 : i32 to index
      %382 = memref.load %arg2[%381] : memref<64xi32, #tpu.memory_space<smem>>
      %c15_i32_188 = arith.constant 15 : i32
      %c0_i32_189 = arith.constant 0 : i32
      %383 = tpu.memref_slice %arg4[%382, %c0_i32_189] : memref<16x32xi32, #tpu.memory_space<any>> -> memref<1x32xi32, #tpu.memory_space<any>>
      %384 = tpu.memref_squeeze %383 : memref<1x32xi32, #tpu.memory_space<any>> -> memref<32xi32, #tpu.memory_space<any>>
      %c0_i32_190 = arith.constant 0 : i32
      %385 = tpu.memref_slice %arg6[%241, %c15_i32_188, %c0_i32_190] : memref<2x32x32xi32, #tpu.memory_space<vmem>> -> memref<1x1x32xi32, #tpu.memory_space<vmem>>
      %386 = tpu.memref_squeeze %385 : memref<1x1x32xi32, #tpu.memory_space<vmem>> -> memref<32xi32, #tpu.memory_space<vmem>>
      %387 = tpu.memref_slice %arg7[%241] : memref<2x!tpu.dma_semaphore, #tpu.memory_space<semaphore_mem>> -> memref<1x!tpu.dma_semaphore, #tpu.memory_space<semaphore_mem>>
      %388 = tpu.memref_squeeze %387 : memref<1x!tpu.dma_semaphore, #tpu.memory_space<semaphore_mem>> -> memref<!tpu.dma_semaphore, #tpu.memory_space<semaphore_mem>>
      tpu.enqueue_dma source(%384 : memref<32xi32, #tpu.memory_space<any>>) target(%386 : memref<32xi32, #tpu.memory_space<vmem>>) target_semaphore(%388 : memref<!tpu.dma_semaphore, #tpu.memory_space<semaphore_mem>>)
      %c16_i32_191 = arith.constant 16 : i32
      %389 = arith.addi %244, %c16_i32_191 : i32
      %390 = arith.index_cast %389 : i32 to index
      %391 = memref.load %arg2[%390] : memref<64xi32, #tpu.memory_space<smem>>
      %c16_i32_192 = arith.constant 16 : i32
      %c0_i32_193 = arith.constant 0 : i32
      %392 = tpu.memref_slice %arg4[%391, %c0_i32_193] : memref<16x32xi32, #tpu.memory_space<any>> -> memref<1x32xi32, #tpu.memory_space<any>>
      %393 = tpu.memref_squeeze %392 : memref<1x32xi32, #tpu.memory_space<any>> -> memref<32xi32, #tpu.memory_space<any>>
      %c0_i32_194 = arith.constant 0 : i32
      %394 = tpu.memref_slice %arg6[%241, %c16_i32_192, %c0_i32_194] : memref<2x32x32xi32, #tpu.memory_space<vmem>> -> memref<1x1x32xi32, #tpu.memory_space<vmem>>
      %395 = tpu.memref_squeeze %394 : memref<1x1x32xi32, #tpu.memory_space<vmem>> -> memref<32xi32, #tpu.memory_space<vmem>>
      %396 = tpu.memref_slice %arg7[%241] : memref<2x!tpu.dma_semaphore, #tpu.memory_space<semaphore_mem>> -> memref<1x!tpu.dma_semaphore, #tpu.memory_space<semaphore_mem>>
      %397 = tpu.memref_squeeze %396 : memref<1x!tpu.dma_semaphore, #tpu.memory_space<semaphore_mem>> -> memref<!tpu.dma_semaphore, #tpu.memory_space<semaphore_mem>>
      tpu.enqueue_dma source(%393 : memref<32xi32, #tpu.memory_space<any>>) target(%395 : memref<32xi32, #tpu.memory_space<vmem>>) target_semaphore(%397 : memref<!tpu.dma_semaphore, #tpu.memory_space<semaphore_mem>>)
      %c17_i32_195 = arith.constant 17 : i32
      %398 = arith.addi %244, %c17_i32_195 : i32
      %399 = arith.index_cast %398 : i32 to index
      %400 = memref.load %arg2[%399] : memref<64xi32, #tpu.memory_space<smem>>
      %c17_i32_196 = arith.constant 17 : i32
      %c0_i32_197 = arith.constant 0 : i32
      %401 = tpu.memref_slice %arg4[%400, %c0_i32_197] : memref<16x32xi32, #tpu.memory_space<any>> -> memref<1x32xi32, #tpu.memory_space<any>>
      %402 = tpu.memref_squeeze %401 : memref<1x32xi32, #tpu.memory_space<any>> -> memref<32xi32, #tpu.memory_space<any>>
      %c0_i32_198 = arith.constant 0 : i32
      %403 = tpu.memref_slice %arg6[%241, %c17_i32_196, %c0_i32_198] : memref<2x32x32xi32, #tpu.memory_space<vmem>> -> memref<1x1x32xi32, #tpu.memory_space<vmem>>
      %404 = tpu.memref_squeeze %403 : memref<1x1x32xi32, #tpu.memory_space<vmem>> -> memref<32xi32, #tpu.memory_space<vmem>>
      %405 = tpu.memref_slice %arg7[%241] : memref<2x!tpu.dma_semaphore, #tpu.memory_space<semaphore_mem>> -> memref<1x!tpu.dma_semaphore, #tpu.memory_space<semaphore_mem>>
      %406 = tpu.memref_squeeze %405 : memref<1x!tpu.dma_semaphore, #tpu.memory_space<semaphore_mem>> -> memref<!tpu.dma_semaphore, #tpu.memory_space<semaphore_mem>>
      tpu.enqueue_dma source(%402 : memref<32xi32, #tpu.memory_space<any>>) target(%404 : memref<32xi32, #tpu.memory_space<vmem>>) target_semaphore(%406 : memref<!tpu.dma_semaphore, #tpu.memory_space<semaphore_mem>>)
      %c18_i32_199 = arith.constant 18 : i32
      %407 = arith.addi %244, %c18_i32_199 : i32
      %408 = arith.index_cast %407 : i32 to index
      %409 = memref.load %arg2[%408] : memref<64xi32, #tpu.memory_space<smem>>
      %c18_i32_200 = arith.constant 18 : i32
      %c0_i32_201 = arith.constant 0 : i32
      %410 = tpu.memref_slice %arg4[%409, %c0_i32_201] : memref<16x32xi32, #tpu.memory_space<any>> -> memref<1x32xi32, #tpu.memory_space<any>>
      %411 = tpu.memref_squeeze %410 : memref<1x32xi32, #tpu.memory_space<any>> -> memref<32xi32, #tpu.memory_space<any>>
      %c0_i32_202 = arith.constant 0 : i32
      %412 = tpu.memref_slice %arg6[%241, %c18_i32_200, %c0_i32_202] : memref<2x32x32xi32, #tpu.memory_space<vmem>> -> memref<1x1x32xi32, #tpu.memory_space<vmem>>
      %413 = tpu.memref_squeeze %412 : memref<1x1x32xi32, #tpu.memory_space<vmem>> -> memref<32xi32, #tpu.memory_space<vmem>>
      %414 = tpu.memref_slice %arg7[%241] : memref<2x!tpu.dma_semaphore, #tpu.memory_space<semaphore_mem>> -> memref<1x!tpu.dma_semaphore, #tpu.memory_space<semaphore_mem>>
      %415 = tpu.memref_squeeze %414 : memref<1x!tpu.dma_semaphore, #tpu.memory_space<semaphore_mem>> -> memref<!tpu.dma_semaphore, #tpu.memory_space<semaphore_mem>>
      tpu.enqueue_dma source(%411 : memref<32xi32, #tpu.memory_space<any>>) target(%413 : memref<32xi32, #tpu.memory_space<vmem>>) target_semaphore(%415 : memref<!tpu.dma_semaphore, #tpu.memory_space<semaphore_mem>>)
      %c19_i32_203 = arith.constant 19 : i32
      %416 = arith.addi %244, %c19_i32_203 : i32
      %417 = arith.index_cast %416 : i32 to index
      %418 = memref.load %arg2[%417] : memref<64xi32, #tpu.memory_space<smem>>
      %c19_i32_204 = arith.constant 19 : i32
      %c0_i32_205 = arith.constant 0 : i32
      %419 = tpu.memref_slice %arg4[%418, %c0_i32_205] : memref<16x32xi32, #tpu.memory_space<any>> -> memref<1x32xi32, #tpu.memory_space<any>>
      %420 = tpu.memref_squeeze %419 : memref<1x32xi32, #tpu.memory_space<any>> -> memref<32xi32, #tpu.memory_space<any>>
      %c0_i32_206 = arith.constant 0 : i32
      %421 = tpu.memref_slice %arg6[%241, %c19_i32_204, %c0_i32_206] : memref<2x32x32xi32, #tpu.memory_space<vmem>> -> memref<1x1x32xi32, #tpu.memory_space<vmem>>
      %422 = tpu.memref_squeeze %421 : memref<1x1x32xi32, #tpu.memory_space<vmem>> -> memref<32xi32, #tpu.memory_space<vmem>>
      %423 = tpu.memref_slice %arg7[%241] : memref<2x!tpu.dma_semaphore, #tpu.memory_space<semaphore_mem>> -> memref<1x!tpu.dma_semaphore, #tpu.memory_space<semaphore_mem>>
      %424 = tpu.memref_squeeze %423 : memref<1x!tpu.dma_semaphore, #tpu.memory_space<semaphore_mem>> -> memref<!tpu.dma_semaphore, #tpu.memory_space<semaphore_mem>>
      tpu.enqueue_dma source(%420 : memref<32xi32, #tpu.memory_space<any>>) target(%422 : memref<32xi32, #tpu.memory_space<vmem>>) target_semaphore(%424 : memref<!tpu.dma_semaphore, #tpu.memory_space<semaphore_mem>>)
      %c20_i32_207 = arith.constant 20 : i32
      %425 = arith.addi %244, %c20_i32_207 : i32
      %426 = arith.index_cast %425 : i32 to index
      %427 = memref.load %arg2[%426] : memref<64xi32, #tpu.memory_space<smem>>
      %c20_i32_208 = arith.constant 20 : i32
      %c0_i32_209 = arith.constant 0 : i32
      %428 = tpu.memref_slice %arg4[%427, %c0_i32_209] : memref<16x32xi32, #tpu.memory_space<any>> -> memref<1x32xi32, #tpu.memory_space<any>>
      %429 = tpu.memref_squeeze %428 : memref<1x32xi32, #tpu.memory_space<any>> -> memref<32xi32, #tpu.memory_space<any>>
      %c0_i32_210 = arith.constant 0 : i32
      %430 = tpu.memref_slice %arg6[%241, %c20_i32_208, %c0_i32_210] : memref<2x32x32xi32, #tpu.memory_space<vmem>> -> memref<1x1x32xi32, #tpu.memory_space<vmem>>
      %431 = tpu.memref_squeeze %430 : memref<1x1x32xi32, #tpu.memory_space<vmem>> -> memref<32xi32, #tpu.memory_space<vmem>>
      %432 = tpu.memref_slice %arg7[%241] : memref<2x!tpu.dma_semaphore, #tpu.memory_space<semaphore_mem>> -> memref<1x!tpu.dma_semaphore, #tpu.memory_space<semaphore_mem>>
      %433 = tpu.memref_squeeze %432 : memref<1x!tpu.dma_semaphore, #tpu.memory_space<semaphore_mem>> -> memref<!tpu.dma_semaphore, #tpu.memory_space<semaphore_mem>>
      tpu.enqueue_dma source(%429 : memref<32xi32, #tpu.memory_space<any>>) target(%431 : memref<32xi32, #tpu.memory_space<vmem>>) target_semaphore(%433 : memref<!tpu.dma_semaphore, #tpu.memory_space<semaphore_mem>>)
      %c21_i32_211 = arith.constant 21 : i32
      %434 = arith.addi %244, %c21_i32_211 : i32
      %435 = arith.index_cast %434 : i32 to index
      %436 = memref.load %arg2[%435] : memref<64xi32, #tpu.memory_space<smem>>
      %c21_i32_212 = arith.constant 21 : i32
      %c0_i32_213 = arith.constant 0 : i32
      %437 = tpu.memref_slice %arg4[%436, %c0_i32_213] : memref<16x32xi32, #tpu.memory_space<any>> -> memref<1x32xi32, #tpu.memory_space<any>>
      %438 = tpu.memref_squeeze %437 : memref<1x32xi32, #tpu.memory_space<any>> -> memref<32xi32, #tpu.memory_space<any>>
      %c0_i32_214 = arith.constant 0 : i32
      %439 = tpu.memref_slice %arg6[%241, %c21_i32_212, %c0_i32_214] : memref<2x32x32xi32, #tpu.memory_space<vmem>> -> memref<1x1x32xi32, #tpu.memory_space<vmem>>
      %440 = tpu.memref_squeeze %439 : memref<1x1x32xi32, #tpu.memory_space<vmem>> -> memref<32xi32, #tpu.memory_space<vmem>>
      %441 = tpu.memref_slice %arg7[%241] : memref<2x!tpu.dma_semaphore, #tpu.memory_space<semaphore_mem>> -> memref<1x!tpu.dma_semaphore, #tpu.memory_space<semaphore_mem>>
      %442 = tpu.memref_squeeze %441 : memref<1x!tpu.dma_semaphore, #tpu.memory_space<semaphore_mem>> -> memref<!tpu.dma_semaphore, #tpu.memory_space<semaphore_mem>>
      tpu.enqueue_dma source(%438 : memref<32xi32, #tpu.memory_space<any>>) target(%440 : memref<32xi32, #tpu.memory_space<vmem>>) target_semaphore(%442 : memref<!tpu.dma_semaphore, #tpu.memory_space<semaphore_mem>>)
      %c22_i32_215 = arith.constant 22 : i32
      %443 = arith.addi %244, %c22_i32_215 : i32
      %444 = arith.index_cast %443 : i32 to index
      %445 = memref.load %arg2[%444] : memref<64xi32, #tpu.memory_space<smem>>
      %c22_i32_216 = arith.constant 22 : i32
      %c0_i32_217 = arith.constant 0 : i32
      %446 = tpu.memref_slice %arg4[%445, %c0_i32_217] : memref<16x32xi32, #tpu.memory_space<any>> -> memref<1x32xi32, #tpu.memory_space<any>>
      %447 = tpu.memref_squeeze %446 : memref<1x32xi32, #tpu.memory_space<any>> -> memref<32xi32, #tpu.memory_space<any>>
      %c0_i32_218 = arith.constant 0 : i32
      %448 = tpu.memref_slice %arg6[%241, %c22_i32_216, %c0_i32_218] : memref<2x32x32xi32, #tpu.memory_space<vmem>> -> memref<1x1x32xi32, #tpu.memory_space<vmem>>
      %449 = tpu.memref_squeeze %448 : memref<1x1x32xi32, #tpu.memory_space<vmem>> -> memref<32xi32, #tpu.memory_space<vmem>>
      %450 = tpu.memref_slice %arg7[%241] : memref<2x!tpu.dma_semaphore, #tpu.memory_space<semaphore_mem>> -> memref<1x!tpu.dma_semaphore, #tpu.memory_space<semaphore_mem>>
      %451 = tpu.memref_squeeze %450 : memref<1x!tpu.dma_semaphore, #tpu.memory_space<semaphore_mem>> -> memref<!tpu.dma_semaphore, #tpu.memory_space<semaphore_mem>>
      tpu.enqueue_dma source(%447 : memref<32xi32, #tpu.memory_space<any>>) target(%449 : memref<32xi32, #tpu.memory_space<vmem>>) target_semaphore(%451 : memref<!tpu.dma_semaphore, #tpu.memory_space<semaphore_mem>>)
      %c23_i32_219 = arith.constant 23 : i32
      %452 = arith.addi %244, %c23_i32_219 : i32
      %453 = arith.index_cast %452 : i32 to index
      %454 = memref.load %arg2[%453] : memref<64xi32, #tpu.memory_space<smem>>
      %c23_i32_220 = arith.constant 23 : i32
      %c0_i32_221 = arith.constant 0 : i32
      %455 = tpu.memref_slice %arg4[%454, %c0_i32_221] : memref<16x32xi32, #tpu.memory_space<any>> -> memref<1x32xi32, #tpu.memory_space<any>>
      %456 = tpu.memref_squeeze %455 : memref<1x32xi32, #tpu.memory_space<any>> -> memref<32xi32, #tpu.memory_space<any>>
      %c0_i32_222 = arith.constant 0 : i32
      %457 = tpu.memref_slice %arg6[%241, %c23_i32_220, %c0_i32_222] : memref<2x32x32xi32, #tpu.memory_space<vmem>> -> memref<1x1x32xi32, #tpu.memory_space<vmem>>
      %458 = tpu.memref_squeeze %457 : memref<1x1x32xi32, #tpu.memory_space<vmem>> -> memref<32xi32, #tpu.memory_space<vmem>>
      %459 = tpu.memref_slice %arg7[%241] : memref<2x!tpu.dma_semaphore, #tpu.memory_space<semaphore_mem>> -> memref<1x!tpu.dma_semaphore, #tpu.memory_space<semaphore_mem>>
      %460 = tpu.memref_squeeze %459 : memref<1x!tpu.dma_semaphore, #tpu.memory_space<semaphore_mem>> -> memref<!tpu.dma_semaphore, #tpu.memory_space<semaphore_mem>>
      tpu.enqueue_dma source(%456 : memref<32xi32, #tpu.memory_space<any>>) target(%458 : memref<32xi32, #tpu.memory_space<vmem>>) target_semaphore(%460 : memref<!tpu.dma_semaphore, #tpu.memory_space<semaphore_mem>>)
      %c24_i32_223 = arith.constant 24 : i32
      %461 = arith.addi %244, %c24_i32_223 : i32
      %462 = arith.index_cast %461 : i32 to index
      %463 = memref.load %arg2[%462] : memref<64xi32, #tpu.memory_space<smem>>
      %c24_i32_224 = arith.constant 24 : i32
      %c0_i32_225 = arith.constant 0 : i32
      %464 = tpu.memref_slice %arg4[%463, %c0_i32_225] : memref<16x32xi32, #tpu.memory_space<any>> -> memref<1x32xi32, #tpu.memory_space<any>>
      %465 = tpu.memref_squeeze %464 : memref<1x32xi32, #tpu.memory_space<any>> -> memref<32xi32, #tpu.memory_space<any>>
      %c0_i32_226 = arith.constant 0 : i32
      %466 = tpu.memref_slice %arg6[%241, %c24_i32_224, %c0_i32_226] : memref<2x32x32xi32, #tpu.memory_space<vmem>> -> memref<1x1x32xi32, #tpu.memory_space<vmem>>
      %467 = tpu.memref_squeeze %466 : memref<1x1x32xi32, #tpu.memory_space<vmem>> -> memref<32xi32, #tpu.memory_space<vmem>>
      %468 = tpu.memref_slice %arg7[%241] : memref<2x!tpu.dma_semaphore, #tpu.memory_space<semaphore_mem>> -> memref<1x!tpu.dma_semaphore, #tpu.memory_space<semaphore_mem>>
      %469 = tpu.memref_squeeze %468 : memref<1x!tpu.dma_semaphore, #tpu.memory_space<semaphore_mem>> -> memref<!tpu.dma_semaphore, #tpu.memory_space<semaphore_mem>>
      tpu.enqueue_dma source(%465 : memref<32xi32, #tpu.memory_space<any>>) target(%467 : memref<32xi32, #tpu.memory_space<vmem>>) target_semaphore(%469 : memref<!tpu.dma_semaphore, #tpu.memory_space<semaphore_mem>>)
      %c25_i32_227 = arith.constant 25 : i32
      %470 = arith.addi %244, %c25_i32_227 : i32
      %471 = arith.index_cast %470 : i32 to index
      %472 = memref.load %arg2[%471] : memref<64xi32, #tpu.memory_space<smem>>
      %c25_i32_228 = arith.constant 25 : i32
      %c0_i32_229 = arith.constant 0 : i32
      %473 = tpu.memref_slice %arg4[%472, %c0_i32_229] : memref<16x32xi32, #tpu.memory_space<any>> -> memref<1x32xi32, #tpu.memory_space<any>>
      %474 = tpu.memref_squeeze %473 : memref<1x32xi32, #tpu.memory_space<any>> -> memref<32xi32, #tpu.memory_space<any>>
      %c0_i32_230 = arith.constant 0 : i32
      %475 = tpu.memref_slice %arg6[%241, %c25_i32_228, %c0_i32_230] : memref<2x32x32xi32, #tpu.memory_space<vmem>> -> memref<1x1x32xi32, #tpu.memory_space<vmem>>
      %476 = tpu.memref_squeeze %475 : memref<1x1x32xi32, #tpu.memory_space<vmem>> -> memref<32xi32, #tpu.memory_space<vmem>>
      %477 = tpu.memref_slice %arg7[%241] : memref<2x!tpu.dma_semaphore, #tpu.memory_space<semaphore_mem>> -> memref<1x!tpu.dma_semaphore, #tpu.memory_space<semaphore_mem>>
      %478 = tpu.memref_squeeze %477 : memref<1x!tpu.dma_semaphore, #tpu.memory_space<semaphore_mem>> -> memref<!tpu.dma_semaphore, #tpu.memory_space<semaphore_mem>>
      tpu.enqueue_dma source(%474 : memref<32xi32, #tpu.memory_space<any>>) target(%476 : memref<32xi32, #tpu.memory_space<vmem>>) target_semaphore(%478 : memref<!tpu.dma_semaphore, #tpu.memory_space<semaphore_mem>>)
      %c26_i32_231 = arith.constant 26 : i32
      %479 = arith.addi %244, %c26_i32_231 : i32
      %480 = arith.index_cast %479 : i32 to index
      %481 = memref.load %arg2[%480] : memref<64xi32, #tpu.memory_space<smem>>
      %c26_i32_232 = arith.constant 26 : i32
      %c0_i32_233 = arith.constant 0 : i32
      %482 = tpu.memref_slice %arg4[%481, %c0_i32_233] : memref<16x32xi32, #tpu.memory_space<any>> -> memref<1x32xi32, #tpu.memory_space<any>>
      %483 = tpu.memref_squeeze %482 : memref<1x32xi32, #tpu.memory_space<any>> -> memref<32xi32, #tpu.memory_space<any>>
      %c0_i32_234 = arith.constant 0 : i32
      %484 = tpu.memref_slice %arg6[%241, %c26_i32_232, %c0_i32_234] : memref<2x32x32xi32, #tpu.memory_space<vmem>> -> memref<1x1x32xi32, #tpu.memory_space<vmem>>
      %485 = tpu.memref_squeeze %484 : memref<1x1x32xi32, #tpu.memory_space<vmem>> -> memref<32xi32, #tpu.memory_space<vmem>>
      %486 = tpu.memref_slice %arg7[%241] : memref<2x!tpu.dma_semaphore, #tpu.memory_space<semaphore_mem>> -> memref<1x!tpu.dma_semaphore, #tpu.memory_space<semaphore_mem>>
      %487 = tpu.memref_squeeze %486 : memref<1x!tpu.dma_semaphore, #tpu.memory_space<semaphore_mem>> -> memref<!tpu.dma_semaphore, #tpu.memory_space<semaphore_mem>>
      tpu.enqueue_dma source(%483 : memref<32xi32, #tpu.memory_space<any>>) target(%485 : memref<32xi32, #tpu.memory_space<vmem>>) target_semaphore(%487 : memref<!tpu.dma_semaphore, #tpu.memory_space<semaphore_mem>>)
      %c27_i32_235 = arith.constant 27 : i32
      %488 = arith.addi %244, %c27_i32_235 : i32
      %489 = arith.index_cast %488 : i32 to index
      %490 = memref.load %arg2[%489] : memref<64xi32, #tpu.memory_space<smem>>
      %c27_i32_236 = arith.constant 27 : i32
      %c0_i32_237 = arith.constant 0 : i32
      %491 = tpu.memref_slice %arg4[%490, %c0_i32_237] : memref<16x32xi32, #tpu.memory_space<any>> -> memref<1x32xi32, #tpu.memory_space<any>>
      %492 = tpu.memref_squeeze %491 : memref<1x32xi32, #tpu.memory_space<any>> -> memref<32xi32, #tpu.memory_space<any>>
      %c0_i32_238 = arith.constant 0 : i32
      %493 = tpu.memref_slice %arg6[%241, %c27_i32_236, %c0_i32_238] : memref<2x32x32xi32, #tpu.memory_space<vmem>> -> memref<1x1x32xi32, #tpu.memory_space<vmem>>
      %494 = tpu.memref_squeeze %493 : memref<1x1x32xi32, #tpu.memory_space<vmem>> -> memref<32xi32, #tpu.memory_space<vmem>>
      %495 = tpu.memref_slice %arg7[%241] : memref<2x!tpu.dma_semaphore, #tpu.memory_space<semaphore_mem>> -> memref<1x!tpu.dma_semaphore, #tpu.memory_space<semaphore_mem>>
      %496 = tpu.memref_squeeze %495 : memref<1x!tpu.dma_semaphore, #tpu.memory_space<semaphore_mem>> -> memref<!tpu.dma_semaphore, #tpu.memory_space<semaphore_mem>>
      tpu.enqueue_dma source(%492 : memref<32xi32, #tpu.memory_space<any>>) target(%494 : memref<32xi32, #tpu.memory_space<vmem>>) target_semaphore(%496 : memref<!tpu.dma_semaphore, #tpu.memory_space<semaphore_mem>>)
      %c28_i32_239 = arith.constant 28 : i32
      %497 = arith.addi %244, %c28_i32_239 : i32
      %498 = arith.index_cast %497 : i32 to index
      %499 = memref.load %arg2[%498] : memref<64xi32, #tpu.memory_space<smem>>
      %c28_i32_240 = arith.constant 28 : i32
      %c0_i32_241 = arith.constant 0 : i32
      %500 = tpu.memref_slice %arg4[%499, %c0_i32_241] : memref<16x32xi32, #tpu.memory_space<any>> -> memref<1x32xi32, #tpu.memory_space<any>>
      %501 = tpu.memref_squeeze %500 : memref<1x32xi32, #tpu.memory_space<any>> -> memref<32xi32, #tpu.memory_space<any>>
      %c0_i32_242 = arith.constant 0 : i32
      %502 = tpu.memref_slice %arg6[%241, %c28_i32_240, %c0_i32_242] : memref<2x32x32xi32, #tpu.memory_space<vmem>> -> memref<1x1x32xi32, #tpu.memory_space<vmem>>
      %503 = tpu.memref_squeeze %502 : memref<1x1x32xi32, #tpu.memory_space<vmem>> -> memref<32xi32, #tpu.memory_space<vmem>>
      %504 = tpu.memref_slice %arg7[%241] : memref<2x!tpu.dma_semaphore, #tpu.memory_space<semaphore_mem>> -> memref<1x!tpu.dma_semaphore, #tpu.memory_space<semaphore_mem>>
      %505 = tpu.memref_squeeze %504 : memref<1x!tpu.dma_semaphore, #tpu.memory_space<semaphore_mem>> -> memref<!tpu.dma_semaphore, #tpu.memory_space<semaphore_mem>>
      tpu.enqueue_dma source(%501 : memref<32xi32, #tpu.memory_space<any>>) target(%503 : memref<32xi32, #tpu.memory_space<vmem>>) target_semaphore(%505 : memref<!tpu.dma_semaphore, #tpu.memory_space<semaphore_mem>>)
      %c29_i32_243 = arith.constant 29 : i32
      %506 = arith.addi %244, %c29_i32_243 : i32
      %507 = arith.index_cast %506 : i32 to index
      %508 = memref.load %arg2[%507] : memref<64xi32, #tpu.memory_space<smem>>
      %c29_i32_244 = arith.constant 29 : i32
      %c0_i32_245 = arith.constant 0 : i32
      %509 = tpu.memref_slice %arg4[%508, %c0_i32_245] : memref<16x32xi32, #tpu.memory_space<any>> -> memref<1x32xi32, #tpu.memory_space<any>>
      %510 = tpu.memref_squeeze %509 : memref<1x32xi32, #tpu.memory_space<any>> -> memref<32xi32, #tpu.memory_space<any>>
      %c0_i32_246 = arith.constant 0 : i32
      %511 = tpu.memref_slice %arg6[%241, %c29_i32_244, %c0_i32_246] : memref<2x32x32xi32, #tpu.memory_space<vmem>> -> memref<1x1x32xi32, #tpu.memory_space<vmem>>
      %512 = tpu.memref_squeeze %511 : memref<1x1x32xi32, #tpu.memory_space<vmem>> -> memref<32xi32, #tpu.memory_space<vmem>>
      %513 = tpu.memref_slice %arg7[%241] : memref<2x!tpu.dma_semaphore, #tpu.memory_space<semaphore_mem>> -> memref<1x!tpu.dma_semaphore, #tpu.memory_space<semaphore_mem>>
      %514 = tpu.memref_squeeze %513 : memref<1x!tpu.dma_semaphore, #tpu.memory_space<semaphore_mem>> -> memref<!tpu.dma_semaphore, #tpu.memory_space<semaphore_mem>>
      tpu.enqueue_dma source(%510 : memref<32xi32, #tpu.memory_space<any>>) target(%512 : memref<32xi32, #tpu.memory_space<vmem>>) target_semaphore(%514 : memref<!tpu.dma_semaphore, #tpu.memory_space<semaphore_mem>>)
      %c30_i32_247 = arith.constant 30 : i32
      %515 = arith.addi %244, %c30_i32_247 : i32
      %516 = arith.index_cast %515 : i32 to index
      %517 = memref.load %arg2[%516] : memref<64xi32, #tpu.memory_space<smem>>
      %c30_i32_248 = arith.constant 30 : i32
      %c0_i32_249 = arith.constant 0 : i32
      %518 = tpu.memref_slice %arg4[%517, %c0_i32_249] : memref<16x32xi32, #tpu.memory_space<any>> -> memref<1x32xi32, #tpu.memory_space<any>>
      %519 = tpu.memref_squeeze %518 : memref<1x32xi32, #tpu.memory_space<any>> -> memref<32xi32, #tpu.memory_space<any>>
      %c0_i32_250 = arith.constant 0 : i32
      %520 = tpu.memref_slice %arg6[%241, %c30_i32_248, %c0_i32_250] : memref<2x32x32xi32, #tpu.memory_space<vmem>> -> memref<1x1x32xi32, #tpu.memory_space<vmem>>
      %521 = tpu.memref_squeeze %520 : memref<1x1x32xi32, #tpu.memory_space<vmem>> -> memref<32xi32, #tpu.memory_space<vmem>>
      %522 = tpu.memref_slice %arg7[%241] : memref<2x!tpu.dma_semaphore, #tpu.memory_space<semaphore_mem>> -> memref<1x!tpu.dma_semaphore, #tpu.memory_space<semaphore_mem>>
      %523 = tpu.memref_squeeze %522 : memref<1x!tpu.dma_semaphore, #tpu.memory_space<semaphore_mem>> -> memref<!tpu.dma_semaphore, #tpu.memory_space<semaphore_mem>>
      tpu.enqueue_dma source(%519 : memref<32xi32, #tpu.memory_space<any>>) target(%521 : memref<32xi32, #tpu.memory_space<vmem>>) target_semaphore(%523 : memref<!tpu.dma_semaphore, #tpu.memory_space<semaphore_mem>>)
      %c31_i32_251 = arith.constant 31 : i32
      %524 = arith.addi %244, %c31_i32_251 : i32
      %525 = arith.index_cast %524 : i32 to index
      %526 = memref.load %arg2[%525] : memref<64xi32, #tpu.memory_space<smem>>
      %c31_i32_252 = arith.constant 31 : i32
      %c0_i32_253 = arith.constant 0 : i32
      %527 = tpu.memref_slice %arg4[%526, %c0_i32_253] : memref<16x32xi32, #tpu.memory_space<any>> -> memref<1x32xi32, #tpu.memory_space<any>>
      %528 = tpu.memref_squeeze %527 : memref<1x32xi32, #tpu.memory_space<any>> -> memref<32xi32, #tpu.memory_space<any>>
      %c0_i32_254 = arith.constant 0 : i32
      %529 = tpu.memref_slice %arg6[%241, %c31_i32_252, %c0_i32_254] : memref<2x32x32xi32, #tpu.memory_space<vmem>> -> memref<1x1x32xi32, #tpu.memory_space<vmem>>
      %530 = tpu.memref_squeeze %529 : memref<1x1x32xi32, #tpu.memory_space<vmem>> -> memref<32xi32, #tpu.memory_space<vmem>>
      %531 = tpu.memref_slice %arg7[%241] : memref<2x!tpu.dma_semaphore, #tpu.memory_space<semaphore_mem>> -> memref<1x!tpu.dma_semaphore, #tpu.memory_space<semaphore_mem>>
      %532 = tpu.memref_squeeze %531 : memref<1x!tpu.dma_semaphore, #tpu.memory_space<semaphore_mem>> -> memref<!tpu.dma_semaphore, #tpu.memory_space<semaphore_mem>>
      tpu.enqueue_dma source(%528 : memref<32xi32, #tpu.memory_space<any>>) target(%530 : memref<32xi32, #tpu.memory_space<vmem>>) target_semaphore(%532 : memref<!tpu.dma_semaphore, #tpu.memory_space<semaphore_mem>>)
    } else {
    }
    %c0_i32_8 = arith.constant 0 : i32
    %c0_i32_9 = arith.constant 0 : i32
    %c0_i32_10 = arith.constant 0 : i32
    %17 = tpu.memref_slice %arg4[%c0_i32_8, %c0_i32_10] : memref<16x32xi32, #tpu.memory_space<any>> -> memref<1x32xi32, #tpu.memory_space<any>>
    %18 = tpu.memref_squeeze %17 : memref<1x32xi32, #tpu.memory_space<any>> -> memref<32xi32, #tpu.memory_space<any>>
    %c0_i32_11 = arith.constant 0 : i32
    %19 = tpu.memref_slice %arg6[%9, %c0_i32_9, %c0_i32_11] : memref<2x32x32xi32, #tpu.memory_space<vmem>> -> memref<1x1x32xi32, #tpu.memory_space<vmem>>
    %20 = tpu.memref_squeeze %19 : memref<1x1x32xi32, #tpu.memory_space<vmem>> -> memref<32xi32, #tpu.memory_space<vmem>>
    %21 = tpu.memref_slice %arg7[%9] : memref<2x!tpu.dma_semaphore, #tpu.memory_space<semaphore_mem>> -> memref<1x!tpu.dma_semaphore, #tpu.memory_space<semaphore_mem>>
    %22 = tpu.memref_squeeze %21 : memref<1x!tpu.dma_semaphore, #tpu.memory_space<semaphore_mem>> -> memref<!tpu.dma_semaphore, #tpu.memory_space<semaphore_mem>>
    tpu.wait_dma2 semaphore(%22 : memref<!tpu.dma_semaphore, #tpu.memory_space<semaphore_mem>>) src(%18 : memref<32xi32, #tpu.memory_space<any>>) dst(%20 : memref<32xi32, #tpu.memory_space<vmem>>)
    %c0_i32_12 = arith.constant 0 : i32
    %c1_i32_13 = arith.constant 1 : i32
    %c0_i32_14 = arith.constant 0 : i32
    %23 = tpu.memref_slice %arg4[%c0_i32_12, %c0_i32_14] : memref<16x32xi32, #tpu.memory_space<any>> -> memref<1x32xi32, #tpu.memory_space<any>>
    %24 = tpu.memref_squeeze %23 : memref<1x32xi32, #tpu.memory_space<any>> -> memref<32xi32, #tpu.memory_space<any>>
    %c0_i32_15 = arith.constant 0 : i32
    %25 = tpu.memref_slice %arg6[%9, %c1_i32_13, %c0_i32_15] : memref<2x32x32xi32, #tpu.memory_space<vmem>> -> memref<1x1x32xi32, #tpu.memory_space<vmem>>
    %26 = tpu.memref_squeeze %25 : memref<1x1x32xi32, #tpu.memory_space<vmem>> -> memref<32xi32, #tpu.memory_space<vmem>>
    %27 = tpu.memref_slice %arg7[%9] : memref<2x!tpu.dma_semaphore, #tpu.memory_space<semaphore_mem>> -> memref<1x!tpu.dma_semaphore, #tpu.memory_space<semaphore_mem>>
    %28 = tpu.memref_squeeze %27 : memref<1x!tpu.dma_semaphore, #tpu.memory_space<semaphore_mem>> -> memref<!tpu.dma_semaphore, #tpu.memory_space<semaphore_mem>>
    tpu.wait_dma2 semaphore(%28 : memref<!tpu.dma_semaphore, #tpu.memory_space<semaphore_mem>>) src(%24 : memref<32xi32, #tpu.memory_space<any>>) dst(%26 : memref<32xi32, #tpu.memory_space<vmem>>)
    %c0_i32_16 = arith.constant 0 : i32
    %c2_i32_17 = arith.constant 2 : i32
    %c0_i32_18 = arith.constant 0 : i32
    %29 = tpu.memref_slice %arg4[%c0_i32_16, %c0_i32_18] : memref<16x32xi32, #tpu.memory_space<any>> -> memref<1x32xi32, #tpu.memory_space<any>>
    %30 = tpu.memref_squeeze %29 : memref<1x32xi32, #tpu.memory_space<any>> -> memref<32xi32, #tpu.memory_space<any>>
    %c0_i32_19 = arith.constant 0 : i32
    %31 = tpu.memref_slice %arg6[%9, %c2_i32_17, %c0_i32_19] : memref<2x32x32xi32, #tpu.memory_space<vmem>> -> memref<1x1x32xi32, #tpu.memory_space<vmem>>
    %32 = tpu.memref_squeeze %31 : memref<1x1x32xi32, #tpu.memory_space<vmem>> -> memref<32xi32, #tpu.memory_space<vmem>>
    %33 = tpu.memref_slice %arg7[%9] : memref<2x!tpu.dma_semaphore, #tpu.memory_space<semaphore_mem>> -> memref<1x!tpu.dma_semaphore, #tpu.memory_space<semaphore_mem>>
    %34 = tpu.memref_squeeze %33 : memref<1x!tpu.dma_semaphore, #tpu.memory_space<semaphore_mem>> -> memref<!tpu.dma_semaphore, #tpu.memory_space<semaphore_mem>>
    tpu.wait_dma2 semaphore(%34 : memref<!tpu.dma_semaphore, #tpu.memory_space<semaphore_mem>>) src(%30 : memref<32xi32, #tpu.memory_space<any>>) dst(%32 : memref<32xi32, #tpu.memory_space<vmem>>)
    %c0_i32_20 = arith.constant 0 : i32
    %c3_i32 = arith.constant 3 : i32
    %c0_i32_21 = arith.constant 0 : i32
    %35 = tpu.memref_slice %arg4[%c0_i32_20, %c0_i32_21] : memref<16x32xi32, #tpu.memory_space<any>> -> memref<1x32xi32, #tpu.memory_space<any>>
    %36 = tpu.memref_squeeze %35 : memref<1x32xi32, #tpu.memory_space<any>> -> memref<32xi32, #tpu.memory_space<any>>
    %c0_i32_22 = arith.constant 0 : i32
    %37 = tpu.memref_slice %arg6[%9, %c3_i32, %c0_i32_22] : memref<2x32x32xi32, #tpu.memory_space<vmem>> -> memref<1x1x32xi32, #tpu.memory_space<vmem>>
    %38 = tpu.memref_squeeze %37 : memref<1x1x32xi32, #tpu.memory_space<vmem>> -> memref<32xi32, #tpu.memory_space<vmem>>
    %39 = tpu.memref_slice %arg7[%9] : memref<2x!tpu.dma_semaphore, #tpu.memory_space<semaphore_mem>> -> memref<1x!tpu.dma_semaphore, #tpu.memory_space<semaphore_mem>>
    %40 = tpu.memref_squeeze %39 : memref<1x!tpu.dma_semaphore, #tpu.memory_space<semaphore_mem>> -> memref<!tpu.dma_semaphore, #tpu.memory_space<semaphore_mem>>
    tpu.wait_dma2 semaphore(%40 : memref<!tpu.dma_semaphore, #tpu.memory_space<semaphore_mem>>) src(%36 : memref<32xi32, #tpu.memory_space<any>>) dst(%38 : memref<32xi32, #tpu.memory_space<vmem>>)
    %c0_i32_23 = arith.constant 0 : i32
    %c4_i32 = arith.constant 4 : i32
    %c0_i32_24 = arith.constant 0 : i32
    %41 = tpu.memref_slice %arg4[%c0_i32_23, %c0_i32_24] : memref<16x32xi32, #tpu.memory_space<any>> -> memref<1x32xi32, #tpu.memory_space<any>>
    %42 = tpu.memref_squeeze %41 : memref<1x32xi32, #tpu.memory_space<any>> -> memref<32xi32, #tpu.memory_space<any>>
    %c0_i32_25 = arith.constant 0 : i32
    %43 = tpu.memref_slice %arg6[%9, %c4_i32, %c0_i32_25] : memref<2x32x32xi32, #tpu.memory_space<vmem>> -> memref<1x1x32xi32, #tpu.memory_space<vmem>>
    %44 = tpu.memref_squeeze %43 : memref<1x1x32xi32, #tpu.memory_space<vmem>> -> memref<32xi32, #tpu.memory_space<vmem>>
    %45 = tpu.memref_slice %arg7[%9] : memref<2x!tpu.dma_semaphore, #tpu.memory_space<semaphore_mem>> -> memref<1x!tpu.dma_semaphore, #tpu.memory_space<semaphore_mem>>
    %46 = tpu.memref_squeeze %45 : memref<1x!tpu.dma_semaphore, #tpu.memory_space<semaphore_mem>> -> memref<!tpu.dma_semaphore, #tpu.memory_space<semaphore_mem>>
    tpu.wait_dma2 semaphore(%46 : memref<!tpu.dma_semaphore, #tpu.memory_space<semaphore_mem>>) src(%42 : memref<32xi32, #tpu.memory_space<any>>) dst(%44 : memref<32xi32, #tpu.memory_space<vmem>>)
    %c0_i32_26 = arith.constant 0 : i32
    %c5_i32 = arith.constant 5 : i32
    %c0_i32_27 = arith.constant 0 : i32
    %47 = tpu.memref_slice %arg4[%c0_i32_26, %c0_i32_27] : memref<16x32xi32, #tpu.memory_space<any>> -> memref<1x32xi32, #tpu.memory_space<any>>
    %48 = tpu.memref_squeeze %47 : memref<1x32xi32, #tpu.memory_space<any>> -> memref<32xi32, #tpu.memory_space<any>>
    %c0_i32_28 = arith.constant 0 : i32
    %49 = tpu.memref_slice %arg6[%9, %c5_i32, %c0_i32_28] : memref<2x32x32xi32, #tpu.memory_space<vmem>> -> memref<1x1x32xi32, #tpu.memory_space<vmem>>
    %50 = tpu.memref_squeeze %49 : memref<1x1x32xi32, #tpu.memory_space<vmem>> -> memref<32xi32, #tpu.memory_space<vmem>>
    %51 = tpu.memref_slice %arg7[%9] : memref<2x!tpu.dma_semaphore, #tpu.memory_space<semaphore_mem>> -> memref<1x!tpu.dma_semaphore, #tpu.memory_space<semaphore_mem>>
    %52 = tpu.memref_squeeze %51 : memref<1x!tpu.dma_semaphore, #tpu.memory_space<semaphore_mem>> -> memref<!tpu.dma_semaphore, #tpu.memory_space<semaphore_mem>>
    tpu.wait_dma2 semaphore(%52 : memref<!tpu.dma_semaphore, #tpu.memory_space<semaphore_mem>>) src(%48 : memref<32xi32, #tpu.memory_space<any>>) dst(%50 : memref<32xi32, #tpu.memory_space<vmem>>)
    %c0_i32_29 = arith.constant 0 : i32
    %c6_i32 = arith.constant 6 : i32
    %c0_i32_30 = arith.constant 0 : i32
    %53 = tpu.memref_slice %arg4[%c0_i32_29, %c0_i32_30] : memref<16x32xi32, #tpu.memory_space<any>> -> memref<1x32xi32, #tpu.memory_space<any>>
    %54 = tpu.memref_squeeze %53 : memref<1x32xi32, #tpu.memory_space<any>> -> memref<32xi32, #tpu.memory_space<any>>
    %c0_i32_31 = arith.constant 0 : i32
    %55 = tpu.memref_slice %arg6[%9, %c6_i32, %c0_i32_31] : memref<2x32x32xi32, #tpu.memory_space<vmem>> -> memref<1x1x32xi32, #tpu.memory_space<vmem>>
    %56 = tpu.memref_squeeze %55 : memref<1x1x32xi32, #tpu.memory_space<vmem>> -> memref<32xi32, #tpu.memory_space<vmem>>
    %57 = tpu.memref_slice %arg7[%9] : memref<2x!tpu.dma_semaphore, #tpu.memory_space<semaphore_mem>> -> memref<1x!tpu.dma_semaphore, #tpu.memory_space<semaphore_mem>>
    %58 = tpu.memref_squeeze %57 : memref<1x!tpu.dma_semaphore, #tpu.memory_space<semaphore_mem>> -> memref<!tpu.dma_semaphore, #tpu.memory_space<semaphore_mem>>
    tpu.wait_dma2 semaphore(%58 : memref<!tpu.dma_semaphore, #tpu.memory_space<semaphore_mem>>) src(%54 : memref<32xi32, #tpu.memory_space<any>>) dst(%56 : memref<32xi32, #tpu.memory_space<vmem>>)
    %c0_i32_32 = arith.constant 0 : i32
    %c7_i32 = arith.constant 7 : i32
    %c0_i32_33 = arith.constant 0 : i32
    %59 = tpu.memref_slice %arg4[%c0_i32_32, %c0_i32_33] : memref<16x32xi32, #tpu.memory_space<any>> -> memref<1x32xi32, #tpu.memory_space<any>>
    %60 = tpu.memref_squeeze %59 : memref<1x32xi32, #tpu.memory_space<any>> -> memref<32xi32, #tpu.memory_space<any>>
    %c0_i32_34 = arith.constant 0 : i32
    %61 = tpu.memref_slice %arg6[%9, %c7_i32, %c0_i32_34] : memref<2x32x32xi32, #tpu.memory_space<vmem>> -> memref<1x1x32xi32, #tpu.memory_space<vmem>>
    %62 = tpu.memref_squeeze %61 : memref<1x1x32xi32, #tpu.memory_space<vmem>> -> memref<32xi32, #tpu.memory_space<vmem>>
    %63 = tpu.memref_slice %arg7[%9] : memref<2x!tpu.dma_semaphore, #tpu.memory_space<semaphore_mem>> -> memref<1x!tpu.dma_semaphore, #tpu.memory_space<semaphore_mem>>
    %64 = tpu.memref_squeeze %63 : memref<1x!tpu.dma_semaphore, #tpu.memory_space<semaphore_mem>> -> memref<!tpu.dma_semaphore, #tpu.memory_space<semaphore_mem>>
    tpu.wait_dma2 semaphore(%64 : memref<!tpu.dma_semaphore, #tpu.memory_space<semaphore_mem>>) src(%60 : memref<32xi32, #tpu.memory_space<any>>) dst(%62 : memref<32xi32, #tpu.memory_space<vmem>>)
    %c0_i32_35 = arith.constant 0 : i32
    %c8_i32 = arith.constant 8 : i32
    %c0_i32_36 = arith.constant 0 : i32
    %65 = tpu.memref_slice %arg4[%c0_i32_35, %c0_i32_36] : memref<16x32xi32, #tpu.memory_space<any>> -> memref<1x32xi32, #tpu.memory_space<any>>
    %66 = tpu.memref_squeeze %65 : memref<1x32xi32, #tpu.memory_space<any>> -> memref<32xi32, #tpu.memory_space<any>>
    %c0_i32_37 = arith.constant 0 : i32
    %67 = tpu.memref_slice %arg6[%9, %c8_i32, %c0_i32_37] : memref<2x32x32xi32, #tpu.memory_space<vmem>> -> memref<1x1x32xi32, #tpu.memory_space<vmem>>
    %68 = tpu.memref_squeeze %67 : memref<1x1x32xi32, #tpu.memory_space<vmem>> -> memref<32xi32, #tpu.memory_space<vmem>>
    %69 = tpu.memref_slice %arg7[%9] : memref<2x!tpu.dma_semaphore, #tpu.memory_space<semaphore_mem>> -> memref<1x!tpu.dma_semaphore, #tpu.memory_space<semaphore_mem>>
    %70 = tpu.memref_squeeze %69 : memref<1x!tpu.dma_semaphore, #tpu.memory_space<semaphore_mem>> -> memref<!tpu.dma_semaphore, #tpu.memory_space<semaphore_mem>>
    tpu.wait_dma2 semaphore(%70 : memref<!tpu.dma_semaphore, #tpu.memory_space<semaphore_mem>>) src(%66 : memref<32xi32, #tpu.memory_space<any>>) dst(%68 : memref<32xi32, #tpu.memory_space<vmem>>)
    %c0_i32_38 = arith.constant 0 : i32
    %c9_i32 = arith.constant 9 : i32
    %c0_i32_39 = arith.constant 0 : i32
    %71 = tpu.memref_slice %arg4[%c0_i32_38, %c0_i32_39] : memref<16x32xi32, #tpu.memory_space<any>> -> memref<1x32xi32, #tpu.memory_space<any>>
    %72 = tpu.memref_squeeze %71 : memref<1x32xi32, #tpu.memory_space<any>> -> memref<32xi32, #tpu.memory_space<any>>
    %c0_i32_40 = arith.constant 0 : i32
    %73 = tpu.memref_slice %arg6[%9, %c9_i32, %c0_i32_40] : memref<2x32x32xi32, #tpu.memory_space<vmem>> -> memref<1x1x32xi32, #tpu.memory_space<vmem>>
    %74 = tpu.memref_squeeze %73 : memref<1x1x32xi32, #tpu.memory_space<vmem>> -> memref<32xi32, #tpu.memory_space<vmem>>
    %75 = tpu.memref_slice %arg7[%9] : memref<2x!tpu.dma_semaphore, #tpu.memory_space<semaphore_mem>> -> memref<1x!tpu.dma_semaphore, #tpu.memory_space<semaphore_mem>>
    %76 = tpu.memref_squeeze %75 : memref<1x!tpu.dma_semaphore, #tpu.memory_space<semaphore_mem>> -> memref<!tpu.dma_semaphore, #tpu.memory_space<semaphore_mem>>
    tpu.wait_dma2 semaphore(%76 : memref<!tpu.dma_semaphore, #tpu.memory_space<semaphore_mem>>) src(%72 : memref<32xi32, #tpu.memory_space<any>>) dst(%74 : memref<32xi32, #tpu.memory_space<vmem>>)
    %c0_i32_41 = arith.constant 0 : i32
    %c10_i32 = arith.constant 10 : i32
    %c0_i32_42 = arith.constant 0 : i32
    %77 = tpu.memref_slice %arg4[%c0_i32_41, %c0_i32_42] : memref<16x32xi32, #tpu.memory_space<any>> -> memref<1x32xi32, #tpu.memory_space<any>>
    %78 = tpu.memref_squeeze %77 : memref<1x32xi32, #tpu.memory_space<any>> -> memref<32xi32, #tpu.memory_space<any>>
    %c0_i32_43 = arith.constant 0 : i32
    %79 = tpu.memref_slice %arg6[%9, %c10_i32, %c0_i32_43] : memref<2x32x32xi32, #tpu.memory_space<vmem>> -> memref<1x1x32xi32, #tpu.memory_space<vmem>>
    %80 = tpu.memref_squeeze %79 : memref<1x1x32xi32, #tpu.memory_space<vmem>> -> memref<32xi32, #tpu.memory_space<vmem>>
    %81 = tpu.memref_slice %arg7[%9] : memref<2x!tpu.dma_semaphore, #tpu.memory_space<semaphore_mem>> -> memref<1x!tpu.dma_semaphore, #tpu.memory_space<semaphore_mem>>
    %82 = tpu.memref_squeeze %81 : memref<1x!tpu.dma_semaphore, #tpu.memory_space<semaphore_mem>> -> memref<!tpu.dma_semaphore, #tpu.memory_space<semaphore_mem>>
    tpu.wait_dma2 semaphore(%82 : memref<!tpu.dma_semaphore, #tpu.memory_space<semaphore_mem>>) src(%78 : memref<32xi32, #tpu.memory_space<any>>) dst(%80 : memref<32xi32, #tpu.memory_space<vmem>>)
    %c0_i32_44 = arith.constant 0 : i32
    %c11_i32 = arith.constant 11 : i32
    %c0_i32_45 = arith.constant 0 : i32
    %83 = tpu.memref_slice %arg4[%c0_i32_44, %c0_i32_45] : memref<16x32xi32, #tpu.memory_space<any>> -> memref<1x32xi32, #tpu.memory_space<any>>
    %84 = tpu.memref_squeeze %83 : memref<1x32xi32, #tpu.memory_space<any>> -> memref<32xi32, #tpu.memory_space<any>>
    %c0_i32_46 = arith.constant 0 : i32
    %85 = tpu.memref_slice %arg6[%9, %c11_i32, %c0_i32_46] : memref<2x32x32xi32, #tpu.memory_space<vmem>> -> memref<1x1x32xi32, #tpu.memory_space<vmem>>
    %86 = tpu.memref_squeeze %85 : memref<1x1x32xi32, #tpu.memory_space<vmem>> -> memref<32xi32, #tpu.memory_space<vmem>>
    %87 = tpu.memref_slice %arg7[%9] : memref<2x!tpu.dma_semaphore, #tpu.memory_space<semaphore_mem>> -> memref<1x!tpu.dma_semaphore, #tpu.memory_space<semaphore_mem>>
    %88 = tpu.memref_squeeze %87 : memref<1x!tpu.dma_semaphore, #tpu.memory_space<semaphore_mem>> -> memref<!tpu.dma_semaphore, #tpu.memory_space<semaphore_mem>>
    tpu.wait_dma2 semaphore(%88 : memref<!tpu.dma_semaphore, #tpu.memory_space<semaphore_mem>>) src(%84 : memref<32xi32, #tpu.memory_space<any>>) dst(%86 : memref<32xi32, #tpu.memory_space<vmem>>)
    %c0_i32_47 = arith.constant 0 : i32
    %c12_i32 = arith.constant 12 : i32
    %c0_i32_48 = arith.constant 0 : i32
    %89 = tpu.memref_slice %arg4[%c0_i32_47, %c0_i32_48] : memref<16x32xi32, #tpu.memory_space<any>> -> memref<1x32xi32, #tpu.memory_space<any>>
    %90 = tpu.memref_squeeze %89 : memref<1x32xi32, #tpu.memory_space<any>> -> memref<32xi32, #tpu.memory_space<any>>
    %c0_i32_49 = arith.constant 0 : i32
    %91 = tpu.memref_slice %arg6[%9, %c12_i32, %c0_i32_49] : memref<2x32x32xi32, #tpu.memory_space<vmem>> -> memref<1x1x32xi32, #tpu.memory_space<vmem>>
    %92 = tpu.memref_squeeze %91 : memref<1x1x32xi32, #tpu.memory_space<vmem>> -> memref<32xi32, #tpu.memory_space<vmem>>
    %93 = tpu.memref_slice %arg7[%9] : memref<2x!tpu.dma_semaphore, #tpu.memory_space<semaphore_mem>> -> memref<1x!tpu.dma_semaphore, #tpu.memory_space<semaphore_mem>>
    %94 = tpu.memref_squeeze %93 : memref<1x!tpu.dma_semaphore, #tpu.memory_space<semaphore_mem>> -> memref<!tpu.dma_semaphore, #tpu.memory_space<semaphore_mem>>
    tpu.wait_dma2 semaphore(%94 : memref<!tpu.dma_semaphore, #tpu.memory_space<semaphore_mem>>) src(%90 : memref<32xi32, #tpu.memory_space<any>>) dst(%92 : memref<32xi32, #tpu.memory_space<vmem>>)
    %c0_i32_50 = arith.constant 0 : i32
    %c13_i32 = arith.constant 13 : i32
    %c0_i32_51 = arith.constant 0 : i32
    %95 = tpu.memref_slice %arg4[%c0_i32_50, %c0_i32_51] : memref<16x32xi32, #tpu.memory_space<any>> -> memref<1x32xi32, #tpu.memory_space<any>>
    %96 = tpu.memref_squeeze %95 : memref<1x32xi32, #tpu.memory_space<any>> -> memref<32xi32, #tpu.memory_space<any>>
    %c0_i32_52 = arith.constant 0 : i32
    %97 = tpu.memref_slice %arg6[%9, %c13_i32, %c0_i32_52] : memref<2x32x32xi32, #tpu.memory_space<vmem>> -> memref<1x1x32xi32, #tpu.memory_space<vmem>>
    %98 = tpu.memref_squeeze %97 : memref<1x1x32xi32, #tpu.memory_space<vmem>> -> memref<32xi32, #tpu.memory_space<vmem>>
    %99 = tpu.memref_slice %arg7[%9] : memref<2x!tpu.dma_semaphore, #tpu.memory_space<semaphore_mem>> -> memref<1x!tpu.dma_semaphore, #tpu.memory_space<semaphore_mem>>
    %100 = tpu.memref_squeeze %99 : memref<1x!tpu.dma_semaphore, #tpu.memory_space<semaphore_mem>> -> memref<!tpu.dma_semaphore, #tpu.memory_space<semaphore_mem>>
    tpu.wait_dma2 semaphore(%100 : memref<!tpu.dma_semaphore, #tpu.memory_space<semaphore_mem>>) src(%96 : memref<32xi32, #tpu.memory_space<any>>) dst(%98 : memref<32xi32, #tpu.memory_space<vmem>>)
    %c0_i32_53 = arith.constant 0 : i32
    %c14_i32 = arith.constant 14 : i32
    %c0_i32_54 = arith.constant 0 : i32
    %101 = tpu.memref_slice %arg4[%c0_i32_53, %c0_i32_54] : memref<16x32xi32, #tpu.memory_space<any>> -> memref<1x32xi32, #tpu.memory_space<any>>
    %102 = tpu.memref_squeeze %101 : memref<1x32xi32, #tpu.memory_space<any>> -> memref<32xi32, #tpu.memory_space<any>>
    %c0_i32_55 = arith.constant 0 : i32
    %103 = tpu.memref_slice %arg6[%9, %c14_i32, %c0_i32_55] : memref<2x32x32xi32, #tpu.memory_space<vmem>> -> memref<1x1x32xi32, #tpu.memory_space<vmem>>
    %104 = tpu.memref_squeeze %103 : memref<1x1x32xi32, #tpu.memory_space<vmem>> -> memref<32xi32, #tpu.memory_space<vmem>>
    %105 = tpu.memref_slice %arg7[%9] : memref<2x!tpu.dma_semaphore, #tpu.memory_space<semaphore_mem>> -> memref<1x!tpu.dma_semaphore, #tpu.memory_space<semaphore_mem>>
    %106 = tpu.memref_squeeze %105 : memref<1x!tpu.dma_semaphore, #tpu.memory_space<semaphore_mem>> -> memref<!tpu.dma_semaphore, #tpu.memory_space<semaphore_mem>>
    tpu.wait_dma2 semaphore(%106 : memref<!tpu.dma_semaphore, #tpu.memory_space<semaphore_mem>>) src(%102 : memref<32xi32, #tpu.memory_space<any>>) dst(%104 : memref<32xi32, #tpu.memory_space<vmem>>)
    %c0_i32_56 = arith.constant 0 : i32
    %c15_i32 = arith.constant 15 : i32
    %c0_i32_57 = arith.constant 0 : i32
    %107 = tpu.memref_slice %arg4[%c0_i32_56, %c0_i32_57] : memref<16x32xi32, #tpu.memory_space<any>> -> memref<1x32xi32, #tpu.memory_space<any>>
    %108 = tpu.memref_squeeze %107 : memref<1x32xi32, #tpu.memory_space<any>> -> memref<32xi32, #tpu.memory_space<any>>
    %c0_i32_58 = arith.constant 0 : i32
    %109 = tpu.memref_slice %arg6[%9, %c15_i32, %c0_i32_58] : memref<2x32x32xi32, #tpu.memory_space<vmem>> -> memref<1x1x32xi32, #tpu.memory_space<vmem>>
    %110 = tpu.memref_squeeze %109 : memref<1x1x32xi32, #tpu.memory_space<vmem>> -> memref<32xi32, #tpu.memory_space<vmem>>
    %111 = tpu.memref_slice %arg7[%9] : memref<2x!tpu.dma_semaphore, #tpu.memory_space<semaphore_mem>> -> memref<1x!tpu.dma_semaphore, #tpu.memory_space<semaphore_mem>>
    %112 = tpu.memref_squeeze %111 : memref<1x!tpu.dma_semaphore, #tpu.memory_space<semaphore_mem>> -> memref<!tpu.dma_semaphore, #tpu.memory_space<semaphore_mem>>
    tpu.wait_dma2 semaphore(%112 : memref<!tpu.dma_semaphore, #tpu.memory_space<semaphore_mem>>) src(%108 : memref<32xi32, #tpu.memory_space<any>>) dst(%110 : memref<32xi32, #tpu.memory_space<vmem>>)
    %c0_i32_59 = arith.constant 0 : i32
    %c16_i32 = arith.constant 16 : i32
    %c0_i32_60 = arith.constant 0 : i32
    %113 = tpu.memref_slice %arg4[%c0_i32_59, %c0_i32_60] : memref<16x32xi32, #tpu.memory_space<any>> -> memref<1x32xi32, #tpu.memory_space<any>>
    %114 = tpu.memref_squeeze %113 : memref<1x32xi32, #tpu.memory_space<any>> -> memref<32xi32, #tpu.memory_space<any>>
    %c0_i32_61 = arith.constant 0 : i32
    %115 = tpu.memref_slice %arg6[%9, %c16_i32, %c0_i32_61] : memref<2x32x32xi32, #tpu.memory_space<vmem>> -> memref<1x1x32xi32, #tpu.memory_space<vmem>>
    %116 = tpu.memref_squeeze %115 : memref<1x1x32xi32, #tpu.memory_space<vmem>> -> memref<32xi32, #tpu.memory_space<vmem>>
    %117 = tpu.memref_slice %arg7[%9] : memref<2x!tpu.dma_semaphore, #tpu.memory_space<semaphore_mem>> -> memref<1x!tpu.dma_semaphore, #tpu.memory_space<semaphore_mem>>
    %118 = tpu.memref_squeeze %117 : memref<1x!tpu.dma_semaphore, #tpu.memory_space<semaphore_mem>> -> memref<!tpu.dma_semaphore, #tpu.memory_space<semaphore_mem>>
    tpu.wait_dma2 semaphore(%118 : memref<!tpu.dma_semaphore, #tpu.memory_space<semaphore_mem>>) src(%114 : memref<32xi32, #tpu.memory_space<any>>) dst(%116 : memref<32xi32, #tpu.memory_space<vmem>>)
    %c0_i32_62 = arith.constant 0 : i32
    %c17_i32 = arith.constant 17 : i32
    %c0_i32_63 = arith.constant 0 : i32
    %119 = tpu.memref_slice %arg4[%c0_i32_62, %c0_i32_63] : memref<16x32xi32, #tpu.memory_space<any>> -> memref<1x32xi32, #tpu.memory_space<any>>
    %120 = tpu.memref_squeeze %119 : memref<1x32xi32, #tpu.memory_space<any>> -> memref<32xi32, #tpu.memory_space<any>>
    %c0_i32_64 = arith.constant 0 : i32
    %121 = tpu.memref_slice %arg6[%9, %c17_i32, %c0_i32_64] : memref<2x32x32xi32, #tpu.memory_space<vmem>> -> memref<1x1x32xi32, #tpu.memory_space<vmem>>
    %122 = tpu.memref_squeeze %121 : memref<1x1x32xi32, #tpu.memory_space<vmem>> -> memref<32xi32, #tpu.memory_space<vmem>>
    %123 = tpu.memref_slice %arg7[%9] : memref<2x!tpu.dma_semaphore, #tpu.memory_space<semaphore_mem>> -> memref<1x!tpu.dma_semaphore, #tpu.memory_space<semaphore_mem>>
    %124 = tpu.memref_squeeze %123 : memref<1x!tpu.dma_semaphore, #tpu.memory_space<semaphore_mem>> -> memref<!tpu.dma_semaphore, #tpu.memory_space<semaphore_mem>>
    tpu.wait_dma2 semaphore(%124 : memref<!tpu.dma_semaphore, #tpu.memory_space<semaphore_mem>>) src(%120 : memref<32xi32, #tpu.memory_space<any>>) dst(%122 : memref<32xi32, #tpu.memory_space<vmem>>)
    %c0_i32_65 = arith.constant 0 : i32
    %c18_i32 = arith.constant 18 : i32
    %c0_i32_66 = arith.constant 0 : i32
    %125 = tpu.memref_slice %arg4[%c0_i32_65, %c0_i32_66] : memref<16x32xi32, #tpu.memory_space<any>> -> memref<1x32xi32, #tpu.memory_space<any>>
    %126 = tpu.memref_squeeze %125 : memref<1x32xi32, #tpu.memory_space<any>> -> memref<32xi32, #tpu.memory_space<any>>
    %c0_i32_67 = arith.constant 0 : i32
    %127 = tpu.memref_slice %arg6[%9, %c18_i32, %c0_i32_67] : memref<2x32x32xi32, #tpu.memory_space<vmem>> -> memref<1x1x32xi32, #tpu.memory_space<vmem>>
    %128 = tpu.memref_squeeze %127 : memref<1x1x32xi32, #tpu.memory_space<vmem>> -> memref<32xi32, #tpu.memory_space<vmem>>
    %129 = tpu.memref_slice %arg7[%9] : memref<2x!tpu.dma_semaphore, #tpu.memory_space<semaphore_mem>> -> memref<1x!tpu.dma_semaphore, #tpu.memory_space<semaphore_mem>>
    %130 = tpu.memref_squeeze %129 : memref<1x!tpu.dma_semaphore, #tpu.memory_space<semaphore_mem>> -> memref<!tpu.dma_semaphore, #tpu.memory_space<semaphore_mem>>
    tpu.wait_dma2 semaphore(%130 : memref<!tpu.dma_semaphore, #tpu.memory_space<semaphore_mem>>) src(%126 : memref<32xi32, #tpu.memory_space<any>>) dst(%128 : memref<32xi32, #tpu.memory_space<vmem>>)
    %c0_i32_68 = arith.constant 0 : i32
    %c19_i32 = arith.constant 19 : i32
    %c0_i32_69 = arith.constant 0 : i32
    %131 = tpu.memref_slice %arg4[%c0_i32_68, %c0_i32_69] : memref<16x32xi32, #tpu.memory_space<any>> -> memref<1x32xi32, #tpu.memory_space<any>>
    %132 = tpu.memref_squeeze %131 : memref<1x32xi32, #tpu.memory_space<any>> -> memref<32xi32, #tpu.memory_space<any>>
    %c0_i32_70 = arith.constant 0 : i32
    %133 = tpu.memref_slice %arg6[%9, %c19_i32, %c0_i32_70] : memref<2x32x32xi32, #tpu.memory_space<vmem>> -> memref<1x1x32xi32, #tpu.memory_space<vmem>>
    %134 = tpu.memref_squeeze %133 : memref<1x1x32xi32, #tpu.memory_space<vmem>> -> memref<32xi32, #tpu.memory_space<vmem>>
    %135 = tpu.memref_slice %arg7[%9] : memref<2x!tpu.dma_semaphore, #tpu.memory_space<semaphore_mem>> -> memref<1x!tpu.dma_semaphore, #tpu.memory_space<semaphore_mem>>
    %136 = tpu.memref_squeeze %135 : memref<1x!tpu.dma_semaphore, #tpu.memory_space<semaphore_mem>> -> memref<!tpu.dma_semaphore, #tpu.memory_space<semaphore_mem>>
    tpu.wait_dma2 semaphore(%136 : memref<!tpu.dma_semaphore, #tpu.memory_space<semaphore_mem>>) src(%132 : memref<32xi32, #tpu.memory_space<any>>) dst(%134 : memref<32xi32, #tpu.memory_space<vmem>>)
    %c0_i32_71 = arith.constant 0 : i32
    %c20_i32 = arith.constant 20 : i32
    %c0_i32_72 = arith.constant 0 : i32
    %137 = tpu.memref_slice %arg4[%c0_i32_71, %c0_i32_72] : memref<16x32xi32, #tpu.memory_space<any>> -> memref<1x32xi32, #tpu.memory_space<any>>
    %138 = tpu.memref_squeeze %137 : memref<1x32xi32, #tpu.memory_space<any>> -> memref<32xi32, #tpu.memory_space<any>>
    %c0_i32_73 = arith.constant 0 : i32
    %139 = tpu.memref_slice %arg6[%9, %c20_i32, %c0_i32_73] : memref<2x32x32xi32, #tpu.memory_space<vmem>> -> memref<1x1x32xi32, #tpu.memory_space<vmem>>
    %140 = tpu.memref_squeeze %139 : memref<1x1x32xi32, #tpu.memory_space<vmem>> -> memref<32xi32, #tpu.memory_space<vmem>>
    %141 = tpu.memref_slice %arg7[%9] : memref<2x!tpu.dma_semaphore, #tpu.memory_space<semaphore_mem>> -> memref<1x!tpu.dma_semaphore, #tpu.memory_space<semaphore_mem>>
    %142 = tpu.memref_squeeze %141 : memref<1x!tpu.dma_semaphore, #tpu.memory_space<semaphore_mem>> -> memref<!tpu.dma_semaphore, #tpu.memory_space<semaphore_mem>>
    tpu.wait_dma2 semaphore(%142 : memref<!tpu.dma_semaphore, #tpu.memory_space<semaphore_mem>>) src(%138 : memref<32xi32, #tpu.memory_space<any>>) dst(%140 : memref<32xi32, #tpu.memory_space<vmem>>)
    %c0_i32_74 = arith.constant 0 : i32
    %c21_i32 = arith.constant 21 : i32
    %c0_i32_75 = arith.constant 0 : i32
    %143 = tpu.memref_slice %arg4[%c0_i32_74, %c0_i32_75] : memref<16x32xi32, #tpu.memory_space<any>> -> memref<1x32xi32, #tpu.memory_space<any>>
    %144 = tpu.memref_squeeze %143 : memref<1x32xi32, #tpu.memory_space<any>> -> memref<32xi32, #tpu.memory_space<any>>
    %c0_i32_76 = arith.constant 0 : i32
    %145 = tpu.memref_slice %arg6[%9, %c21_i32, %c0_i32_76] : memref<2x32x32xi32, #tpu.memory_space<vmem>> -> memref<1x1x32xi32, #tpu.memory_space<vmem>>
    %146 = tpu.memref_squeeze %145 : memref<1x1x32xi32, #tpu.memory_space<vmem>> -> memref<32xi32, #tpu.memory_space<vmem>>
    %147 = tpu.memref_slice %arg7[%9] : memref<2x!tpu.dma_semaphore, #tpu.memory_space<semaphore_mem>> -> memref<1x!tpu.dma_semaphore, #tpu.memory_space<semaphore_mem>>
    %148 = tpu.memref_squeeze %147 : memref<1x!tpu.dma_semaphore, #tpu.memory_space<semaphore_mem>> -> memref<!tpu.dma_semaphore, #tpu.memory_space<semaphore_mem>>
    tpu.wait_dma2 semaphore(%148 : memref<!tpu.dma_semaphore, #tpu.memory_space<semaphore_mem>>) src(%144 : memref<32xi32, #tpu.memory_space<any>>) dst(%146 : memref<32xi32, #tpu.memory_space<vmem>>)
    %c0_i32_77 = arith.constant 0 : i32
    %c22_i32 = arith.constant 22 : i32
    %c0_i32_78 = arith.constant 0 : i32
    %149 = tpu.memref_slice %arg4[%c0_i32_77, %c0_i32_78] : memref<16x32xi32, #tpu.memory_space<any>> -> memref<1x32xi32, #tpu.memory_space<any>>
    %150 = tpu.memref_squeeze %149 : memref<1x32xi32, #tpu.memory_space<any>> -> memref<32xi32, #tpu.memory_space<any>>
    %c0_i32_79 = arith.constant 0 : i32
    %151 = tpu.memref_slice %arg6[%9, %c22_i32, %c0_i32_79] : memref<2x32x32xi32, #tpu.memory_space<vmem>> -> memref<1x1x32xi32, #tpu.memory_space<vmem>>
    %152 = tpu.memref_squeeze %151 : memref<1x1x32xi32, #tpu.memory_space<vmem>> -> memref<32xi32, #tpu.memory_space<vmem>>
    %153 = tpu.memref_slice %arg7[%9] : memref<2x!tpu.dma_semaphore, #tpu.memory_space<semaphore_mem>> -> memref<1x!tpu.dma_semaphore, #tpu.memory_space<semaphore_mem>>
    %154 = tpu.memref_squeeze %153 : memref<1x!tpu.dma_semaphore, #tpu.memory_space<semaphore_mem>> -> memref<!tpu.dma_semaphore, #tpu.memory_space<semaphore_mem>>
    tpu.wait_dma2 semaphore(%154 : memref<!tpu.dma_semaphore, #tpu.memory_space<semaphore_mem>>) src(%150 : memref<32xi32, #tpu.memory_space<any>>) dst(%152 : memref<32xi32, #tpu.memory_space<vmem>>)
    %c0_i32_80 = arith.constant 0 : i32
    %c23_i32 = arith.constant 23 : i32
    %c0_i32_81 = arith.constant 0 : i32
    %155 = tpu.memref_slice %arg4[%c0_i32_80, %c0_i32_81] : memref<16x32xi32, #tpu.memory_space<any>> -> memref<1x32xi32, #tpu.memory_space<any>>
    %156 = tpu.memref_squeeze %155 : memref<1x32xi32, #tpu.memory_space<any>> -> memref<32xi32, #tpu.memory_space<any>>
    %c0_i32_82 = arith.constant 0 : i32
    %157 = tpu.memref_slice %arg6[%9, %c23_i32, %c0_i32_82] : memref<2x32x32xi32, #tpu.memory_space<vmem>> -> memref<1x1x32xi32, #tpu.memory_space<vmem>>
    %158 = tpu.memref_squeeze %157 : memref<1x1x32xi32, #tpu.memory_space<vmem>> -> memref<32xi32, #tpu.memory_space<vmem>>
    %159 = tpu.memref_slice %arg7[%9] : memref<2x!tpu.dma_semaphore, #tpu.memory_space<semaphore_mem>> -> memref<1x!tpu.dma_semaphore, #tpu.memory_space<semaphore_mem>>
    %160 = tpu.memref_squeeze %159 : memref<1x!tpu.dma_semaphore, #tpu.memory_space<semaphore_mem>> -> memref<!tpu.dma_semaphore, #tpu.memory_space<semaphore_mem>>
    tpu.wait_dma2 semaphore(%160 : memref<!tpu.dma_semaphore, #tpu.memory_space<semaphore_mem>>) src(%156 : memref<32xi32, #tpu.memory_space<any>>) dst(%158 : memref<32xi32, #tpu.memory_space<vmem>>)
    %c0_i32_83 = arith.constant 0 : i32
    %c24_i32 = arith.constant 24 : i32
    %c0_i32_84 = arith.constant 0 : i32
    %161 = tpu.memref_slice %arg4[%c0_i32_83, %c0_i32_84] : memref<16x32xi32, #tpu.memory_space<any>> -> memref<1x32xi32, #tpu.memory_space<any>>
    %162 = tpu.memref_squeeze %161 : memref<1x32xi32, #tpu.memory_space<any>> -> memref<32xi32, #tpu.memory_space<any>>
    %c0_i32_85 = arith.constant 0 : i32
    %163 = tpu.memref_slice %arg6[%9, %c24_i32, %c0_i32_85] : memref<2x32x32xi32, #tpu.memory_space<vmem>> -> memref<1x1x32xi32, #tpu.memory_space<vmem>>
    %164 = tpu.memref_squeeze %163 : memref<1x1x32xi32, #tpu.memory_space<vmem>> -> memref<32xi32, #tpu.memory_space<vmem>>
    %165 = tpu.memref_slice %arg7[%9] : memref<2x!tpu.dma_semaphore, #tpu.memory_space<semaphore_mem>> -> memref<1x!tpu.dma_semaphore, #tpu.memory_space<semaphore_mem>>
    %166 = tpu.memref_squeeze %165 : memref<1x!tpu.dma_semaphore, #tpu.memory_space<semaphore_mem>> -> memref<!tpu.dma_semaphore, #tpu.memory_space<semaphore_mem>>
    tpu.wait_dma2 semaphore(%166 : memref<!tpu.dma_semaphore, #tpu.memory_space<semaphore_mem>>) src(%162 : memref<32xi32, #tpu.memory_space<any>>) dst(%164 : memref<32xi32, #tpu.memory_space<vmem>>)
    %c0_i32_86 = arith.constant 0 : i32
    %c25_i32 = arith.constant 25 : i32
    %c0_i32_87 = arith.constant 0 : i32
    %167 = tpu.memref_slice %arg4[%c0_i32_86, %c0_i32_87] : memref<16x32xi32, #tpu.memory_space<any>> -> memref<1x32xi32, #tpu.memory_space<any>>
    %168 = tpu.memref_squeeze %167 : memref<1x32xi32, #tpu.memory_space<any>> -> memref<32xi32, #tpu.memory_space<any>>
    %c0_i32_88 = arith.constant 0 : i32
    %169 = tpu.memref_slice %arg6[%9, %c25_i32, %c0_i32_88] : memref<2x32x32xi32, #tpu.memory_space<vmem>> -> memref<1x1x32xi32, #tpu.memory_space<vmem>>
    %170 = tpu.memref_squeeze %169 : memref<1x1x32xi32, #tpu.memory_space<vmem>> -> memref<32xi32, #tpu.memory_space<vmem>>
    %171 = tpu.memref_slice %arg7[%9] : memref<2x!tpu.dma_semaphore, #tpu.memory_space<semaphore_mem>> -> memref<1x!tpu.dma_semaphore, #tpu.memory_space<semaphore_mem>>
    %172 = tpu.memref_squeeze %171 : memref<1x!tpu.dma_semaphore, #tpu.memory_space<semaphore_mem>> -> memref<!tpu.dma_semaphore, #tpu.memory_space<semaphore_mem>>
    tpu.wait_dma2 semaphore(%172 : memref<!tpu.dma_semaphore, #tpu.memory_space<semaphore_mem>>) src(%168 : memref<32xi32, #tpu.memory_space<any>>) dst(%170 : memref<32xi32, #tpu.memory_space<vmem>>)
    %c0_i32_89 = arith.constant 0 : i32
    %c26_i32 = arith.constant 26 : i32
    %c0_i32_90 = arith.constant 0 : i32
    %173 = tpu.memref_slice %arg4[%c0_i32_89, %c0_i32_90] : memref<16x32xi32, #tpu.memory_space<any>> -> memref<1x32xi32, #tpu.memory_space<any>>
    %174 = tpu.memref_squeeze %173 : memref<1x32xi32, #tpu.memory_space<any>> -> memref<32xi32, #tpu.memory_space<any>>
    %c0_i32_91 = arith.constant 0 : i32
    %175 = tpu.memref_slice %arg6[%9, %c26_i32, %c0_i32_91] : memref<2x32x32xi32, #tpu.memory_space<vmem>> -> memref<1x1x32xi32, #tpu.memory_space<vmem>>
    %176 = tpu.memref_squeeze %175 : memref<1x1x32xi32, #tpu.memory_space<vmem>> -> memref<32xi32, #tpu.memory_space<vmem>>
    %177 = tpu.memref_slice %arg7[%9] : memref<2x!tpu.dma_semaphore, #tpu.memory_space<semaphore_mem>> -> memref<1x!tpu.dma_semaphore, #tpu.memory_space<semaphore_mem>>
    %178 = tpu.memref_squeeze %177 : memref<1x!tpu.dma_semaphore, #tpu.memory_space<semaphore_mem>> -> memref<!tpu.dma_semaphore, #tpu.memory_space<semaphore_mem>>
    tpu.wait_dma2 semaphore(%178 : memref<!tpu.dma_semaphore, #tpu.memory_space<semaphore_mem>>) src(%174 : memref<32xi32, #tpu.memory_space<any>>) dst(%176 : memref<32xi32, #tpu.memory_space<vmem>>)
    %c0_i32_92 = arith.constant 0 : i32
    %c27_i32 = arith.constant 27 : i32
    %c0_i32_93 = arith.constant 0 : i32
    %179 = tpu.memref_slice %arg4[%c0_i32_92, %c0_i32_93] : memref<16x32xi32, #tpu.memory_space<any>> -> memref<1x32xi32, #tpu.memory_space<any>>
    %180 = tpu.memref_squeeze %179 : memref<1x32xi32, #tpu.memory_space<any>> -> memref<32xi32, #tpu.memory_space<any>>
    %c0_i32_94 = arith.constant 0 : i32
    %181 = tpu.memref_slice %arg6[%9, %c27_i32, %c0_i32_94] : memref<2x32x32xi32, #tpu.memory_space<vmem>> -> memref<1x1x32xi32, #tpu.memory_space<vmem>>
    %182 = tpu.memref_squeeze %181 : memref<1x1x32xi32, #tpu.memory_space<vmem>> -> memref<32xi32, #tpu.memory_space<vmem>>
    %183 = tpu.memref_slice %arg7[%9] : memref<2x!tpu.dma_semaphore, #tpu.memory_space<semaphore_mem>> -> memref<1x!tpu.dma_semaphore, #tpu.memory_space<semaphore_mem>>
    %184 = tpu.memref_squeeze %183 : memref<1x!tpu.dma_semaphore, #tpu.memory_space<semaphore_mem>> -> memref<!tpu.dma_semaphore, #tpu.memory_space<semaphore_mem>>
    tpu.wait_dma2 semaphore(%184 : memref<!tpu.dma_semaphore, #tpu.memory_space<semaphore_mem>>) src(%180 : memref<32xi32, #tpu.memory_space<any>>) dst(%182 : memref<32xi32, #tpu.memory_space<vmem>>)
    %c0_i32_95 = arith.constant 0 : i32
    %c28_i32 = arith.constant 28 : i32
    %c0_i32_96 = arith.constant 0 : i32
    %185 = tpu.memref_slice %arg4[%c0_i32_95, %c0_i32_96] : memref<16x32xi32, #tpu.memory_space<any>> -> memref<1x32xi32, #tpu.memory_space<any>>
    %186 = tpu.memref_squeeze %185 : memref<1x32xi32, #tpu.memory_space<any>> -> memref<32xi32, #tpu.memory_space<any>>
    %c0_i32_97 = arith.constant 0 : i32
    %187 = tpu.memref_slice %arg6[%9, %c28_i32, %c0_i32_97] : memref<2x32x32xi32, #tpu.memory_space<vmem>> -> memref<1x1x32xi32, #tpu.memory_space<vmem>>
    %188 = tpu.memref_squeeze %187 : memref<1x1x32xi32, #tpu.memory_space<vmem>> -> memref<32xi32, #tpu.memory_space<vmem>>
    %189 = tpu.memref_slice %arg7[%9] : memref<2x!tpu.dma_semaphore, #tpu.memory_space<semaphore_mem>> -> memref<1x!tpu.dma_semaphore, #tpu.memory_space<semaphore_mem>>
    %190 = tpu.memref_squeeze %189 : memref<1x!tpu.dma_semaphore, #tpu.memory_space<semaphore_mem>> -> memref<!tpu.dma_semaphore, #tpu.memory_space<semaphore_mem>>
    tpu.wait_dma2 semaphore(%190 : memref<!tpu.dma_semaphore, #tpu.memory_space<semaphore_mem>>) src(%186 : memref<32xi32, #tpu.memory_space<any>>) dst(%188 : memref<32xi32, #tpu.memory_space<vmem>>)
    %c0_i32_98 = arith.constant 0 : i32
    %c29_i32 = arith.constant 29 : i32
    %c0_i32_99 = arith.constant 0 : i32
    %191 = tpu.memref_slice %arg4[%c0_i32_98, %c0_i32_99] : memref<16x32xi32, #tpu.memory_space<any>> -> memref<1x32xi32, #tpu.memory_space<any>>
    %192 = tpu.memref_squeeze %191 : memref<1x32xi32, #tpu.memory_space<any>> -> memref<32xi32, #tpu.memory_space<any>>
    %c0_i32_100 = arith.constant 0 : i32
    %193 = tpu.memref_slice %arg6[%9, %c29_i32, %c0_i32_100] : memref<2x32x32xi32, #tpu.memory_space<vmem>> -> memref<1x1x32xi32, #tpu.memory_space<vmem>>
    %194 = tpu.memref_squeeze %193 : memref<1x1x32xi32, #tpu.memory_space<vmem>> -> memref<32xi32, #tpu.memory_space<vmem>>
    %195 = tpu.memref_slice %arg7[%9] : memref<2x!tpu.dma_semaphore, #tpu.memory_space<semaphore_mem>> -> memref<1x!tpu.dma_semaphore, #tpu.memory_space<semaphore_mem>>
    %196 = tpu.memref_squeeze %195 : memref<1x!tpu.dma_semaphore, #tpu.memory_space<semaphore_mem>> -> memref<!tpu.dma_semaphore, #tpu.memory_space<semaphore_mem>>
    tpu.wait_dma2 semaphore(%196 : memref<!tpu.dma_semaphore, #tpu.memory_space<semaphore_mem>>) src(%192 : memref<32xi32, #tpu.memory_space<any>>) dst(%194 : memref<32xi32, #tpu.memory_space<vmem>>)
    %c0_i32_101 = arith.constant 0 : i32
    %c30_i32 = arith.constant 30 : i32
    %c0_i32_102 = arith.constant 0 : i32
    %197 = tpu.memref_slice %arg4[%c0_i32_101, %c0_i32_102] : memref<16x32xi32, #tpu.memory_space<any>> -> memref<1x32xi32, #tpu.memory_space<any>>
    %198 = tpu.memref_squeeze %197 : memref<1x32xi32, #tpu.memory_space<any>> -> memref<32xi32, #tpu.memory_space<any>>
    %c0_i32_103 = arith.constant 0 : i32
    %199 = tpu.memref_slice %arg6[%9, %c30_i32, %c0_i32_103] : memref<2x32x32xi32, #tpu.memory_space<vmem>> -> memref<1x1x32xi32, #tpu.memory_space<vmem>>
    %200 = tpu.memref_squeeze %199 : memref<1x1x32xi32, #tpu.memory_space<vmem>> -> memref<32xi32, #tpu.memory_space<vmem>>
    %201 = tpu.memref_slice %arg7[%9] : memref<2x!tpu.dma_semaphore, #tpu.memory_space<semaphore_mem>> -> memref<1x!tpu.dma_semaphore, #tpu.memory_space<semaphore_mem>>
    %202 = tpu.memref_squeeze %201 : memref<1x!tpu.dma_semaphore, #tpu.memory_space<semaphore_mem>> -> memref<!tpu.dma_semaphore, #tpu.memory_space<semaphore_mem>>
    tpu.wait_dma2 semaphore(%202 : memref<!tpu.dma_semaphore, #tpu.memory_space<semaphore_mem>>) src(%198 : memref<32xi32, #tpu.memory_space<any>>) dst(%200 : memref<32xi32, #tpu.memory_space<vmem>>)
    %c0_i32_104 = arith.constant 0 : i32
    %c31_i32 = arith.constant 31 : i32
    %c0_i32_105 = arith.constant 0 : i32
    %203 = tpu.memref_slice %arg4[%c0_i32_104, %c0_i32_105] : memref<16x32xi32, #tpu.memory_space<any>> -> memref<1x32xi32, #tpu.memory_space<any>>
    %204 = tpu.memref_squeeze %203 : memref<1x32xi32, #tpu.memory_space<any>> -> memref<32xi32, #tpu.memory_space<any>>
    %c0_i32_106 = arith.constant 0 : i32
    %205 = tpu.memref_slice %arg6[%9, %c31_i32, %c0_i32_106] : memref<2x32x32xi32, #tpu.memory_space<vmem>> -> memref<1x1x32xi32, #tpu.memory_space<vmem>>
    %206 = tpu.memref_squeeze %205 : memref<1x1x32xi32, #tpu.memory_space<vmem>> -> memref<32xi32, #tpu.memory_space<vmem>>
    %207 = tpu.memref_slice %arg7[%9] : memref<2x!tpu.dma_semaphore, #tpu.memory_space<semaphore_mem>> -> memref<1x!tpu.dma_semaphore, #tpu.memory_space<semaphore_mem>>
    %208 = tpu.memref_squeeze %207 : memref<1x!tpu.dma_semaphore, #tpu.memory_space<semaphore_mem>> -> memref<!tpu.dma_semaphore, #tpu.memory_space<semaphore_mem>>
    tpu.wait_dma2 semaphore(%208 : memref<!tpu.dma_semaphore, #tpu.memory_space<semaphore_mem>>) src(%204 : memref<32xi32, #tpu.memory_space<any>>) dst(%206 : memref<32xi32, #tpu.memory_space<vmem>>)
    %209 = arith.index_cast %9 : i32 to index
    %c0 = arith.constant 0 : index
    %c0_107 = arith.constant 0 : index
    %210 = vector.load %arg6[%209, %c0, %c0_107] : memref<2x32x32xi32, #tpu.memory_space<vmem>>, vector<1x32x32xi32>
    %211 = vector.shape_cast %210 : vector<1x32x32xi32> to vector<32x32xi32>
    %c255_i32 = arith.constant 255 : i32
    %212 = vector.broadcast %c255_i32 : i32 to vector<32x32xi32>
    %213 = arith.andi %211, %212 : vector<32x32xi32>
    %214 = arith.sitofp %213 : vector<32x32xi32> to vector<32x32xf32>
    %c8_i32_108 = arith.constant 8 : i32
    %215 = vector.broadcast %c8_i32_108 : i32 to vector<32x32xi32>
    %216 = arith.shrsi %211, %215 : vector<32x32xi32>
    %c255_i32_109 = arith.constant 255 : i32
    %217 = vector.broadcast %c255_i32_109 : i32 to vector<32x32xi32>
    %218 = arith.andi %216, %217 : vector<32x32xi32>
    %219 = arith.sitofp %218 : vector<32x32xi32> to vector<32x32xf32>
    %c16_i32_110 = arith.constant 16 : i32
    %220 = vector.broadcast %c16_i32_110 : i32 to vector<32x32xi32>
    %221 = arith.shrsi %211, %220 : vector<32x32xi32>
    %c255_i32_111 = arith.constant 255 : i32
    %222 = vector.broadcast %c255_i32_111 : i32 to vector<32x32xi32>
    %223 = arith.andi %221, %222 : vector<32x32xi32>
    %224 = arith.sitofp %223 : vector<32x32xi32> to vector<32x32xf32>
    %c24_i32_112 = arith.constant 24 : i32
    %225 = vector.broadcast %c24_i32_112 : i32 to vector<32x32xi32>
    %226 = arith.shrsi %211, %225 : vector<32x32xi32>
    %c255_i32_113 = arith.constant 255 : i32
    %227 = vector.broadcast %c255_i32_113 : i32 to vector<32x32xi32>
    %228 = arith.andi %226, %227 : vector<32x32xi32>
    %229 = arith.sitofp %228 : vector<32x32xi32> to vector<32x32xf32>
    %230 = tpu.concatenate %214, %219, %224, %229 in 1 : vector<32x32xf32>, vector<32x32xf32>, vector<32x32xf32>, vector<32x32xf32> -> vector<32x128xf32>
    %c0_114 = arith.constant 0 : index
    %c0_115 = arith.constant 0 : index
    %c0_116 = arith.constant 0 : index
    %231 = vector.load %arg5[%c0_114, %c0_115, %c0_116] : memref<1x8x128xf32, #tpu.memory_space<vmem>>, vector<1x8x128xf32>
    %232 = vector.shape_cast %231 : vector<1x8x128xf32> to vector<8x128xf32>
    %c0_117 = arith.constant 0 : index
    %c0_118 = arith.constant 0 : index
    %c0_119 = arith.constant 0 : index
    %c0_120 = arith.constant 0 : index
    %233 = vector.load %arg3[%c0_117, %c0_118, %c0_119, %c0_120] : memref<1x1x8x32xf32, #tpu.memory_space<vmem>>, vector<1x1x8x32xf32>
    %234 = vector.shape_cast %233 : vector<1x1x8x32xf32> to vector<8x32xf32>
    %cst = arith.constant dense<0.000000e+00> : vector<8x128xf32>
    %235 = tpu.matmul %234, %230, %cst {dimension_numbers = #tpu.dot_dimension_numbers<[1], [0], [0], [1], [0, 0, 1, 1], [], []>} : vector<8x32xf32>, vector<32x128xf32>, vector<8x128xf32> -> vector<8x128xf32>
    %236 = arith.addf %232, %235 : vector<8x128xf32>
    %c0_121 = arith.constant 0 : index
    %c0_122 = arith.constant 0 : index
    %c0_123 = arith.constant 0 : index
    %237 = vector.load %arg5[%c0_121, %c0_122, %c0_123] : memref<1x8x128xf32, #tpu.memory_space<vmem>>, vector<1x8x128xf32>
    %238 = vector.shape_cast %237 : vector<1x8x128xf32> to vector<8x128xf32>
    %239 = vector.shape_cast %236 : vector<8x128xf32> to vector<1x8x128xf32>
    tpu.vector_store %arg5[%c0_121, %c0_122, %c0_123], %239 {strides = array<i32>} : memref<1x8x128xf32, #tpu.memory_space<vmem>>, vector<1x8x128xf32>,
    return
  }
  func.func @transform_0(%arg0: i32, %arg1: i32, %arg2: memref<64xi32, #tpu.memory_space<smem>>) -> (i32, i32, i32, i32) {
    %c0_i32 = arith.constant 0 : i32
    %c0_i32_0 = arith.constant 0 : i32
    %c0_i32_1 = arith.constant 0 : i32
    return %arg0, %arg1, %c0_i32, %c0_i32_0 : i32, i32, i32, i32
  }
  func.func @transform_2(%arg0: i32, %arg1: i32, %arg2: memref<64xi32, #tpu.memory_space<smem>>) -> (i32, i32, i32) {
    %c0_i32 = arith.constant 0 : i32
    %c0_i32_0 = arith.constant 0 : i32
    %c0_i32_1 = arith.constant 0 : i32
    return %arg0, %c0_i32, %c0_i32_0 : i32, i32, i32
  }
}

</mosaic_0001>

<bundles_post_ra>
// kernel: tpu_custom_call.1
= control target key start
LH: loop header
LB: loop body
LE: loop exit
PB: predicated region body
PF: predicated region fallthrough
CT: control target
= control target key end

     0   :  { %s2882_s12 = smov [#allocation5]   ;;  %s3647_s0 = inlined_call_operand.hbm [shape: s32[64], index: 0, kind: input, shape index: {}]   ;;  %s3648_s1 = inlined_call_operand.hbm [shape: f32[2,1,8,32], index: 1, kind: input, shape index: {}]   ;;  %s3649_s2 = inlined_call_operand.hbm [shape: s32[16,32], index: 2, kind: input, shape index: {}]   ;;  %s3650_s3 = inlined_call_operand.hbm [shape: f32[2,8,128], index: 3, kind: output, shape index: {}]  }
   0x1   :  { %3655 = sst [smem:[#allocation148_spill]] %s3648_s1 }
   0x2   :  { %9 = dma.hbm_to_smem %s3647_s0, 16, %s2882_s12, [#allocation4] }
   0x3   :  { %2846 = dma.done.wait [#allocation4], 16 }
   0x4   :  { %2847 = vsyncadd [#allocation4], 4294967280 }
   0x5   :  { %11 = sfence }
   0x6   :  { %12 = vsyncpa [#allocation7], 0 }
   0x7   :  { %14 = vsyncpa [#allocation7 + $0x1], 0 }
   0x8   :  { %15 = vsyncpa [#allocation8], 0 }
   0x9   :  { %17 = vsyncpa [#allocation8 + $0x1], 0  ;;  %s2945_s15 = smov 0   ;;  %s2947_s16 = smov 0  }
   0xa   :  { %s2949_s17 = smov 0   ;;  %s2951_s18 = smov 0  }
   0xb   :  { %s2953_s19 = smov 0   ;;  %s2955_s20 = smov 0  }
   0xc LB: > { %3656 = sst [smem:[#allocation144_spill]] %s2868_s17  ;;  %s1821_s0 = sadd.s32 4294967295, %s2880_s20   ;;  %s2880_s20 = sphi %s2955_s20, %s23_s20   ;;  %s2876_s19 = sphi %s2953_s19, %s3672_s19   ;;  %s2872_s18 = sphi %s2951_s18, %s3671_s18   ;;  %s2868_s17 = sphi %s2949_s17, %s3670_s17   ;;  %s2864_s16 = sphi %s2947_s16, %s3674_s16   ;;  %s2860_s15 = sphi %s2945_s15, %s3673_s15  }
   0xd   : > { %3657 = sst [smem:[#allocation145_spill]] %s2876_s19  ;;  %s1822_s21 = sadd.s32 4294967294, %s2880_s20  }
   0xe   : > { %s35_s22 = sadd.s32 1, %s2876_s19  ;;  %s44_s23 = sadd.s32 1, %s2868_s17 }
   0xf   : > { %p37_p0 = scmp.ge.s32.totalorder %s35_s22, 2  ;;  %p51_p1 = scmp.ne.s32.totalorder %s2868_s17, %s2864_s16 }
  0x10   : > { %p52_p2 = scmp.eq.s32.totalorder %s2880_s20, 0  ;;  %p57_p3 = scmp.ne.s32.totalorder %s2864_s16, %s2860_s15 }
  0x11   : > { %s3676_s22 = smov (%p37_p0, %s35_s22), 0  ;;  %p58_p5 = scmp.eq.s32.totalorder %s1821_s0, 0 }
  0x12   : > { %3658 = sst [smem:[#allocation146_spill]] %s3676_s22  ;;  %p2986_p4 = por %p52_p2, %p51_p1 }
  0x13   : > { %s39_s25 = ssub.s32 %s2876_s19, %s3676_s22  ;;  %p81_p6 = scmp.eq.s32.totalorder %s1821_s0, 1 }
  0x14   : > { %p42_p7 = scmp.eq.s32.totalorder %s39_s25, 0  ;;  %p2992_p8 = por %p58_p5, %p57_p3 }
  0x15   : > { %p2996_p9 = por %p81_p6, %p51_p1  ;;  %p87_p10 = scmp.eq.s32.totalorder %s1822_s21, 1 }
  0x16   : > { %s3001_s28 = scalar_select %p42_p7, %s2868_s17, %s44_s23  }
  0x17   : > { %p3003_p11 = por %p87_p10, %p57_p3  ;;  %p1968_p13 = scmp.lt.s32.totalorder %s2880_s20, 2 }
  0x18   : > { %3662 = sst [smem:[#allocation147_spill]] %s3001_s28  ;;  %s107_s30 = sand.u32 1, %s2868_s17  }
  0x19   : > { %s3663_s29 = scalar_select %p3003_p11, 1, 0 }
  0x1a   : > { %s1825_s4 = sshll.u32 %s107_s30, 3  ;;  %s1826_s5 = sshll.u32 %s2876_s19, 7 }
  0x1b   : > { %s3664_s1 = sld [smem:[#allocation148_spill]]  ;;  %s111_s9 = scalar_lea.vmem [#allocation6], %s1825_s4 }
  0x1c   : > { %s119_s10 = sshll.u32 %s111_s9, 4  ;;  %p3016_p0 = pnand %p1968_p13, %p2986_p4  ;;  %s120_s10 = int_to_ptr.vmem [resolvable:$true] %s119_s10 }
  0x1d   : > { %p1827_p1 = scmp.ge.s32.totalorder %s2880_s20, 1  ;;  %p124_p2 = scmp.lt.s32.totalorder %s2880_s20, 3 }
  0x1e   : > { %s108_s12 = scalar_lea.sflag [#allocation7], %s107_s30  ;;  %p2066_p3 = pneg %p3016_p0 }
  0x1f   : > { %s2077_s13 = scalar_lea.vmem %s120_s10, 128  ;;  %s2883_s14 = smov [#allocation6]  }
  0x20   : > { %p2078_p5 = scmp.ne.s32.totalorder %s120_s10, %s2077_s13  ;;  %s2082_s0 = sshll.u32 %s2883_s14, 4  ;;  %s2083_s0 = int_to_ptr.vmem [resolvable:$false] %s2082_s0 }
  0x21   : > { %s117_s8 = scalar_lea.hbm %s3664_s1, %s1826_s5  ;;  %s2084_s21 = scalar_lea.vmem %s2083_s0, 256 }
  0x22   : > { %p2080_p6 = pnand %p2078_p5, %p2066_p3  ;;  %p2085_p10 = scmp.lt.s32.totalorder %s120_s10, %s2083_s0 }
  0x23   : > { %p2086_p12 = scmp.lt.s32.totalorder %s2084_s21, %s2077_s13 }
  0x24   : > { %p2081_p7 = pneg %p2080_p6 }
  0x25   : > { %p2087_p4 = por %p2086_p12, %p2085_p10 }
  0x27   : > { %p2088_p13 = pnand %p2087_p4, %p2081_p7 }
  0x29   : > { %2091 = shalt.err (!%p2088_p13)
}
  0x2a   : > { %1963 = dma.hbm_to_vmem [thread:$0]  (!%p3016_p0), %s117_s8, 128, %s120_s10, %s108_s12  }
  0x2b   : > { %p125_p11 = pnand %p1827_p1, %p124_p2 }
  0x2c   : > { %s3031_s23 = sand.u32 (!%p125_p11), 1, %s2864_s16  }
  0x2d   : > { %128 = sbr.rel (%p125_p11) target bundleno = 1058 (0x422), region = 24  ;;  %s3651_s24 = sshll.u32 (!%p125_p11), %s3031_s23, 3 }
  0x2e   : > { %s131_s25 = scalar_lea.sflag (!%p125_p11), [#allocation7], %s3031_s23  ;;  %s3037_s30 = scalar_lea.vmem (!%p125_p11), [#allocation6], %s3651_s24 }
  0x32   : > { %2849 = dma.done.wait (%p2992_p8), %s131_s25, 128  }
  0x33   : > { %2851 = vsyncadd (%p2992_p8), %s131_s25, 4294967168  ;;  %s3044_s4 = sshll.u32 %s2872_s18, 5  ;;  %s2884_s6 = smov [#allocation2]  }
  0x34   : > { %s171_s5 = sld [smem:[#allocation5 + %s3044_s4]]  ;;  %s181_s7 = sshll.u32 %s2884_s6, 4  ;;  %s3047_s7 = int_to_ptr.vmem [resolvable:$true] %s181_s7 }
  0x35   : > { %s185_s8 = sadd.s32 1, %s3044_s4  ;;  %s2885_s10 = smov [#allocation2 + $0x1]  }
  0x36   : > { %s3050_s9 = sld [smem:[#allocation5 + %s185_s8]]  ;;  %s197_s11 = sshll.u32 %s2885_s10, 4  ;;  %s3053_s11 = int_to_ptr.vmem [resolvable:$true] %s197_s11 }
  0x37   : > { %s201_s12 = sadd.s32 2, %s3044_s4  ;;  %s217_s13 = sadd.s32 3, %s3044_s4 }
  0x38   : > { %s3055_s26 = sld [smem:[#allocation5 + %s201_s12]]  ;;  %s2886_s0 = smov [#allocation2 + $0x2]  }
  0x39   : > { %s213_s21 = sshll.u32 %s2886_s0, 4  ;;  %s3066_s10 = scalar_lea.hbm %s3649_s2, 256  ;;  %s3061_s21 = int_to_ptr.vmem [resolvable:$true] %s213_s21 }
  0x3a   : > { %s1831_s14 = sshll.u32 %s171_s5, 4 }
  0x3b   : > { %s173_s6 = scalar_lea.hbm %s3649_s2, %s1831_s14 }
  0x3c   : > { %s2092_s1 = scalar_lea.hbm %s173_s6, 16  ;;  %p2095_p11 = scmp.lt.s32.totalorder %s173_s6, %s3649_s2 }
  0x3d   : > { %p2093_p8 = scmp.ne.s32.totalorder %s173_s6, %s2092_s1  ;;  %p2096_p12 = scmp.lt.s32.totalorder %s3066_s10, %s2092_s1 }
  0x3f   : > { %p2097_p0 = por %p2096_p12, %p2095_p11 }
  0x41   : > { %p2098_p1 = pnand %p2097_p0, %p2093_p8 }
  0x43   : > { %2101 = shalt.err (!%p2098_p1)  }
  0x44   : > { %s2102_s24 = scalar_lea.vmem %s3047_s7, 16  ;;  %s3075_s5 = scalar_lea.vmem %s3047_s7, 1024 }
  0x45   : > { %p2103_p2 = scmp.ne.s32.totalorder %s3047_s7, %s2102_s24  ;;  %p2107_p3 = scmp.lt.s32.totalorder %s3047_s7, %s3047_s7 }
  0x46   : > { %p2108_p5 = scmp.lt.s32.totalorder %s3075_s5, %s2102_s24 }
  0x48   : > { %p2109_p6 = por %p2108_p5, %p2107_p3 }
  0x4a   : > { %p2110_p7 = pnand %p2109_p6, %p2103_p2 }
  0x4c   : > { %2113 = shalt.err (!%p2110_p7)  }
  0x4d   : > { %184 = dma.hbm_to_vmem [thread:$0]  %s173_s6, 16, %s3047_s7, [#allocation3] }
  0x4e   : > { %s1832_s1 = sshll.u32 %s3050_s9, 4  ;;  %s3082_s19 = sld [smem:[#allocation5 + %s217_s13]] }
  0x4f   : > { %s188_s0 = scalar_lea.hbm %s3649_s2, %s1832_s1  ;;  %s1833_s25 = sshll.u32 %s3055_s26, 4 }
  0x50   : > { %s2114_s8 = scalar_lea.hbm %s188_s0, 16  ;;  %p2117_p4 = scmp.lt.s32.totalorder %s188_s0, %s3649_s2 }
  0x51   : > { %p2115_p10 = scmp.ne.s32.totalorder %s188_s0, %s2114_s8  ;;  %p2118_p13 = scmp.lt.s32.totalorder %s3066_s10, %s2114_s8 }
  0x53   : > { %p2119_p8 = por %p2118_p13, %p2117_p4 }
  0x55   : > { %p2120_p11 = pnand %p2119_p8, %p2115_p10 }
  0x57   : > { %2123 = shalt.err (!%p2120_p11)  }
  0x58   : > { %s2124_s9 = scalar_lea.vmem %s3053_s11, 16  ;;  %p2129_p0 = scmp.lt.s32.totalorder %s3053_s11, %s3047_s7 }
  0x59   : > { %p2125_p12 = scmp.ne.s32.totalorder %s3053_s11, %s2124_s9  ;;  %p2130_p1 = scmp.lt.s32.totalorder %s3075_s5, %s2124_s9 }
  0x5b   : > { %p2131_p2 = por %p2130_p1, %p2129_p0 }
  0x5d   : > { %p2132_p3 = pnand %p2131_p2, %p2125_p12 }
  0x5f   : > { %2135 = shalt.err (!%p2132_p3)  }
  0x60   : > { %200 = dma.hbm_to_vmem [thread:$0]  %s188_s0, 16, %s3053_s11, [#allocation3] }
  0x61   : > { %s204_s6 = scalar_lea.hbm %s3649_s2, %s1833_s25 }
  0x62   : > { %s2136_s1 = scalar_lea.hbm %s204_s6, 16  ;;  %p2139_p6 = scmp.lt.s32.totalorder %s204_s6, %s3649_s2 }
  0x63   : > { %p2137_p5 = scmp.ne.s32.totalorder %s204_s6, %s2136_s1  ;;  %p2140_p7 = scmp.lt.s32.totalorder %s3066_s10, %s2136_s1 }
  0x65   : > { %p2141_p10 = por %p2140_p7, %p2139_p6 }
  0x67   : > { %p2142_p4 = pnand %p2141_p10, %p2137_p5 }
  0x69   : > { %2145 = shalt.err (!%p2142_p4)  }
  0x6a   : > { %s2146_s11 = scalar_lea.vmem %s3061_s21, 16  ;;  %p2151_p8 = scmp.lt.s32.totalorder %s3061_s21, %s3047_s7 }
  0x6b   : > { %p2147_p13 = scmp.ne.s32.totalorder %s3061_s21, %s2146_s11  ;;  %p2152_p11 = scmp.lt.s32.totalorder %s3075_s5, %s2146_s11 }
  0x6d   : > { %p2153_p12 = por %p2152_p11, %p2151_p8 }
  0x6f   : > { %p2154_p0 = pnand %p2153_p12, %p2147_p13 }
  0x71   : > { %2157 = shalt.err (!%p2154_p0)  }
  0x72   : > { %216 = dma.hbm_to_vmem [thread:$0]  %s204_s6, 16, %s3061_s21, [#allocation3] }
  0x73   : > { %s2887_s0 = smov [#allocation2 + $0x3]   ;;  %s233_s8 = sadd.s32 4, %s3044_s4 }
  0x74   : > { %s229_s25 = sshll.u32 %s2887_s0, 4  ;;  %s1834_s12 = sshll.u32 %s3082_s19, 4  ;;  %s230_s25 = int_to_ptr.vmem [resolvable:$true] %s229_s25 }
  0x75   : > { %s220_s26 = scalar_lea.hbm %s3649_s2, %s1834_s12  ;;  %s234_s13 = sld [smem:[#allocation5 + %s233_s8]] }
  0x76   : > { %s2158_s1 = scalar_lea.hbm %s220_s26, 16  ;;  %p2161_p2 = scmp.lt.s32.totalorder %s220_s26, %s3649_s2 }
  0x77   : > { %p2159_p1 = scmp.ne.s32.totalorder %s220_s26, %s2158_s1  ;;  %p2162_p3 = scmp.lt.s32.totalorder %s3066_s10, %s2158_s1 }
  0x79   : > { %p2163_p5 = por %p2162_p3, %p2161_p2 }
  0x7b   : > { %p2164_p6 = pnand %p2163_p5, %p2159_p1 }
  0x7d   : > { %2167 = shalt.err (!%p2164_p6)  }
  0x7e   : > { %s2168_s21 = scalar_lea.vmem %s230_s25, 16  ;;  %p2173_p10 = scmp.lt.s32.totalorder %s230_s25, %s3047_s7 }
  0x7f   : > { %p2169_p7 = scmp.ne.s32.totalorder %s230_s25, %s2168_s21  ;;  %p2174_p4 = scmp.lt.s32.totalorder %s3075_s5, %s2168_s21 }
  0x81   : > { %p2175_p13 = por %p2174_p4, %p2173_p10 }
  0x83   : > { %p2176_p8 = pnand %p2175_p13, %p2169_p7 }
  0x85   : > { %2179 = shalt.err (!%p2176_p8)  }
  0x86   : > { %232 = dma.hbm_to_vmem [thread:$0]  %s220_s26, 16, %s230_s25, [#allocation3] }
  0x87   : > { %s249_s19 = sadd.s32 5, %s3044_s4  ;;  %s2888_s6 = smov [#allocation2 + $0x4]  }
  0x88   : > { %s245_s11 = sshll.u32 %s2888_s6, 4  ;;  %s250_s0 = sld [smem:[#allocation5 + %s249_s19]]  ;;  %s246_s11 = int_to_ptr.vmem [resolvable:$true] %s245_s11 }
  0x89   : > { %s2889_s8 = smov [#allocation2 + $0x5]   ;;  %s265_s24 = sadd.s32 6, %s3044_s4 }
  0x8a   : > { %s261_s12 = sshll.u32 %s2889_s8, 4  ;;  %s1835_s9 = sshll.u32 %s234_s13, 4  ;;  %s3124_s12 = int_to_ptr.vmem [resolvable:$true] %s261_s12 }
  0x8b   : > { %s236_s14 = scalar_lea.hbm %s3649_s2, %s1835_s9  ;;  %s3129_s21 = sld [smem:[#allocation5 + %s265_s24]] }
  0x8c   : > { %s2180_s25 = scalar_lea.hbm %s236_s14, 16  ;;  %p2183_p12 = scmp.lt.s32.totalorder %s236_s14, %s3649_s2 }
  0x8d   : > { %p2181_p11 = scmp.ne.s32.totalorder %s236_s14, %s2180_s25  ;;  %p2184_p0 = scmp.lt.s32.totalorder %s3066_s10, %s2180_s25 }
  0x8f   : > { %p2185_p1 = por %p2184_p0, %p2183_p12 }
  0x91   : > { %p2186_p2 = pnand %p2185_p1, %p2181_p11 }
  0x93   : > { %2189 = shalt.err (!%p2186_p2)  }
  0x94   : > { %s2190_s19 = scalar_lea.vmem %s246_s11, 16  ;;  %p2195_p5 = scmp.lt.s32.totalorder %s246_s11, %s3047_s7 }
  0x95   : > { %p2191_p3 = scmp.ne.s32.totalorder %s246_s11, %s2190_s19  ;;  %p2196_p6 = scmp.lt.s32.totalorder %s3075_s5, %s2190_s19 }
  0x97   : > { %p2197_p7 = por %p2196_p6, %p2195_p5 }
  0x99   : > { %p2198_p10 = pnand %p2197_p7, %p2191_p3 }
  0x9b   : > { %2201 = shalt.err (!%p2198_p10)  }
  0x9c   : > { %248 = dma.hbm_to_vmem [thread:$0]  %s236_s14, 16, %s246_s11, [#allocation3] }
  0x9d   : > { %s1836_s13 = sshll.u32 %s250_s0, 4  ;;  %s2890_s24 = smov [#allocation2 + $0x6]  }
  0x9e   : > { %s252_s28 = scalar_lea.hbm %s3649_s2, %s1836_s13  ;;  %s277_s9 = sshll.u32 %s2890_s24, 4  ;;  %s278_s9 = int_to_ptr.vmem [resolvable:$true] %s277_s9 }
  0x9f   : > { %s2202_s1 = scalar_lea.hbm %s252_s28, 16  ;;  %p2205_p13 = scmp.lt.s32.totalorder %s252_s28, %s3649_s2 }
  0xa0   : > { %p2203_p4 = scmp.ne.s32.totalorder %s252_s28, %s2202_s1  ;;  %p2206_p8 = scmp.lt.s32.totalorder %s3066_s10, %s2202_s1 }
  0xa2   : > { %p2207_p11 = por %p2206_p8, %p2205_p13 }
  0xa4   : > { %p2208_p12 = pnand %p2207_p11, %p2203_p4 }
  0xa6   : > { %2211 = shalt.err (!%p2208_p12)  }
  0xa7   : > { %s2212_s11 = scalar_lea.vmem %s3124_s12, 16  ;;  %p2217_p1 = scmp.lt.s32.totalorder %s3124_s12, %s3047_s7 }
  0xa8   : > { %p2213_p0 = scmp.ne.s32.totalorder %s3124_s12, %s2212_s11  ;;  %p2218_p2 = scmp.lt.s32.totalorder %s3075_s5, %s2212_s11 }
  0xaa   : > { %p2219_p3 = por %p2218_p2, %p2217_p1 }
  0xac   : > { %p2220_p5 = pnand %p2219_p3, %p2213_p0 }
  0xae   : > { %2223 = shalt.err (!%p2220_p5)  }
  0xaf   : > { %264 = dma.hbm_to_vmem [thread:$0]  %s252_s28, 16, %s3124_s12, [#allocation3] }
  0xb0   : > { %s281_s0 = sadd.s32 7, %s3044_s4  ;;  %s1837_s14 = sshll.u32 %s3129_s21, 4 }
  0xb1   : > { %s282_s26 = sld [smem:[#allocation5 + %s281_s0]]  ;;  %s268_s6 = scalar_lea.hbm %s3649_s2, %s1837_s14 }
  0xb2   : > { %s2224_s8 = scalar_lea.hbm %s268_s6, 16  ;;  %p2227_p7 = scmp.lt.s32.totalorder %s268_s6, %s3649_s2 }
  0xb3   : > { %p2225_p6 = scmp.ne.s32.totalorder %s268_s6, %s2224_s8  ;;  %p2228_p10 = scmp.lt.s32.totalorder %s3066_s10, %s2224_s8 }
  0xb5   : > { %p2229_p4 = por %p2228_p10, %p2227_p7 }
  0xb7   : > { %p2230_p13 = pnand %p2229_p4, %p2225_p6 }
  0xb9   : > { %2233 = shalt.err (!%p2230_p13)  }
  0xba   : > { %s2234_s22 = scalar_lea.vmem %s278_s9, 16  ;;  %p2239_p11 = scmp.lt.s32.totalorder %s278_s9, %s3047_s7 }
  0xbb   : > { %p2235_p8 = scmp.ne.s32.totalorder %s278_s9, %s2234_s22  ;;  %p2240_p12 = scmp.lt.s32.totalorder %s3075_s5, %s2234_s22 }
  0xbd   : > { %p2241_p0 = por %p2240_p12, %p2239_p11 }
  0xbf   : > { %p2242_p1 = pnand %p2241_p0, %p2235_p8 }
  0xc1   : > { %2245 = shalt.err (!%p2242_p1)  }
  0xc2   : > { %280 = dma.hbm_to_vmem [thread:$0]  %s268_s6, 16, %s278_s9, [#allocation3] }
  0xc3   : > { %s2891_s12 = smov [#allocation2 + $0x7]   ;;  %s297_s28 = sadd.s32 8, %s3044_s4 }
  0xc4   : > { %s293_s21 = sshll.u32 %s2891_s12, 4  ;;  %s298_s25 = sld [smem:[#allocation5 + %s297_s28]]  ;;  %s294_s21 = int_to_ptr.vmem [resolvable:$true] %s293_s21 }
  0xc5   : > { %s313_s11 = sadd.s32 9, %s3044_s4  ;;  %s1838_s0 = sshll.u32 %s282_s26, 4 }
  0xc6   : > { %s2892_s14 = smov [#allocation2 + $0x8]   ;;  %s284_s24 = scalar_lea.hbm %s3649_s2, %s1838_s0 }
  0xc7   : > { %s309_s19 = sshll.u32 %s2892_s14, 4  ;;  %s2246_s1 = scalar_lea.hbm %s284_s24, 16  ;;  %s3166_s19 = int_to_ptr.vmem [resolvable:$true] %s309_s19 }
  0xc8   : > { %p2247_p2 = scmp.ne.s32.totalorder %s284_s24, %s2246_s1  ;;  %p2249_p3 = scmp.lt.s32.totalorder %s284_s24, %s3649_s2 }
  0xc9   : > { %p2250_p5 = scmp.lt.s32.totalorder %s3066_s10, %s2246_s1 }
  0xcb   : > { %p2251_p6 = por %p2250_p5, %p2249_p3 }
  0xcd   : > { %p2252_p7 = pnand %p2251_p6, %p2247_p2 }
  0xcf   : > { %2255 = shalt.err (!%p2252_p7)  }
  0xd0   : > { %s2256_s22 = scalar_lea.vmem %s294_s21, 16  ;;  %p2261_p4 = scmp.lt.s32.totalorder %s294_s21, %s3047_s7 }
  0xd1   : > { %p2257_p10 = scmp.ne.s32.totalorder %s294_s21, %s2256_s22  ;;  %p2262_p13 = scmp.lt.s32.totalorder %s3075_s5, %s2256_s22 }
  0xd3   : > { %p2263_p8 = por %p2262_p13, %p2261_p4 }
  0xd5   : > { %p2264_p11 = pnand %p2263_p8, %p2257_p10 }
  0xd7   : > { %2267 = shalt.err (!%p2264_p11)  }
  0xd8   : > { %296 = dma.hbm_to_vmem [thread:$0]  %s284_s24, 16, %s294_s21, [#allocation3] }
  0xd9   : > { %s314_s26 = sld [smem:[#allocation5 + %s313_s11]]  ;;  %s1839_s12 = sshll.u32 %s298_s25, 4 }
  0xda   : > { %s2893_s28 = smov [#allocation2 + $0x9]   ;;  %s300_s8 = scalar_lea.hbm %s3649_s2, %s1839_s12 }
  0xdb   : > { %s325_s0 = sshll.u32 %s2893_s28, 4  ;;  %s2268_s1 = scalar_lea.hbm %s300_s8, 16  ;;  %s3177_s0 = int_to_ptr.vmem [resolvable:$true] %s325_s0 }
  0xdc   : > { %p2269_p12 = scmp.ne.s32.totalorder %s300_s8, %s2268_s1  ;;  %p2271_p0 = scmp.lt.s32.totalorder %s300_s8, %s3649_s2 }
  0xdd   : > { %p2272_p1 = scmp.lt.s32.totalorder %s3066_s10, %s2268_s1 }
  0xdf   : > { %p2273_p2 = por %p2272_p1, %p2271_p0 }
  0xe1   : > { %p2274_p3 = pnand %p2273_p2, %p2269_p12 }
  0xe3   : > { %2277 = shalt.err (!%p2274_p3)  }
  0xe4   : > { %s2278_s21 = scalar_lea.vmem %s3166_s19, 16  ;;  %p2283_p6 = scmp.lt.s32.totalorder %s3166_s19, %s3047_s7 }
  0xe5   : > { %p2279_p5 = scmp.ne.s32.totalorder %s3166_s19, %s2278_s21  ;;  %p2284_p7 = scmp.lt.s32.totalorder %s3075_s5, %s2278_s21 }
  0xe7   : > { %p2285_p10 = por %p2284_p7, %p2283_p6 }
  0xe9   : > { %p2286_p4 = pnand %p2285_p10, %p2279_p5 }
  0xeb   : > { %2289 = shalt.err (!%p2286_p4)  }
  0xec   : > { %312 = dma.hbm_to_vmem [thread:$0]  %s300_s8, 16, %s3166_s19, [#allocation3] }
  0xed   : > { %s329_s25 = sadd.s32 10, %s3044_s4  ;;  %s2894_s24 = smov [#allocation2 + $0xa]  }
  0xee   : > { %s3190_s11 = sld [smem:[#allocation5 + %s329_s25]]  ;;  %s341_s22 = sshll.u32 %s2894_s24, 4  ;;  %s3192_s22 = int_to_ptr.vmem [resolvable:$true] %s341_s22 }
  0xef   : > { %s1840_s12 = sshll.u32 %s314_s26, 4  ;;  %s345_s1 = sadd.s32 11, %s3044_s4 }
  0xf0   : > { %s316_s13 = scalar_lea.hbm %s3649_s2, %s1840_s12 }
  0xf1   : > { %s2290_s9 = scalar_lea.hbm %s316_s13, 16  ;;  %p2293_p8 = scmp.lt.s32.totalorder %s316_s13, %s3649_s2 }
  0xf2   : > { %p2291_p13 = scmp.ne.s32.totalorder %s316_s13, %s2290_s9  ;;  %p2294_p11 = scmp.lt.s32.totalorder %s3066_s10, %s2290_s9 }
  0xf4   : > { %p2295_p12 = por %p2294_p11, %p2293_p8 }
  0xf6   : > { %p2296_p0 = pnand %p2295_p12, %p2291_p13 }
  0xf8   : > { %2299 = shalt.err (!%p2296_p0)  }
  0xf9   : > { %s2300_s19 = scalar_lea.vmem %s3177_s0, 16  ;;  %p2305_p2 = scmp.lt.s32.totalorder %s3177_s0, %s3047_s7 }
  0xfa   : > { %p2301_p1 = scmp.ne.s32.totalorder %s3177_s0, %s2300_s19  ;;  %p2306_p3 = scmp.lt.s32.totalorder %s3075_s5, %s2300_s19 }
  0xfc   : > { %p2307_p5 = por %p2306_p3, %p2305_p2 }
  0xfe   : > { %p2308_p6 = pnand %p2307_p5, %p2301_p1 }
 0x100   : > { %2311 = shalt.err (!%p2308_p6)  }
 0x101   : > { %328 = dma.hbm_to_vmem [thread:$0]  %s316_s13, 16, %s3177_s0, [#allocation3] }
 0x102   : > { %s346_s26 = sld [smem:[#allocation5 + %s345_s1]]  ;;  %s2895_s8 = smov [#allocation2 + $0xb]  }
 0x103   : > { %s357_s25 = sshll.u32 %s2895_s8, 4  ;;  %s361_s24 = sadd.s32 12, %s3044_s4  ;;  %s3210_s25 = int_to_ptr.vmem [resolvable:$true] %s357_s25 }
 0x104   : > { %s1841_s12 = sshll.u32 %s3190_s11, 4  ;;  %s3215_s6 = sld [smem:[#allocation5 + %s361_s24]] }
 0x105   : > { %s332_s9 = scalar_lea.hbm %s3649_s2, %s1841_s12 }
 0x106   : > { %s2312_s21 = scalar_lea.hbm %s332_s9, 16  ;;  %p2315_p10 = scmp.lt.s32.totalorder %s332_s9, %s3649_s2 }
 0x107   : > { %p2313_p7 = scmp.ne.s32.totalorder %s332_s9, %s2312_s21  ;;  %p2316_p4 = scmp.lt.s32.totalorder %s3066_s10, %s2312_s21 }
 0x109   : > { %p2317_p13 = por %p2316_p4, %p2315_p10 }
 0x10b   : > { %p2318_p8 = pnand %p2317_p13, %p2313_p7 }
 0x10d   : > { %2321 = shalt.err (!%p2318_p8)  }
 0x10e   : > { %s2322_s0 = scalar_lea.vmem %s3192_s22, 16  ;;  %p2327_p12 = scmp.lt.s32.totalorder %s3192_s22, %s3047_s7 }
 0x10f   : > { %p2323_p11 = scmp.ne.s32.totalorder %s3192_s22, %s2322_s0  ;;  %p2328_p0 = scmp.lt.s32.totalorder %s3075_s5, %s2322_s0 }
 0x111   : > { %p2329_p1 = por %p2328_p0, %p2327_p12 }
 0x113   : > { %p2330_p2 = pnand %p2329_p1, %p2323_p11 }
 0x115   : > { %2333 = shalt.err (!%p2330_p2)  }
 0x116   : > { %344 = dma.hbm_to_vmem [thread:$0]  %s332_s9, 16, %s3192_s22, [#allocation3] }
 0x117   : > { %s377_s17 = sadd.s32 13, %s3044_s4  ;;  %s1842_s11 = sshll.u32 %s346_s26, 4 }
 0x118   : > { %s2896_s13 = smov [#allocation2 + $0xc]   ;;  %s348_s12 = scalar_lea.hbm %s3649_s2, %s1842_s11 }
 0x119   : > { %s373_s1 = sshll.u32 %s2896_s13, 4  ;;  %s2334_s28 = scalar_lea.hbm %s348_s12, 16  ;;  %s3231_s1 = int_to_ptr.vmem [resolvable:$true] %s373_s1 }
 0x11a   : > { %p2335_p3 = scmp.ne.s32.totalorder %s348_s12, %s2334_s28  ;;  %p2337_p5 = scmp.lt.s32.totalorder %s348_s12, %s3649_s2 }
 0x11b   : > { %p2338_p6 = scmp.lt.s32.totalorder %s3066_s10, %s2334_s28 }
 0x11d   : > { %p2339_p7 = por %p2338_p6, %p2337_p5 }
 0x11f   : > { %p2340_p10 = pnand %p2339_p7, %p2335_p3 }
 0x121   : > { %2343 = shalt.err (!%p2340_p10)  }
 0x122   : > { %s2344_s22 = scalar_lea.vmem %s3210_s25, 16  ;;  %p2349_p13 = scmp.lt.s32.totalorder %s3210_s25, %s3047_s7 }
 0x123   : > { %p2345_p4 = scmp.ne.s32.totalorder %s3210_s25, %s2344_s22  ;;  %p2350_p8 = scmp.lt.s32.totalorder %s3075_s5, %s2344_s22 }
 0x125   : > { %p2351_p11 = por %p2350_p8, %p2349_p13 }
 0x127   : > { %p2352_p12 = pnand %p2351_p11, %p2345_p4 }
 0x129   : > { %2355 = shalt.err (!%p2352_p12)  }
 0x12a   : > { %360 = dma.hbm_to_vmem [thread:$0]  %s348_s12, 16, %s3210_s25, [#allocation3] }
 0x12b   : > { %s1843_s26 = sshll.u32 %s3215_s6, 4  ;;  %s378_s9 = sld [smem:[#allocation5 + %s377_s17]] }
 0x12c   : > { %s364_s11 = scalar_lea.hbm %s3649_s2, %s1843_s26 }
 0x12d   : > { %s2356_s13 = scalar_lea.hbm %s364_s11, 16  ;;  %p2359_p1 = scmp.lt.s32.totalorder %s364_s11, %s3649_s2 }
 0x12e   : > { %p2357_p0 = scmp.ne.s32.totalorder %s364_s11, %s2356_s13  ;;  %p2360_p2 = scmp.lt.s32.totalorder %s3066_s10, %s2356_s13 }
 0x130   : > { %p2361_p3 = por %p2360_p2, %p2359_p1 }
 0x132   : > { %p2362_p5 = pnand %p2361_p3, %p2357_p0 }
 0x134   : > { %2365 = shalt.err (!%p2362_p5)  }
 0x135   : > { %s2366_s25 = scalar_lea.vmem %s3231_s1, 16  ;;  %p2371_p7 = scmp.lt.s32.totalorder %s3231_s1, %s3047_s7 }
 0x136   : > { %p2367_p6 = scmp.ne.s32.totalorder %s3231_s1, %s2366_s25  ;;  %p2372_p10 = scmp.lt.s32.totalorder %s3075_s5, %s2366_s25 }
 0x138   : > { %p2373_p4 = por %p2372_p10, %p2371_p7 }
 0x13a   : > { %p2374_p13 = pnand %p2373_p4, %p2367_p6 }
 0x13c   : > { %2377 = shalt.err (!%p2374_p13)  }
 0x13d   : > { %376 = dma.hbm_to_vmem [thread:$0]  %s364_s11, 16, %s3231_s1, [#allocation3] }
 0x13e   : > { %s2897_s6 = smov [#allocation2 + $0xd]   ;;  %s393_s12 = sadd.s32 14, %s3044_s4 }
 0x13f   : > { %s389_s17 = sshll.u32 %s2897_s6, 4  ;;  %s394_s28 = sld [smem:[#allocation5 + %s393_s12]]  ;;  %s390_s17 = int_to_ptr.vmem [resolvable:$true] %s389_s17 }
 0x140   : > { %s409_s14 = sadd.s32 15, %s3044_s4  ;;  %s1844_s21 = sshll.u32 %s378_s9, 4 }
 0x141   : > { %s2898_s22 = smov [#allocation2 + $0xe]   ;;  %s380_s13 = scalar_lea.hbm %s3649_s2, %s1844_s21 }
 0x142   : > { %s405_s26 = sshll.u32 %s2898_s22, 4  ;;  %s2378_s8 = scalar_lea.hbm %s380_s13, 16  ;;  %s3262_s26 = int_to_ptr.vmem [resolvable:$true] %s405_s26 }
 0x143   : > { %p2379_p8 = scmp.ne.s32.totalorder %s380_s13, %s2378_s8  ;;  %p2381_p11 = scmp.lt.s32.totalorder %s380_s13, %s3649_s2 }
 0x144   : > { %p2382_p12 = scmp.lt.s32.totalorder %s3066_s10, %s2378_s8 }
 0x146   : > { %p2383_p0 = por %p2382_p12, %p2381_p11 }
 0x148   : > { %p2384_p1 = pnand %p2383_p0, %p2379_p8 }
 0x14a   : > { %2387 = shalt.err (!%p2384_p1)  }
 0x14b   : > { %s2388_s1 = scalar_lea.vmem %s390_s17, 16  ;;  %p2393_p3 = scmp.lt.s32.totalorder %s390_s17, %s3047_s7 }
 0x14c   : > { %p2389_p2 = scmp.ne.s32.totalorder %s390_s17, %s2388_s1  ;;  %p2394_p5 = scmp.lt.s32.totalorder %s3075_s5, %s2388_s1 }
 0x14e   : > { %p2395_p6 = por %p2394_p5, %p2393_p3 }
 0x150   : > { %p2396_p7 = pnand %p2395_p6, %p2389_p2 }
 0x152   : > { %2399 = shalt.err (!%p2396_p7)  }
 0x153   : > { %392 = dma.hbm_to_vmem [thread:$0]  %s380_s13, 16, %s390_s17, [#allocation3] }
 0x154   : > { %s410_s9 = sld [smem:[#allocation5 + %s409_s14]]  ;;  %s1845_s11 = sshll.u32 %s394_s28, 4 }
 0x155   : > { %s2899_s6 = smov [#allocation2 + $0xf]   ;;  %s396_s19 = scalar_lea.hbm %s3649_s2, %s1845_s11 }
 0x156   : > { %s421_s12 = sshll.u32 %s2899_s6, 4  ;;  %s2400_s0 = scalar_lea.hbm %s396_s19, 16  ;;  %s3273_s12 = int_to_ptr.vmem [resolvable:$true] %s421_s12 }
 0x157   : > { %p2401_p10 = scmp.ne.s32.totalorder %s396_s19, %s2400_s0  ;;  %p2403_p4 = scmp.lt.s32.totalorder %s396_s19, %s3649_s2 }
 0x158   : > { %p2404_p13 = scmp.lt.s32.totalorder %s3066_s10, %s2400_s0 }
 0x15a   : > { %p2405_p8 = por %p2404_p13, %p2403_p4 }
 0x15c   : > { %p2406_p11 = pnand %p2405_p8, %p2401_p10 }
 0x15e   : > { %2409 = shalt.err (!%p2406_p11)  }
 0x15f   : > { %s2410_s17 = scalar_lea.vmem %s3262_s26, 16  ;;  %p2415_p0 = scmp.lt.s32.totalorder %s3262_s26, %s3047_s7 }
 0x160   : > { %p2411_p12 = scmp.ne.s32.totalorder %s3262_s26, %s2410_s17  ;;  %p2416_p1 = scmp.lt.s32.totalorder %s3075_s5, %s2410_s17 }
 0x162   : > { %p2417_p2 = por %p2416_p1, %p2415_p0 }
 0x164   : > { %p2418_p3 = pnand %p2417_p2, %p2411_p12 }
 0x166   : > { %2421 = shalt.err (!%p2418_p3)  }
 0x167   : > { %408 = dma.hbm_to_vmem [thread:$0]  %s396_s19, 16, %s3262_s26, [#allocation3] }
 0x168   : > { %s425_s28 = sadd.s32 16, %s3044_s4  ;;  %s2900_s13 = smov [#allocation2 + $0x10]  }
 0x169   : > { %s3286_s14 = sld [smem:[#allocation5 + %s425_s28]]  ;;  %s437_s25 = sshll.u32 %s2900_s13, 4  ;;  %s3288_s25 = int_to_ptr.vmem [resolvable:$true] %s437_s25 }
 0x16a   : > { %s1846_s1 = sshll.u32 %s410_s9, 4  ;;  %s441_s22 = sadd.s32 17, %s3044_s4 }
 0x16b   : > { %s412_s21 = scalar_lea.hbm %s3649_s2, %s1846_s1 }
 0x16c   : > { %s2422_s0 = scalar_lea.hbm %s412_s21, 16  ;;  %p2425_p6 = scmp.lt.s32.totalorder %s412_s21, %s3649_s2 }
 0x16d   : > { %p2423_p5 = scmp.ne.s32.totalorder %s412_s21, %s2422_s0  ;;  %p2426_p7 = scmp.lt.s32.totalorder %s3066_s10, %s2422_s0 }
 0x16f   : > { %p2427_p10 = por %p2426_p7, %p2425_p6 }
 0x171   : > { %p2428_p4 = pnand %p2427_p10, %p2423_p5 }
 0x173   : > { %2431 = shalt.err (!%p2428_p4)  }
 0x174   : > { %s2432_s26 = scalar_lea.vmem %s3273_s12, 16  ;;  %p2437_p8 = scmp.lt.s32.totalorder %s3273_s12, %s3047_s7 }
 0x175   : > { %p2433_p13 = scmp.ne.s32.totalorder %s3273_s12, %s2432_s26  ;;  %p2438_p11 = scmp.lt.s32.totalorder %s3075_s5, %s2432_s26 }
 0x177   : > { %p2439_p12 = por %p2438_p11, %p2437_p8 }
 0x179   : > { %p2440_p0 = pnand %p2439_p12, %p2433_p13 }
 0x17b   : > { %2443 = shalt.err (!%p2440_p0)  }
 0x17c   : > { %424 = dma.hbm_to_vmem [thread:$0]  %s412_s21, 16, %s3273_s12, [#allocation3] }
 0x17d   : > { %s442_s9 = sld [smem:[#allocation5 + %s441_s22]]  ;;  %s2901_s19 = smov [#allocation2 + $0x11]  }
 0x17e   : > { %s453_s17 = sshll.u32 %s2901_s19, 4  ;;  %s457_s28 = sadd.s32 18, %s3044_s4  ;;  %s3306_s17 = int_to_ptr.vmem [resolvable:$true] %s453_s17 }
 0x17f   : > { %s1847_s13 = sshll.u32 %s3286_s14, 4  ;;  %s3311_s0 = sld [smem:[#allocation5 + %s457_s28]] }
 0x180   : > { %s428_s6 = scalar_lea.hbm %s3649_s2, %s1847_s13 }
 0x181   : > { %s2444_s8 = scalar_lea.hbm %s428_s6, 16  ;;  %p2447_p2 = scmp.lt.s32.totalorder %s428_s6, %s3649_s2 }
 0x182   : > { %p2445_p1 = scmp.ne.s32.totalorder %s428_s6, %s2444_s8  ;;  %p2448_p3 = scmp.lt.s32.totalorder %s3066_s10, %s2444_s8 }
 0x184   : > { %p2449_p5 = por %p2448_p3, %p2447_p2 }
 0x186   : > { %p2450_p6 = pnand %p2449_p5, %p2445_p1 }
 0x188   : > { %2453 = shalt.err (!%p2450_p6)  }
 0x189   : > { %s2454_s12 = scalar_lea.vmem %s3288_s25, 16  ;;  %p2459_p10 = scmp.lt.s32.totalorder %s3288_s25, %s3047_s7 }
 0x18a   : > { %p2455_p7 = scmp.ne.s32.totalorder %s3288_s25, %s2454_s12  ;;  %p2460_p4 = scmp.lt.s32.totalorder %s3075_s5, %s2454_s12 }
 0x18c   : > { %p2461_p13 = por %p2460_p4, %p2459_p10 }
 0x18e   : > { %p2462_p8 = pnand %p2461_p13, %p2455_p7 }
 0x190   : > { %2465 = shalt.err (!%p2462_p8)  }
 0x191   : > { %440 = dma.hbm_to_vmem [thread:$0]  %s428_s6, 16, %s3288_s25, [#allocation3] }
 0x192   : > { %s473_s14 = sadd.s32 19, %s3044_s4  ;;  %s1848_s21 = sshll.u32 %s442_s9, 4 }
 0x193   : > { %s2902_s22 = smov [#allocation2 + $0x12]   ;;  %s444_s1 = scalar_lea.hbm %s3649_s2, %s1848_s21 }
 0x194   : > { %s469_s19 = sshll.u32 %s2902_s22, 4  ;;  %s2466_s11 = scalar_lea.hbm %s444_s1, 16  ;;  %s3327_s19 = int_to_ptr.vmem [resolvable:$true] %s469_s19 }
 0x195   : > { %p2467_p11 = scmp.ne.s32.totalorder %s444_s1, %s2466_s11  ;;  %p2469_p12 = scmp.lt.s32.totalorder %s444_s1, %s3649_s2 }
 0x196   : > { %p2470_p0 = scmp.lt.s32.totalorder %s3066_s10, %s2466_s11 }
 0x198   : > { %p2471_p1 = por %p2470_p0, %p2469_p12 }
 0x19a   : > { %p2472_p2 = pnand %p2471_p1, %p2467_p11 }
 0x19c   : > { %2475 = shalt.err (!%p2472_p2)  }
 0x19d   : > { %s2476_s25 = scalar_lea.vmem %s3306_s17, 16  ;;  %p2481_p5 = scmp.lt.s32.totalorder %s3306_s17, %s3047_s7 }
 0x19e   : > { %p2477_p3 = scmp.ne.s32.totalorder %s3306_s17, %s2476_s25  ;;  %p2482_p6 = scmp.lt.s32.totalorder %s3075_s5, %s2476_s25 }
 0x1a0   : > { %p2483_p7 = por %p2482_p6, %p2481_p5 }
 0x1a2   : > { %p2484_p10 = pnand %p2483_p7, %p2477_p3 }
 0x1a4   : > { %2487 = shalt.err (!%p2484_p10)  }
 0x1a5   : > { %456 = dma.hbm_to_vmem [thread:$0]  %s444_s1, 16, %s3306_s17, [#allocation3] }
 0x1a6   : > { %s1849_s9 = sshll.u32 %s3311_s0, 4  ;;  %s474_s6 = sld [smem:[#allocation5 + %s473_s14]] }
 0x1a7   : > { %s460_s21 = scalar_lea.hbm %s3649_s2, %s1849_s9 }
 0x1a8   : > { %s2488_s22 = scalar_lea.hbm %s460_s21, 16  ;;  %p2491_p13 = scmp.lt.s32.totalorder %s460_s21, %s3649_s2 }
 0x1a9   : > { %p2489_p4 = scmp.ne.s32.totalorder %s460_s21, %s2488_s22  ;;  %p2492_p8 = scmp.lt.s32.totalorder %s3066_s10, %s2488_s22 }
 0x1ab   : > { %p2493_p11 = por %p2492_p8, %p2491_p13 }
 0x1ad   : > { %p2494_p12 = pnand %p2493_p11, %p2489_p4 }
 0x1af   : > { %2497 = shalt.err (!%p2494_p12)  }
 0x1b0   : > { %s2498_s17 = scalar_lea.vmem %s3327_s19, 16  ;;  %p2503_p1 = scmp.lt.s32.totalorder %s3327_s19, %s3047_s7 }
 0x1b1   : > { %p2499_p0 = scmp.ne.s32.totalorder %s3327_s19, %s2498_s17  ;;  %p2504_p2 = scmp.lt.s32.totalorder %s3075_s5, %s2498_s17 }
 0x1b3   : > { %p2505_p3 = por %p2504_p2, %p2503_p1 }
 0x1b5   : > { %p2506_p5 = pnand %p2505_p3, %p2499_p0 }
 0x1b7   : > { %2509 = shalt.err (!%p2506_p5)  }
 0x1b8   : > { %472 = dma.hbm_to_vmem [thread:$0]  %s460_s21, 16, %s3327_s19, [#allocation3] }
 0x1b9   : > { %s2903_s0 = smov [#allocation2 + $0x13]   ;;  %s489_s1 = sadd.s32 20, %s3044_s4 }
 0x1ba   : > { %s485_s14 = sshll.u32 %s2903_s0, 4  ;;  %s490_s11 = sld [smem:[#allocation5 + %s489_s1]]  ;;  %s486_s14 = int_to_ptr.vmem [resolvable:$true] %s485_s14 }
 0x1bb   : > { %s505_s8 = sadd.s32 21, %s3044_s4  ;;  %s1850_s24 = sshll.u32 %s474_s6, 4 }
 0x1bc   : > { %s2904_s25 = smov [#allocation2 + $0x14]   ;;  %s476_s22 = scalar_lea.hbm %s3649_s2, %s1850_s24 }
 0x1bd   : > { %s501_s9 = sshll.u32 %s2904_s25, 4  ;;  %s2510_s28 = scalar_lea.hbm %s476_s22, 16  ;;  %s3358_s9 = int_to_ptr.vmem [resolvable:$true] %s501_s9 }
 0x1be   : > { %p2511_p6 = scmp.ne.s32.totalorder %s476_s22, %s2510_s28  ;;  %p2513_p7 = scmp.lt.s32.totalorder %s476_s22, %s3649_s2 }
 0x1bf   : > { %p2514_p10 = scmp.lt.s32.totalorder %s3066_s10, %s2510_s28 }
 0x1c1   : > { %p2515_p4 = por %p2514_p10, %p2513_p7 }
 0x1c3   : > { %p2516_p13 = pnand %p2515_p4, %p2511_p6 }
 0x1c5   : > { %2519 = shalt.err (!%p2516_p13)  }
 0x1c6   : > { %s2520_s19 = scalar_lea.vmem %s486_s14, 16  ;;  %p2525_p11 = scmp.lt.s32.totalorder %s486_s14, %s3047_s7 }
 0x1c7   : > { %p2521_p8 = scmp.ne.s32.totalorder %s486_s14, %s2520_s19  ;;  %p2526_p12 = scmp.lt.s32.totalorder %s3075_s5, %s2520_s19 }
 0x1c9   : > { %p2527_p0 = por %p2526_p12, %p2525_p11 }
 0x1cb   : > { %p2528_p1 = pnand %p2527_p0, %p2521_p8 }
 0x1cd   : > { %2531 = shalt.err (!%p2528_p1)  }
 0x1ce   : > { %488 = dma.hbm_to_vmem [thread:$0]  %s476_s22, 16, %s486_s14, [#allocation3] }
 0x1cf   : > { %s506_s6 = sld [smem:[#allocation5 + %s505_s8]]  ;;  %s1851_s21 = sshll.u32 %s490_s11, 4 }
 0x1d0   : > { %s2905_s0 = smov [#allocation2 + $0x15]   ;;  %s492_s26 = scalar_lea.hbm %s3649_s2, %s1851_s21 }
 0x1d1   : > { %s517_s1 = sshll.u32 %s2905_s0, 4  ;;  %s2532_s12 = scalar_lea.hbm %s492_s26, 16  ;;  %s3369_s1 = int_to_ptr.vmem [resolvable:$true] %s517_s1 }
 0x1d2   : > { %p2533_p2 = scmp.ne.s32.totalorder %s492_s26, %s2532_s12  ;;  %p2535_p3 = scmp.lt.s32.totalorder %s492_s26, %s3649_s2 }
 0x1d3   : > { %p2536_p5 = scmp.lt.s32.totalorder %s3066_s10, %s2532_s12 }
 0x1d5   : > { %p2537_p6 = por %p2536_p5, %p2535_p3 }
 0x1d7   : > { %p2538_p7 = pnand %p2537_p6, %p2533_p2 }
 0x1d9   : > { %2541 = shalt.err (!%p2538_p7)  }
 0x1da   : > { %s2542_s14 = scalar_lea.vmem %s3358_s9, 16  ;;  %p2547_p4 = scmp.lt.s32.totalorder %s3358_s9, %s3047_s7 }
 0x1db   : > { %p2543_p10 = scmp.ne.s32.totalorder %s3358_s9, %s2542_s14  ;;  %p2548_p13 = scmp.lt.s32.totalorder %s3075_s5, %s2542_s14 }
 0x1dd   : > { %p2549_p8 = por %p2548_p13, %p2547_p4 }
 0x1df   : > { %p2550_p11 = pnand %p2549_p8, %p2543_p10 }
 0x1e1   : > { %2553 = shalt.err (!%p2550_p11)  }
 0x1e2   : > { %504 = dma.hbm_to_vmem [thread:$0]  %s492_s26, 16, %s3358_s9, [#allocation3] }
 0x1e3   : > { %s521_s11 = sadd.s32 22, %s3044_s4  ;;  %s2906_s22 = smov [#allocation2 + $0x16]  }
 0x1e4   : > { %s3382_s8 = sld [smem:[#allocation5 + %s521_s11]]  ;;  %s533_s17 = sshll.u32 %s2906_s22, 4  ;;  %s3384_s17 = int_to_ptr.vmem [resolvable:$true] %s533_s17 }
 0x1e5   : > { %s1852_s19 = sshll.u32 %s506_s6, 4  ;;  %s537_s25 = sadd.s32 23, %s3044_s4 }
 0x1e6   : > { %s508_s24 = scalar_lea.hbm %s3649_s2, %s1852_s19 }
 0x1e7   : > { %s2554_s12 = scalar_lea.hbm %s508_s24, 16  ;;  %p2557_p0 = scmp.lt.s32.totalorder %s508_s24, %s3649_s2 }
 0x1e8   : > { %p2555_p12 = scmp.ne.s32.totalorder %s508_s24, %s2554_s12  ;;  %p2558_p1 = scmp.lt.s32.totalorder %s3066_s10, %s2554_s12 }
 0x1ea   : > { %p2559_p2 = por %p2558_p1, %p2557_p0 }
 0x1ec   : > { %p2560_p3 = pnand %p2559_p2, %p2555_p12 }
 0x1ee   : > { %2563 = shalt.err (!%p2560_p3)  }
 0x1ef   : > { %s2564_s9 = scalar_lea.vmem %s3369_s1, 16  ;;  %p2569_p6 = scmp.lt.s32.totalorder %s3369_s1, %s3047_s7 }
 0x1f0   : > { %p2565_p5 = scmp.ne.s32.totalorder %s3369_s1, %s2564_s9  ;;  %p2570_p7 = scmp.lt.s32.totalorder %s3075_s5, %s2564_s9 }
 0x1f2   : > { %p2571_p10 = por %p2570_p7, %p2569_p6 }
 0x1f4   : > { %p2572_p4 = pnand %p2571_p10, %p2565_p5 }
 0x1f6   : > { %2575 = shalt.err (!%p2572_p4)  }
 0x1f7   : > { %520 = dma.hbm_to_vmem [thread:$0]  %s508_s24, 16, %s3369_s1, [#allocation3] }
 0x1f8   : > { %s538_s6 = sld [smem:[#allocation5 + %s537_s25]]  ;;  %s2907_s26 = smov [#allocation2 + $0x17]  }
 0x1f9   : > { %s549_s14 = sshll.u32 %s2907_s26, 4  ;;  %s553_s11 = sadd.s32 24, %s3044_s4  ;;  %s3402_s14 = int_to_ptr.vmem [resolvable:$true] %s549_s14 }
 0x1fa   : > { %s1853_s22 = sshll.u32 %s3382_s8, 4  ;;  %s3407_s12 = sld [smem:[#allocation5 + %s553_s11]] }
 0x1fb   : > { %s524_s0 = scalar_lea.hbm %s3649_s2, %s1853_s22 }
 0x1fc   : > { %s2576_s28 = scalar_lea.hbm %s524_s0, 16  ;;  %p2579_p8 = scmp.lt.s32.totalorder %s524_s0, %s3649_s2 }
 0x1fd   : > { %p2577_p13 = scmp.ne.s32.totalorder %s524_s0, %s2576_s28  ;;  %p2580_p11 = scmp.lt.s32.totalorder %s3066_s10, %s2576_s28 }
 0x1ff   : > { %p2581_p12 = por %p2580_p11, %p2579_p8 }
 0x201   : > { %p2582_p0 = pnand %p2581_p12, %p2577_p13 }
 0x203   : > { %2585 = shalt.err (!%p2582_p0)  }
 0x204   : > { %s2586_s1 = scalar_lea.vmem %s3384_s17, 16  ;;  %p2591_p2 = scmp.lt.s32.totalorder %s3384_s17, %s3047_s7 }
 0x205   : > { %p2587_p1 = scmp.ne.s32.totalorder %s3384_s17, %s2586_s1  ;;  %p2592_p3 = scmp.lt.s32.totalorder %s3075_s5, %s2586_s1 }
 0x207   : > { %p2593_p5 = por %p2592_p3, %p2591_p2 }
 0x209   : > { %p2594_p6 = pnand %p2593_p5, %p2587_p1 }
 0x20b   : > { %2597 = shalt.err (!%p2594_p6)  }
 0x20c   : > { %536 = dma.hbm_to_vmem [thread:$0]  %s524_s0, 16, %s3384_s17, [#allocation3] }
 0x20d   : > { %s569_s8 = sadd.s32 25, %s3044_s4  ;;  %s1854_s24 = sshll.u32 %s538_s6, 4 }
 0x20e   : > { %s2908_s25 = smov [#allocation2 + $0x18]   ;;  %s540_s19 = scalar_lea.hbm %s3649_s2, %s1854_s24 }
 0x20f   : > { %s565_s26 = sshll.u32 %s2908_s25, 4  ;;  %s2598_s21 = scalar_lea.hbm %s540_s19, 16  ;;  %s3423_s26 = int_to_ptr.vmem [resolvable:$true] %s565_s26 }
 0x210   : > { %p2599_p7 = scmp.ne.s32.totalorder %s540_s19, %s2598_s21  ;;  %p2601_p10 = scmp.lt.s32.totalorder %s540_s19, %s3649_s2 }
 0x211   : > { %p2602_p4 = scmp.lt.s32.totalorder %s3066_s10, %s2598_s21 }
 0x213   : > { %p2603_p13 = por %p2602_p4, %p2601_p10 }
 0x215   : > { %p2604_p8 = pnand %p2603_p13, %p2599_p7 }
 0x217   : > { %2607 = shalt.err (!%p2604_p8)  }
 0x218   : > { %s2608_s17 = scalar_lea.vmem %s3402_s14, 16  ;;  %p2613_p12 = scmp.lt.s32.totalorder %s3402_s14, %s3047_s7 }
 0x219   : > { %p2609_p11 = scmp.ne.s32.totalorder %s3402_s14, %s2608_s17  ;;  %p2614_p0 = scmp.lt.s32.totalorder %s3075_s5, %s2608_s17 }
 0x21b   : > { %p2615_p1 = por %p2614_p0, %p2613_p12 }
 0x21d   : > { %p2616_p2 = pnand %p2615_p1, %p2609_p11 }
 0x21f   : > { %2619 = shalt.err (!%p2616_p2)  }
 0x220   : > { %552 = dma.hbm_to_vmem [thread:$0]  %s540_s19, 16, %s3402_s14, [#allocation3] }
 0x221   : > { %s1855_s6 = sshll.u32 %s3407_s12, 4  ;;  %s570_s0 = sld [smem:[#allocation5 + %s569_s8]] }
 0x222   : > { %s556_s24 = scalar_lea.hbm %s3649_s2, %s1855_s6 }
 0x223   : > { %s2620_s25 = scalar_lea.hbm %s556_s24, 16  ;;  %p2623_p5 = scmp.lt.s32.totalorder %s556_s24, %s3649_s2 }
 0x224   : > { %p2621_p3 = scmp.ne.s32.totalorder %s556_s24, %s2620_s25  ;;  %p2624_p6 = scmp.lt.s32.totalorder %s3066_s10, %s2620_s25 }
 0x226   : > { %p2625_p7 = por %p2624_p6, %p2623_p5 }
 0x228   : > { %p2626_p10 = pnand %p2625_p7, %p2621_p3 }
 0x22a   : > { %2629 = shalt.err (!%p2626_p10)  }
 0x22b   : > { %s2630_s14 = scalar_lea.vmem %s3423_s26, 16  ;;  %p2635_p13 = scmp.lt.s32.totalorder %s3423_s26, %s3047_s7 }
 0x22c   : > { %p2631_p4 = scmp.ne.s32.totalorder %s3423_s26, %s2630_s14  ;;  %p2636_p8 = scmp.lt.s32.totalorder %s3075_s5, %s2630_s14 }
 0x22e   : > { %p2637_p11 = por %p2636_p8, %p2635_p13 }
 0x230   : > { %p2638_p12 = pnand %p2637_p11, %p2631_p4 }
 0x232   : > { %2641 = shalt.err (!%p2638_p12)  }
 0x233   : > { %568 = dma.hbm_to_vmem [thread:$0]  %s556_s24, 16, %s3423_s26, [#allocation3] }
 0x234   : > { %s2909_s12 = smov [#allocation2 + $0x19]   ;;  %s585_s19 = sadd.s32 26, %s3044_s4 }
 0x235   : > { %s581_s8 = sshll.u32 %s2909_s12, 4  ;;  %s586_s21 = sld [smem:[#allocation5 + %s585_s19]]  ;;  %s582_s8 = int_to_ptr.vmem [resolvable:$true] %s581_s8 }
 0x236   : > { %s601_s28 = sadd.s32 27, %s3044_s4  ;;  %s1856_s13 = sshll.u32 %s570_s0, 4 }
 0x237   : > { %s2910_s17 = smov [#allocation2 + $0x1a]   ;;  %s572_s25 = scalar_lea.hbm %s3649_s2, %s1856_s13 }
 0x238   : > { %s597_s6 = sshll.u32 %s2910_s17, 4  ;;  %s2642_s11 = scalar_lea.hbm %s572_s25, 16  ;;  %s3454_s6 = int_to_ptr.vmem [resolvable:$true] %s597_s6 }
 0x239   : > { %p2643_p0 = scmp.ne.s32.totalorder %s572_s25, %s2642_s11  ;;  %p2645_p1 = scmp.lt.s32.totalorder %s572_s25, %s3649_s2 }
 0x23a   : > { %p2646_p2 = scmp.lt.s32.totalorder %s3066_s10, %s2642_s11 }
 0x23c   : > { %p2647_p3 = por %p2646_p2, %p2645_p1 }
 0x23e   : > { %p2648_p5 = pnand %p2647_p3, %p2643_p0 }
 0x240   : > { %2651 = shalt.err (!%p2648_p5)  }
 0x241   : > { %s2652_s26 = scalar_lea.vmem %s582_s8, 16  ;;  %p2657_p7 = scmp.lt.s32.totalorder %s582_s8, %s3047_s7 }
 0x242   : > { %p2653_p6 = scmp.ne.s32.totalorder %s582_s8, %s2652_s26  ;;  %p2658_p10 = scmp.lt.s32.totalorder %s3075_s5, %s2652_s26 }
 0x244   : > { %p2659_p4 = por %p2658_p10, %p2657_p7 }
 0x246   : > { %p2660_p13 = pnand %p2659_p4, %p2653_p6 }
 0x248   : > { %2663 = shalt.err (!%p2660_p13)  }
 0x249   : > { %584 = dma.hbm_to_vmem [thread:$0]  %s572_s25, 16, %s582_s8, [#allocation3] }
 0x24a   : > { %s602_s0 = sld [smem:[#allocation5 + %s601_s28]]  ;;  %s1857_s24 = sshll.u32 %s586_s21, 4 }
 0x24b   : > { %s2911_s12 = smov [#allocation2 + $0x1b]   ;;  %s588_s9 = scalar_lea.hbm %s3649_s2, %s1857_s24 }
 0x24c   : > { %s613_s19 = sshll.u32 %s2911_s12, 4  ;;  %s2664_s1 = scalar_lea.hbm %s588_s9, 16  ;;  %s3465_s19 = int_to_ptr.vmem [resolvable:$true] %s613_s19 }
 0x24d   : > { %p2665_p8 = scmp.ne.s32.totalorder %s588_s9, %s2664_s1  ;;  %p2667_p11 = scmp.lt.s32.totalorder %s588_s9, %s3649_s2 }
 0x24e   : > { %p2668_p12 = scmp.lt.s32.totalorder %s3066_s10, %s2664_s1 }
 0x250   : > { %p2669_p0 = por %p2668_p12, %p2667_p11 }
 0x252   : > { %p2670_p1 = pnand %p2669_p0, %p2665_p8 }
 0x254   : > { %2673 = shalt.err (!%p2670_p1)  }
 0x255   : > { %s2674_s8 = scalar_lea.vmem %s3454_s6, 16  ;;  %p2679_p3 = scmp.lt.s32.totalorder %s3454_s6, %s3047_s7 }
 0x256   : > { %p2675_p2 = scmp.ne.s32.totalorder %s3454_s6, %s2674_s8  ;;  %p2680_p5 = scmp.lt.s32.totalorder %s3075_s5, %s2674_s8 }
 0x258   : > { %p2681_p6 = por %p2680_p5, %p2679_p3 }
 0x25a   : > { %p2682_p7 = pnand %p2681_p6, %p2675_p2 }
 0x25c   : > { %2685 = shalt.err (!%p2682_p7)  }
 0x25d   : > { %600 = dma.hbm_to_vmem [thread:$0]  %s588_s9, 16, %s3454_s6, [#allocation3] }
 0x25e   : > { %s617_s21 = sadd.s32 28, %s3044_s4  ;;  %s2912_s25 = smov [#allocation2 + $0x1c]  }
 0x25f   : > { %s3478_s28 = sld [smem:[#allocation5 + %s617_s21]]  ;;  %s629_s14 = sshll.u32 %s2912_s25, 4  ;;  %s3480_s14 = int_to_ptr.vmem [resolvable:$true] %s629_s14 }
 0x260   : > { %s1858_s26 = sshll.u32 %s602_s0, 4  ;;  %s633_s17 = sadd.s32 29, %s3044_s4 }
 0x261   : > { %s604_s13 = scalar_lea.hbm %s3649_s2, %s1858_s26 }
 0x262   : > { %s2686_s1 = scalar_lea.hbm %s604_s13, 16  ;;  %p2689_p4 = scmp.lt.s32.totalorder %s604_s13, %s3649_s2 }
 0x263   : > { %p2687_p10 = scmp.ne.s32.totalorder %s604_s13, %s2686_s1  ;;  %p2690_p13 = scmp.lt.s32.totalorder %s3066_s10, %s2686_s1 }
 0x265   : > { %p2691_p8 = por %p2690_p13, %p2689_p4 }
 0x267   : > { %p2692_p11 = pnand %p2691_p8, %p2687_p10 }
 0x269   : > { %2695 = shalt.err (!%p2692_p11)  }
 0x26a   : > { %s2696_s6 = scalar_lea.vmem %s3465_s19, 16  ;;  %p2701_p0 = scmp.lt.s32.totalorder %s3465_s19, %s3047_s7 }
 0x26b   : > { %p2697_p12 = scmp.ne.s32.totalorder %s3465_s19, %s2696_s6  ;;  %p2702_p1 = scmp.lt.s32.totalorder %s3075_s5, %s2696_s6 }
 0x26d   : > { %p2703_p2 = por %p2702_p1, %p2701_p0 }
 0x26f   : > { %p2704_p3 = pnand %p2703_p2, %p2697_p12 }
 0x271   : > { %2707 = shalt.err (!%p2704_p3)  }
 0x272   : > { %616 = dma.hbm_to_vmem [thread:$0]  %s604_s13, 16, %s3465_s19, [#allocation3] }
 0x273   : > { %s3496_s0 = sld [smem:[#allocation5 + %s633_s17]]  ;;  %s2913_s9 = smov [#allocation2 + $0x1d]  }
 0x274   : > { %s645_s8 = sshll.u32 %s2913_s9, 4  ;;  %s649_s21 = sadd.s32 30, %s3044_s4  ;;  %s3500_s8 = int_to_ptr.vmem [resolvable:$true] %s645_s8 }
 0x275   : > { %s1859_s25 = sshll.u32 %s3478_s28, 4  ;;  %s3505_s1 = sld [smem:[#allocation5 + %s649_s21]] }
 0x276   : > { %s620_s12 = scalar_lea.hbm %s3649_s2, %s1859_s25 }
 0x277   : > { %s2708_s11 = scalar_lea.hbm %s620_s12, 16  ;;  %p2711_p6 = scmp.lt.s32.totalorder %s620_s12, %s3649_s2 }
 0x278   : > { %p2709_p5 = scmp.ne.s32.totalorder %s620_s12, %s2708_s11  ;;  %p2712_p7 = scmp.lt.s32.totalorder %s3066_s10, %s2708_s11 }
 0x27a   : > { %p2713_p10 = por %p2712_p7, %p2711_p6 }
 0x27c   : > { %p2714_p4 = pnand %p2713_p10, %p2709_p5 }
 0x27e   : > { %2717 = shalt.err (!%p2714_p4)  }
 0x27f   : > { %s2718_s19 = scalar_lea.vmem %s3480_s14, 16  ;;  %p2723_p8 = scmp.lt.s32.totalorder %s3480_s14, %s3047_s7 }
 0x280   : > { %p2719_p13 = scmp.ne.s32.totalorder %s3480_s14, %s2718_s19  ;;  %p2724_p11 = scmp.lt.s32.totalorder %s3075_s5, %s2718_s19 }
 0x282   : > { %p2725_p12 = por %p2724_p11, %p2723_p8 }
 0x284   : > { %p2726_p0 = pnand %p2725_p12, %p2719_p13 }
 0x286   : > { %2729 = shalt.err (!%p2726_p0)  }
 0x287   : > { %632 = dma.hbm_to_vmem [thread:$0]  %s620_s12, 16, %s3480_s14, [#allocation3]  ;;  %v2915_v0 = vmov 0.0  }
 0x288   : > { %s1860_s28 = sshll.u32 %s3496_s0, 4  ;;  %s2914_s13 = smov [#allocation2 + $0x1e]  }
 0x289   : > { %s661_s17 = sshll.u32 %s2914_s13, 4  ;;  %s3666_s9 = sshll.u32 %s3031_s23, 3  ;;  %s3527_s17 = int_to_ptr.vmem [resolvable:$true] %s661_s17 }
 0x28a   : > { %s3520_s21 = scalar_lea.vmem [#allocation9], %s3666_s9  ;;  %s636_s24 = scalar_lea.hbm %s3649_s2, %s1860_s28 }
 0x28b   : > { %169 = vst [vmem:[%s3520_s21] sm:$0xff] %v2915_v0  ;;  %s2730_s11 = scalar_lea.hbm %s636_s24, 16  ;;  %p2733_p2 = scmp.lt.s32.totalorder %s636_s24, %s3649_s2 }
 0x28c   : > { %p2731_p1 = scmp.ne.s32.totalorder %s636_s24, %s2730_s11  ;;  %p2734_p3 = scmp.lt.s32.totalorder %s3066_s10, %s2730_s11 }
 0x28e   : > { %p2735_p5 = por %p2734_p3, %p2733_p2 }
 0x290   : > { %p2736_p6 = pnand %p2735_p5, %p2731_p1 }
 0x292   : > { %2739 = shalt.err (!%p2736_p6)  }
 0x293   : > { %s2740_s0 = scalar_lea.vmem %s3500_s8, 16  ;;  %p2745_p10 = scmp.lt.s32.totalorder %s3500_s8, %s3047_s7 }
 0x294   : > { %p2741_p7 = scmp.ne.s32.totalorder %s3500_s8, %s2740_s0  ;;  %p2746_p4 = scmp.lt.s32.totalorder %s3075_s5, %s2740_s0 }
 0x296   : > { %p2747_p13 = por %p2746_p4, %p2745_p10 }
 0x298   : > { %p2748_p8 = pnand %p2747_p13, %p2741_p7 }
 0x29a   : > { %2751 = shalt.err (!%p2748_p8)  }
 0x29b   : > { %648 = dma.hbm_to_vmem [thread:$0]  %s636_s24, 16, %s3500_s8, [#allocation3] }
 0x29c   : > { %s1861_s12 = sshll.u32 %s3505_s1, 4  ;;  %s665_s6 = sadd.s32 31, %s3044_s4 }
 0x29d   : > { %s652_s13 = scalar_lea.hbm %s3649_s2, %s1861_s12  ;;  %s666_s9 = sld [smem:[#allocation5 + %s665_s6]] }
 0x29e   : > { %s2752_s25 = scalar_lea.hbm %s652_s13, 16  ;;  %p2755_p12 = scmp.lt.s32.totalorder %s652_s13, %s3649_s2 }
 0x29f   : > { %p2753_p11 = scmp.ne.s32.totalorder %s652_s13, %s2752_s25  ;;  %p2756_p0 = scmp.lt.s32.totalorder %s3066_s10, %s2752_s25 }
 0x2a1   : > { %p2757_p1 = por %p2756_p0, %p2755_p12 }
 0x2a3   : > { %p2758_p2 = pnand %p2757_p1, %p2753_p11 }
 0x2a5   : > { %2761 = shalt.err (!%p2758_p2)  }
 0x2a6   : > { %s2762_s4 = scalar_lea.vmem %s3527_s17, 16  ;;  %p2767_p5 = scmp.lt.s32.totalorder %s3527_s17, %s3047_s7 }
 0x2a7   : > { %p2763_p3 = scmp.ne.s32.totalorder %s3527_s17, %s2762_s4  ;;  %p2768_p6 = scmp.lt.s32.totalorder %s3075_s5, %s2762_s4 }
 0x2a9   : > { %p2769_p7 = por %p2768_p6, %p2767_p5 }
 0x2ab   : > { %p2770_p10 = pnand %p2769_p7, %p2763_p3 }
 0x2ad   : > { %2773 = shalt.err (!%p2770_p10)  }
 0x2ae   : > { %664 = dma.hbm_to_vmem [thread:$0]  %s652_s13, 16, %s3527_s17, [#allocation3] }
 0x2af   : > { %s2916_s8 = smov [#allocation2 + $0x1f]   ;;  %s1862_s24 = sshll.u32 %s666_s9, 4 }
 0x2b0   : > { %s677_s1 = sshll.u32 %s2916_s8, 4  ;;  %s668_s0 = scalar_lea.hbm %s3649_s2, %s1862_s24  ;;  %s678_s1 = int_to_ptr.vmem [resolvable:$true] %s677_s1 }
 0x2b1   : > { %s2774_s12 = scalar_lea.hbm %s668_s0, 16  ;;  %p2777_p13 = scmp.lt.s32.totalorder %s668_s0, %s3649_s2 }
 0x2b2   : > { %p2775_p4 = scmp.ne.s32.totalorder %s668_s0, %s2774_s12  ;;  %p2778_p8 = scmp.lt.s32.totalorder %s3066_s10, %s2774_s12 }
 0x2b4   : > { %p2779_p11 = por %p2778_p8, %p2777_p13 }
 0x2b6   : > { %p2780_p12 = pnand %p2779_p11, %p2775_p4 }
 0x2b8   : > { %2783 = shalt.err (!%p2780_p12)  }
 0x2b9   : > { %s2784_s28 = scalar_lea.vmem %s678_s1, 16  ;;  %p2789_p1 = scmp.lt.s32.totalorder %s678_s1, %s3047_s7 }
 0x2ba   : > { %p2785_p0 = scmp.ne.s32.totalorder %s678_s1, %s2784_s28  ;;  %p2790_p2 = scmp.lt.s32.totalorder %s3075_s5, %s2784_s28 }
 0x2bc   : > { %p2791_p3 = por %p2790_p2, %p2789_p1 }
 0x2be   : > { %p2792_p5 = pnand %p2791_p3, %p2785_p0 }
 0x2c0   : > { %2795 = shalt.err (!%p2792_p5)  }
 0x2c1   : > { %680 = dma.hbm_to_vmem [thread:$0]  %s668_s0, 16, %s678_s1, [#allocation3] }
 0x2c2   : > { %2852 = dma.done.wait [#allocation3], 512 }
 0x2c3   : > { %2853 = vsyncadd [#allocation3], 4294966784  ;;  %1945 = vmatprep.subr.mxu0 %v2915_v0  ;;  %v1303_v1 = vld [vmem:[#allocation2 + $0x18] sm:$0xff]  ;;  %v3564_v2 = vld [vmem:[#allocation2 + $0x10] sm:$0xff]  ;;  %s2917_s7 = smov 96   ;;  %s2918_s10 = smov 32  }
 0x2c4   : > { %v3566_v3 = vld [vmem:[#allocation2 + $0x8] sm:$0xff]  ;;  %v1930_v4 = vshrl.u32 %v1303_v1, 24  ;;  %v1929_v5 = vshrl.u32 %v3564_v2, 24  ;;  %v1315_v6 = vshra.s32 %v1303_v1, 8  ;;  %v1314_v7 = vshra.s32 %v3564_v2, 8  ;;  %v1300_v20 = vld [vmem:[#allocation2] sm:$0xff] }
 0x2c5   : > { %v1327_v8 = vshra.s32 %v1303_v1, 16  ;;  %v1313_v9 = vshra.s32 %v3566_v3, 8  ;;  %v1326_v14 = vshra.s32 %v3564_v2, 16  ;;  %v1325_v15 = vshra.s32 %v3566_v3, 16  ;;  %s2919_s5 = smov 64   ;;  %s1933_s17 = sshll.u32 %s2872_s18, 7 }
 0x2c6   : > { %v1347_v10 = vcvt.s32.f32 %v1930_v4  ;;  %v1346_v11 = vcvt.s32.f32 %v1929_v5  ;;  %v1319_v12 = vand.u32 255, %v1315_v6  ;;  %v1318_v13 = vand.u32 255, %v1314_v7  ;;  %v1412_v5 = vld [vmem:[%s3037_s30] sm:$0xff]  ;;  %v1411_v7 = vld [vmem:[%s3520_s21] sm:$0xff]  ;;  %s1502_s13 = sshll.u32 %s3520_s21, 4  ;;  %s3604_s26 = scalar_lea.hbm %s3650_s3, %s1933_s17  ;;  %s1503_s13 = int_to_ptr.vmem [resolvable:$true] %s1502_s13 }
 0x2c7   : > { %v1331_v18 = vand.u32 255, %v1327_v8  ;;  %v1317_v19 = vand.u32 255, %v1313_v9  ;;  %v1330_v21 = vand.u32 255, %v1326_v14  ;;  %v1329_v24 = vand.u32 255, %v1325_v15  ;;  %s1489_s30 = scalar_lea.sflag [#allocation8], %s3031_s23  ;;  %s2796_s11 = scalar_lea.vmem %s1503_s13, 128 }
 0x2c8   : > { %1390 = vrot.lane.b32.xlu1 %v1347_v10, %s2917_s7  ;;  %1388 = vrot.lane.b32.xlu0 %v1346_v11, %s2917_s7  ;;  %v1323_v16 = vcvt.s32.f32 %v1319_v12  ;;  %v1322_v17 = vcvt.s32.f32 %v1318_v13  ;;  %v1312_v25 = vshra.s32 %v1300_v20, 8  ;;  %v1928_v27 = vshrl.u32 %v3566_v3, 24  ;;  %p2797_p6 = scmp.ne.s32.totalorder %s1503_s13, %s2796_s11  ;;  %s2921_s4 = smov [#allocation9]  }
 0x2c9   : > { %v1335_v22 = vcvt.s32.f32 %v1331_v18  ;;  %v1321_v23 = vcvt.s32.f32 %v1317_v19  ;;  %v1334_v26 = vcvt.s32.f32 %v1330_v21  ;;  %v1333_v28 = vcvt.s32.f32 %v1329_v24  ;;  %s2800_s8 = sshll.u32 %s2921_s4, 4  ;;  %s2801_s8 = int_to_ptr.vmem [resolvable:$false] %s2800_s8 }
 0x2ca   : > { %v1316_v29 = vand.u32 255, %v1312_v25  ;;  %v1324_v30 = vshra.s32 %v1300_v20, 16  ;;  %vm2920_vm0 = vmmov 0   ;;  %v1345_v31 = vcvt.s32.f32 %v1928_v27  ;;  %p2798_p7 = pnand %p2797_p6, %p2996_p9  ;;  %s2802_s18 = scalar_lea.vmem %s2801_s8, 256 }
 0x2cb   : > { %1953 = vmatprep.mubr.msk.f32.mxu0 %vm2920_vm0, %v2915_v0  ;;  %v1927_v34 = vshrl.u32 %v1300_v20, 24  ;;  %v1307_v39 = vand.u32 255, %v1303_v1  ;;  %v1306_v43 = vand.u32 255, %v3564_v2  ;;  %vm1396_vm1 = vcmask 261120   ;;  %p2803_p4 = scmp.lt.s32.totalorder %s1503_s13, %s2801_s8  ;;  %p2804_p13 = scmp.lt.s32.totalorder %s2802_s18, %s2796_s11 }
 0x2cc   : > { %1358 = vrot.lane.b32.xlu0 %v1323_v16, %s2918_s10  ;;  %1356 = vrot.lane.b32.xlu1 %v1322_v17, %s2918_s10  ;;  %v1320_v32 = vcvt.s32.f32 %v1316_v29  ;;  %v1328_v33 = vand.u32 255, %v1324_v30  ;;  %vm1401_vm2 = vcmask 523264   ;;  %v1305_v44 = vand.u32 255, %v3566_v3  ;;  %p2799_p10 = pneg %p2798_p7 }
 0x2cd   : > { %v1344_v36 = vcvt.s32.f32 %v1927_v34  ;;  %v1311_v40 = vcvt.s32.f32 %v1307_v39  ;;  %vm1406_vm3 = vcmask 785408   ;;  %v1310_v46 = vcvt.s32.f32 %v1306_v43  ;;  %p2805_p8 = por %p2804_p13, %p2803_p4 }
 0x2ce   : > { %v1332_v35 = vcvt.s32.f32 %v1328_v33  ;;  %v1309_v51 = vcvt.s32.f32 %v1305_v44  ;;  %v1304_v55 = vand.u32 255, %v1300_v20 }
 0x2cf   : > { %p2806_p11 = pnand %p2805_p8, %p2799_p10 }
 0x2d0   : > { %1374 = vrot.lane.b32.xlu0 %v1335_v22, %s2919_s5  ;;  %1354 = vrot.lane.b32.xlu1 %v1321_v23, %s2918_s10  ;;  %v1308_v62 = vcvt.s32.f32 %v1304_v55 }
 0x2d4   : > { %1372 = vrot.lane.b32.xlu0 %v1334_v26, %s2919_s5  ;;  %1370 = vrot.lane.b32.xlu1 %v1333_v28, %s2919_s5 }
 0x2d8   : > { %1386 = vrot.lane.b32.xlu1 %v1345_v31, %s2917_s7  ;;  %1352 = vrot.lane.b32.xlu0 %v1320_v32, %s2918_s10 }
 0x2dc   : > { %1368 = vrot.lane.b32.xlu0 %v1332_v35, %s2919_s5  ;;  %1384 = vrot.lane.b32.xlu1 %v1344_v36, %s2917_s7 }
 0x33a   : > { %v1391_v37 = vpop.permute.xlu1 %1390  ;;  %v1389_v38 = vpop.permute.xlu0 %1388 }
 0x33e   : > { %v1359_v41 = vpop.permute.xlu0 %1358  ;;  %v1357_v42 = vpop.permute.xlu1 %1356 }
 0x33f   : > { %v1400_v45 = vsel %vm1396_vm1, %v1311_v40, %v1359_v41  ;;  %v1399_v52 = vsel %vm1396_vm1, %v1310_v46, %v1357_v42 }
 0x342   : > { %v1375_v47 = vpop.permute.xlu0 %1374  ;;  %v1355_v48 = vpop.permute.xlu1 %1354 }
 0x343   : > { %v1405_v49 = vsel %vm1401_vm2, %v1400_v45, %v1375_v47  ;;  %v1398_v58 = vsel %vm1396_vm1, %v1309_v51, %v1355_v48 }
 0x344   : > { %v1410_v50 = vsel %vm1406_vm3, %v1405_v49, %v1391_v37 }
 0x345   : > { %1946 = vmatpush3.msra.mxu0 %v1410_v50 }
 0x346   : > { %v1373_v53 = vpop.permute.xlu0 %1372  ;;  %v1371_v54 = vpop.permute.xlu1 %1370  ;;  %1947 = vmatprep.subr.mxu0 %v2915_v0 }
 0x347   : > { %v1404_v56 = vsel %vm1401_vm2, %v1399_v52, %v1373_v53  ;;  %v1403_v59 = vsel %vm1401_vm2, %v1398_v58, %v1371_v54 }
 0x348   : > { %v1409_v57 = vsel %vm1406_vm3, %v1404_v56, %v1389_v38 }
 0x349   : > { %1948 = vmatpush3.msra.mxu0 %v1409_v57 }
 0x34a   : > { %v1387_v60 = vpop.permute.xlu1 %1386  ;;  %v1353_v61 = vpop.permute.xlu0 %1352  ;;  %1949 = vmatprep.subr.mxu0 %v2915_v0 }
 0x34b   : > { %v1408_v63 = vsel %vm1406_vm3, %v1403_v59, %v1387_v60  ;;  %v1397_v1 = vsel %vm1396_vm1, %v1308_v62, %v1353_v61 }
 0x34c   : > { %1950 = vmatpush3.msra.mxu0 %v1408_v63 }
 0x34d   : > { %1951 = vmatprep.subr.mxu0 %v2915_v0 }
 0x34e   : > { %v1369_v2 = vpop.permute.xlu0 %1368  ;;  %v1385_v3 = vpop.permute.xlu1 %1384 }
 0x34f   : > { %v1402_v4 = vsel %vm1401_vm2, %v1397_v1, %v1369_v2 }
 0x350   : > { %v1407_v6 = vsel %vm1406_vm3, %v1402_v4, %v1385_v3 }
 0x351   : > { %1952 = vmatpush3.msra.mxu0 %v1407_v6 }
 0x352   : > { %1954 = vmatmul.mubr.msk.f32.vlgmr.msra.gmra.mxu0 %vm1396_vm1, %v1412_v5 }
 0x412   : > { %v1482_v8 = vpop.f32.mrf.mxu0 }
 0x413   : > { %v1486_v0 = vadd.f32 %v1482_v8, %v1411_v7 }
 0x414   : > { %v1955_v9 = vpop.f32.mrf.mxu0 }
 0x415   : > { %1487 = vst [vmem:[%s3520_s21] sm:$0xff] %v1486_v0 }
 0x416   : > { %2809 = shalt.err (!%p2806_p11)
}
 0x417   : > { %s2810_s21 = scalar_lea.hbm %s3604_s26, 128  ;;  %s2814_s24 = scalar_lea.hbm %s3650_s3, 256 }
 0x418   : > { %p2811_p12 = scmp.ne.s32.totalorder %s3604_s26, %s2810_s21  ;;  %p2815_p2 = scmp.lt.s32.totalorder %s3604_s26, %s3650_s3 }
 0x419   : > { %p2816_p3 = scmp.lt.s32.totalorder %s2814_s24, %s2810_s21 }
 0x41a   : > { %p2812_p0 = pnand %p2811_p12, %p2996_p9 }
 0x41b   : > { %p2817_p5 = por %p2816_p3, %p2815_p2 }
 0x41c   : > { %p2813_p1 = pneg %p2812_p0 }
 0x41e   : > { %p2818_p6 = pnand %p2817_p5, %p2813_p1 }
 0x420   : > { %2821 = shalt.err (!%p2818_p6)
}
 0x421   : > { %1958 = dma.vmem_to_hbm [thread:$0]  (%p2996_p9), %s1503_s13, 128, %s3604_s26, %s1489_s30  }
 0x422 PF: > { %s1514_s0 = sand.u32 1, %s2860_s15   ;;  %p3667_p7 = scmp.ne.s32.totalorder %s3663_s29, 0 }
 0x423   : > { %p3668_p10 = scmp.ge.s32.totalorder %s2880_s20, 2  ;;  %s1515_s12 = scalar_lea.sflag [#allocation8], %s1514_s0 }
 0x425   : > { %p1965_p4 = pnand %p3668_p10, %p3667_p7 }
 0x427   : > { %p1966_p13 = pneg %p1965_p4 }
 0x429   : > { %2855 = dma.done.wait (%p1966_p13), %s1515_s12, 128  }
 0x42a   : > { %2857 = vsyncadd (%p1966_p13), %s1515_s12, 4294967168  ;;  %s23_s20 = sadd.s32 1, %s2880_s20   ;;  %s3669_s6 = sld [smem:[#allocation144_spill]] }
 0x42b   : > { %p20_p8 = scmp.ge.s32.totalorder %s23_s20, 4   ;;  %s3670_s17 = sld [smem:[#allocation147_spill]] }
 0x42c   : > { %s3671_s18 = sld [smem:[#allocation145_spill]]  ;;  %s3673_s15 = smov %s2864_s16 }
 0x42d   : > { %s3672_s19 = sld [smem:[#allocation146_spill]]  ;;  %22 = sbr.rel (!%p20_p8) target bundleno = 12 (0xc), region = 464 }
 0x430   : > { %s3674_s16 = smov %s3669_s6 }
 0x432   :  { %1520 = vsyncpa [#allocation7], 1 }
 0x433   :  { %1522 = vsyncpa [#allocation7 + $0x1], 1 }
 0x434   :  { %1523 = vsyncpa [#allocation8], 1 }
 0x435   :  { %1525 = vsyncpa [#allocation8 + $0x1], 1 }
 0x436   :  { %1526 = vsyncmov [#allocation3] }
 0x439   :  { %s1527_s27 = vpop.sfrf %1526 }
 0x43a   :  { %p1936_p9 = scmp.ne.s32.totalorder %s1527_s27, 0 }
 0x43c   :  { %1531 = shalt.err (%p1936_p9)  }
 0x43d   :  { %1533 = vsyncmov [#allocation3 + $0x1] }
 0x440   :  { %s1534_s29 = vpop.sfrf %1533 }
 0x441   :  { %p1937_p11 = scmp.ne.s32.totalorder %s1534_s29, 0 }
 0x443   :  { %1538 = shalt.err (%p1937_p11)  }

</bundles_post_ra>
